<compile_context>
chip_gen: v5e
topology: v5e:2x2
jax: 0.10.0
libtpu: 0.0.40
codegen_flags: <defaults>
</compile_context>

<pallas_src>
import functools

import jax
import jax.numpy as jnp
from jax.experimental import pallas as pl
from jax.experimental.pallas import tpu as pltpu

EPS = 1e-5          # nn.BatchNorm3d default eps
NEG_SLOPE = 0.2     # LeakyReLU slope
LANE = 128          # TPU lane width


def _round_up(x, m):
    return (x + m - 1) // m * m


# --------------------------- Pallas kernels ---------------------------
def _conv_stats_kernel(p_ref, w_ref, y_ref, s1_ref, s2_ref):
    """Pass 1: conv-as-matmul on one M tile + per-tile channel sum / sum-of-squares."""
    # bf16 x bf16 -> f32 accumulation on the MXU.
    y = jnp.dot(p_ref[...], w_ref[...], preferred_element_type=jnp.float32)
    y_ref[...] = y
    c = y.shape[-1]
    s1 = jnp.sum(y, axis=0, keepdims=True)        # (1, Cout_pad)
    s2 = jnp.sum(y * y, axis=0, keepdims=True)    # (1, Cout_pad)
    # Stats blocks are (1, 8, Cout_pad) so the trailing dims stay (8, 128)-tiled.
    s1_ref[0] = jnp.broadcast_to(s1, (8, c))
    s2_ref[0] = jnp.broadcast_to(s2, (8, c))


def _bn_lrelu_kernel(y_ref, scale_ref, shift_ref, o_ref):
    """Pass 2: z = y * scale + shift ; LeakyReLU(0.2). All f32 on the VPU."""
    z = y_ref[...] * scale_ref[...] + shift_ref[...]
    o_ref[...] = jnp.where(z >= 0, z, NEG_SLOPE * z).astype(o_ref.dtype)


# ------------------------- wrapper / glue ------------------------------
def _choose_tm(k_pad, cout_pad, vmem_budget_bytes=12 << 20, tm_max=512):
    """Largest M tile (<= tm_max, multiple of 16) whose double-buffered working set
    fits a conservative VMEM budget on every generation (v7x: 64 MiB physical)."""
    tm = tm_max
    while tm > 16:
        tile_bytes = (2 * tm * k_pad * 2         # double-buffered bf16 patch tile
                      + 2 * tm * cout_pad * 4    # double-buffered f32 y tile
                      + k_pad * cout_pad * 2)    # resident bf16 weights
        if tile_bytes <= vmem_budget_bytes:
            break
        tm //= 2
    return tm


def _im2col_3x3x3(x_ndhwc, k_pad):
    """(N,D,H,W,C) -> (N*D*H*W, k_pad) bf16 patches (zero conv halo + zero K pad)."""
    N, D, H, W, C = x_ndhwc.shape
    xb = jnp.pad(x_ndhwc.astype(jnp.bfloat16),
                 ((0, 0), (1, 1), (1, 1), (1, 1), (0, 0)))
    slabs = [xb[:, dz:dz + D, dy:dy + H, dx:dx + W, :]
             for dz in range(3) for dy in range(3) for dx in range(3)]
    if k_pad > 27 * C:
        slabs.append(jnp.zeros((N, D, H, W, k_pad - 27 * C), jnp.bfloat16))
    return jnp.concatenate(slabs, axis=-1).reshape(N * D * H * W, k_pad)


def _conv_bn_lrelu(x_ndhwc, w_mat, gamma_pad, beta_pad, cout, out_dtype):
    """One Conv3d(3x3x3, pad=1) + BatchNorm3d(train) + LeakyReLU(0.2) block."""
    N, D, H, W, _ = x_ndhwc.shape
    k_pad, cout_pad = w_mat.shape
    M = N * D * H * W
    tm = _choose_tm(k_pad, cout_pad)
    m_pad = _round_up(M, tm)
    n_tiles = m_pad // tm

    patches = _im2col_3x3x3(x_ndhwc, k_pad)
    if m_pad != M:  # zero rows contribute exactly 0 to channel sums (no bias in pass 1)
        patches = jnp.pad(patches, ((0, m_pad - M), (0, 0)))

    cparams = pltpu.CompilerParams(
        dimension_semantics=("parallel",),          # megacore-shardable
        vmem_limit_bytes=32 * 1024 * 1024,
    )

    # ---- pass 1: conv matmul (MXU) + per-tile channel statistics ----
    y, s1, s2 = pl.pallas_call(
        _conv_stats_kernel,
        out_shape=(jax.ShapeDtypeStruct((m_pad, cout_pad), jnp.float32),
                   jax.ShapeDtypeStruct((n_tiles, 8, cout_pad), jnp.float32),
                   jax.ShapeDtypeStruct((n_tiles, 8, cout_pad), jnp.float32)),
        grid=(n_tiles,),
        in_specs=[pl.BlockSpec((tm, k_pad), lambda i: (i, 0)),
                  pl.BlockSpec((k_pad, cout_pad), lambda i: (0, 0))],   # fetched once
        out_specs=(pl.BlockSpec((tm, cout_pad), lambda i: (i, 0)),
                   pl.BlockSpec((1, 8, cout_pad), lambda i: (i, 0, 0)),
                   pl.BlockSpec((1, 8, cout_pad), lambda i: (i, 0, 0))),
        compiler_params=cparams,
    )(patches, w_mat)

    # ---- tiny cross-tile reduction + BN coefficients (XLA, per-channel scalars) ----
    ssum = jnp.sum(s1[:, 0, :], axis=0)
    ssq = jnp.sum(s2[:, 0, :], axis=0)
    mean = ssum / M
    var = jnp.maximum(ssq / M - mean * mean, 0.0)       # biased var, training-mode BN
    inv_std = jax.lax.rsqrt(var + EPS)
    scale = (gamma_pad * inv_std).reshape(1, cout_pad)
    shift = (beta_pad - mean * gamma_pad * inv_std).reshape(1, cout_pad)

    # ---- pass 2: normalize + affine + LeakyReLU ----
    z = pl.pallas_call(
        _bn_lrelu_kernel,
        out_shape=jax.ShapeDtypeStruct((m_pad, cout_pad), out_dtype),
        grid=(n_tiles,),
        in_specs=[pl.BlockSpec((tm, cout_pad), lambda i: (i, 0)),
                  pl.BlockSpec((1, cout_pad), lambda i: (0, 0)),
                  pl.BlockSpec((1, cout_pad), lambda i: (0, 0))],
        out_specs=pl.BlockSpec((tm, cout_pad), lambda i: (i, 0)),
        compiler_params=cparams,
    )(y, scale, shift)

    return z[:M, :cout].reshape(N, D, H, W, cout)


def prepare_conv_params(w, gamma, beta):
    """Pack a PyTorch Conv3d weight (Cout, Cin, 3, 3, 3) into a padded bf16
    (K_pad, Cout_pad) matmul matrix matching the im2col (dz, dy, dx, cin) column
    order, plus padded BN affine params. Called once, OUTSIDE jit (hoisted).
    The Conv3d bias is omitted: it cancels exactly in the following training-mode BN."""
    cout, cin = int(w.shape[0]), int(w.shape[1])
    k = 27 * cin
    k_pad, cout_pad = _round_up(k, LANE), _round_up(cout, LANE)
    wm = jnp.transpose(w, (2, 3, 4, 1, 0)).reshape(k, cout)
    wm = jnp.pad(wm, ((0, k_pad - k), (0, cout_pad - cout))).astype(jnp.bfloat16)
    g = jnp.pad(gamma.astype(jnp.float32), (0, cout_pad - cout))
    b = jnp.pad(beta.astype(jnp.float32), (0, cout_pad - cout))
    return (wm, g, b), cout


@functools.partial(jax.jit, static_argnames=("cout1", "cout2"))
def double_conv(x_ncdhw, block1, block2, *, cout1, cout2):
    """Forward pass of DoubleConv (stride=1). Input/output are NCDHW like PyTorch."""
    # TODO(synk): BatchNorm running_mean/running_var buffer updates (training-time module
    #             state that does not affect the returned tensor) are not reproduced.
    # TODO(synk): stride != 1 in the first conv is not implemented (module default stride=1).
    w1m, g1, b1 = block1
    w2m, g2, b2 = block2
    x = jnp.transpose(x_ncdhw, (0, 2, 3, 4, 1))          # NDHWC (channels-last)
    # Block-1 activation in bf16: block-2's im2col re-casts to bf16 anyway, so final
    # numerics are unchanged while intermediate HBM traffic is halved.
    z1 = _conv_bn_lrelu(x, w1m, g1, b1, cout1, out_dtype=jnp.bfloat16)
    z2 = _conv_bn_lrelu(z1, w2m, g2, b2, cout2, out_dtype=jnp.float32)
    return jnp.transpose(z2, (0, 4, 1, 2, 3))            # back to NCDHW


# --------------------- pure-JAX references for checks ---------------------
def _ref_block(x, w, b, g, be, cast_bf16):
    if cast_bf16:   # same numerics as the kernel: bf16 operands, f32 accumulation
        xc, wc = x.astype(jnp.bfloat16), w.astype(jnp.bfloat16)
        prec = None
    else:           # full-f32 reference
        xc, wc = x, w
        prec = jax.lax.Precision.HIGHEST
    y = jax.lax.conv_general_dilated(
        xc, wc, window_strides=(1, 1, 1), padding="SAME",
        dimension_numbers=("NCDHW", "OIDHW", "NCDHW"),
        preferred_element_type=jnp.float32, precision=prec,
    ) + b[None, :, None, None, None]
    mean = jnp.mean(y, axis=(0, 2, 3, 4), keepdims=True)
    var = jnp.mean(jnp.square(y - mean), axis=(0, 2, 3, 4), keepdims=True)
    z = (y - mean) * jax.lax.rsqrt(var + EPS) * g[None, :, None, None, None] \
        + be[None, :, None, None, None]
    z = jnp.where(z >= 0, z, NEG_SLOPE * z)
    return z.astype(jnp.bfloat16).astype(jnp.float32) if cast_bf16 else z


def ref_double_conv(x, params, cast_bf16=False):
    (w1, b1, g1, be1), (w2, b2, g2, be2) = params
    z1 = _ref_block(x, w1, b1, g1, be1, cast_bf16)
    return _ref_block(z1, w2, b2, g2, be2, cast_bf16)


if __name__ == "__main__":
    key = jax.random.PRNGKey(0)
    N, Cin, Cout, D, H, W = 2, 4, 8, 8, 8, 8

    k_x, k_w1, k_b1, k_w2, k_b2 = jax.random.split(key, 5)
    x = jax.random.normal(k_x, (N, Cin, D, H, W), dtype=jnp.float32)

    w1 = 0.1 * jax.random.normal(k_w1, (Cout, Cin, 3, 3, 3), dtype=jnp.float32)
    b1 = 0.1 * jax.random.normal(k_b1, (Cout,), dtype=jnp.float32)
    g1, be1 = jnp.ones((Cout,), jnp.float32), jnp.zeros((Cout,), jnp.float32)
    w2 = 0.1 * jax.random.normal(k_w2, (Cout, Cout, 3, 3, 3), dtype=jnp.float32)
    b2 = 0.1 * jax.random.normal(k_b2, (Cout,), dtype=jnp.float32)
    g2, be2 = jnp.ones((Cout,), jnp.float32), jnp.zeros((Cout,), jnp.float32)

    # Weight packing / padding hoisted out of the jitted forward (done once).
    block1, cout1 = prepare_conv_params(w1, g1, be1)
    block2, cout2 = prepare_conv_params(w2, g2, be2)

    out = double_conv(x, block1, block2, cout1=cout1, cout2=cout2)
    out = jax.block_until_ready(out)
    assert out.shape == (N, Cout, D, H, W), out.shape
    assert bool(jnp.all(jnp.isfinite(out)))

    params = ((w1, b1, g1, be1), (w2, b2, g2, be2))
    # Check against a reference with matching bf16-matmul / bf16-intermediate semantics.
    ref_bf16 = jax.block_until_ready(ref_double_conv(x, params, cast_bf16=True))
    err_tight = float(jnp.max(jnp.abs(out - ref_bf16)))
    assert jnp.allclose(out, ref_bf16, atol=5e-3, rtol=5e-3), err_tight
    # Looser sanity check against the full-f32 reference (bf16 MXU operands).
    ref_f32 = jax.block_until_ready(ref_double_conv(x, params, cast_bf16=False))
    err_f32 = float(jnp.max(jnp.abs(out - ref_f32)))
    assert jnp.allclose(out, ref_f32, atol=1e-1, rtol=1e-1), err_f32

    print("KERNEL_OK")
</pallas_src>

<mosaic_0001>
module attributes {stable_mosaic.version = 11 : i64} {
  func.func @_conv_stats_kernel(%arg0: i32, %arg1: memref<512x128xbf16, #tpu.memory_space<vmem>>, %arg2: memref<128x128xbf16, #tpu.memory_space<vmem>>, %arg3: memref<512x128xf32, #tpu.memory_space<vmem>>, %arg4: memref<1x8x128xf32, #tpu.memory_space<vmem>>, %arg5: memref<1x8x128xf32, #tpu.memory_space<vmem>>) attributes {dimension_semantics = [#tpu.dimension_semantics<parallel>], iteration_bounds = array<i64: 2>, scalar_prefetch = 0 : i64, scratch_operands = 0 : i64, tpu.core_type = #tpu.core_type<tc>, window_params = [{transform_indices = @transform_0, window_bounds = array<i64: 512, 128>}, {pipeline_mode = #tpu.pipeline_mode<synchronous>, transform_indices = @transform_1, window_bounds = array<i64: 128, 128>}, {transform_indices = @transform_2, window_bounds = array<i64: 512, 128>}, {transform_indices = @transform_3, window_bounds = array<i64: 1, 8, 128>}, {transform_indices = @transform_4, window_bounds = array<i64: 1, 8, 128>}]} {
    %c0 = arith.constant 0 : index
    %c0_0 = arith.constant 0 : index
    %0 = vector.load %arg1[%c0, %c0_0] : memref<512x128xbf16, #tpu.memory_space<vmem>>, vector<512x128xbf16>
    %c0_1 = arith.constant 0 : index
    %c0_2 = arith.constant 0 : index
    %1 = vector.load %arg2[%c0_1, %c0_2] : memref<128x128xbf16, #tpu.memory_space<vmem>>, vector<128x128xbf16>
    %cst = arith.constant dense<0.000000e+00> : vector<512x128xf32>
    %2 = tpu.matmul %0, %1, %cst {dimension_numbers = #tpu.dot_dimension_numbers<[1], [0], [0], [1], [0, 0, 1, 1], [], []>} : vector<512x128xbf16>, vector<128x128xbf16>, vector<512x128xf32> -> vector<512x128xf32>
    %c0_3 = arith.constant 0 : index
    %c0_4 = arith.constant 0 : index
    %3 = vector.load %arg3[%c0_3, %c0_4] : memref<512x128xf32, #tpu.memory_space<vmem>>, vector<512x128xf32>
    tpu.vector_store %arg3[%c0_3, %c0_4], %2 {strides = array<i32>} : memref<512x128xf32, #tpu.memory_space<vmem>>, vector<512x128xf32>,
    %cst_5 = arith.constant dense<0.000000e+00> : vector<128xf32>
    %4 = vector.multi_reduction <add>, %2, %cst_5 [0] : vector<512x128xf32> to vector<128xf32>
    %5 = vector.shape_cast %4 : vector<128xf32> to vector<1x128xf32>
    %6 = arith.mulf %2, %2 : vector<512x128xf32>
    %cst_6 = arith.constant dense<0.000000e+00> : vector<128xf32>
    %7 = vector.multi_reduction <add>, %6, %cst_6 [0] : vector<512x128xf32> to vector<128xf32>
    %8 = vector.shape_cast %7 : vector<128xf32> to vector<1x128xf32>
    %9 = vector.shape_cast %5 : vector<1x128xf32> to vector<1x128xf32>
    %10 = vector.broadcast %9 : vector<1x128xf32> to vector<8x128xf32>
    %c0_7 = arith.constant 0 : index
    %c0_8 = arith.constant 0 : index
    %c0_9 = arith.constant 0 : index
    %11 = vector.load %arg4[%c0_7, %c0_8, %c0_9] : memref<1x8x128xf32, #tpu.memory_space<vmem>>, vector<1x8x128xf32>
    %12 = vector.shape_cast %11 : vector<1x8x128xf32> to vector<8x128xf32>
    %13 = vector.shape_cast %10 : vector<8x128xf32> to vector<1x8x128xf32>
    tpu.vector_store %arg4[%c0_7, %c0_8, %c0_9], %13 {strides = array<i32>} : memref<1x8x128xf32, #tpu.memory_space<vmem>>, vector<1x8x128xf32>,
    %14 = vector.shape_cast %8 : vector<1x128xf32> to vector<1x128xf32>
    %15 = vector.broadcast %14 : vector<1x128xf32> to vector<8x128xf32>
    %c0_10 = arith.constant 0 : index
    %c0_11 = arith.constant 0 : index
    %c0_12 = arith.constant 0 : index
    %16 = vector.load %arg5[%c0_10, %c0_11, %c0_12] : memref<1x8x128xf32, #tpu.memory_space<vmem>>, vector<1x8x128xf32>
    %17 = vector.shape_cast %16 : vector<1x8x128xf32> to vector<8x128xf32>
    %18 = vector.shape_cast %15 : vector<8x128xf32> to vector<1x8x128xf32>
    tpu.vector_store %arg5[%c0_10, %c0_11, %c0_12], %18 {strides = array<i32>} : memref<1x8x128xf32, #tpu.memory_space<vmem>>, vector<1x8x128xf32>,
    return
  }
  func.func @transform_0(%arg0: i32) -> (i32, i32) {
    %c0_i32 = arith.constant 0 : i32
    %c0_i32_0 = arith.constant 0 : i32
    return %arg0, %c0_i32 : i32, i32
  }
  func.func @transform_1(%arg0: i32) -> (i32, i32) {
    %c0_i32 = arith.constant 0 : i32
    %c0_i32_0 = arith.constant 0 : i32
    %c0_i32_1 = arith.constant 0 : i32
    return %c0_i32, %c0_i32_0 : i32, i32
  }
  func.func @transform_2(%arg0: i32) -> (i32, i32) {
    %c0_i32 = arith.constant 0 : i32
    %c0_i32_0 = arith.constant 0 : i32
    return %arg0, %c0_i32 : i32, i32
  }
  func.func @transform_3(%arg0: i32) -> (i32, i32, i32) {
    %c0_i32 = arith.constant 0 : i32
    %c0_i32_0 = arith.constant 0 : i32
    %c0_i32_1 = arith.constant 0 : i32
    return %arg0, %c0_i32, %c0_i32_0 : i32, i32, i32
  }
  func.func @transform_4(%arg0: i32) -> (i32, i32, i32) {
    %c0_i32 = arith.constant 0 : i32
    %c0_i32_0 = arith.constant 0 : i32
    %c0_i32_1 = arith.constant 0 : i32
    return %arg0, %c0_i32, %c0_i32_0 : i32, i32, i32
  }
}

module attributes {stable_mosaic.version = 11 : i64} {
  func.func @_bn_lrelu_kernel(%arg0: i32, %arg1: memref<512x128xf32, #tpu.memory_space<vmem>>, %arg2: memref<1x128xf32, #tpu.memory_space<vmem>>, %arg3: memref<1x128xf32, #tpu.memory_space<vmem>>, %arg4: memref<512x128xbf16, #tpu.memory_space<vmem>>) attributes {dimension_semantics = [#tpu.dimension_semantics<parallel>], iteration_bounds = array<i64: 2>, scalar_prefetch = 0 : i64, scratch_operands = 0 : i64, tpu.core_type = #tpu.core_type<tc>, window_params = [{transform_indices = @transform_0, window_bounds = array<i64: 512, 128>}, {pipeline_mode = #tpu.pipeline_mode<synchronous>, transform_indices = @transform_1, window_bounds = array<i64: 1, 128>}, {pipeline_mode = #tpu.pipeline_mode<synchronous>, transform_indices = @transform_2, window_bounds = array<i64: 1, 128>}, {transform_indices = @transform_3, window_bounds = array<i64: 512, 128>}]} {
    %c0 = arith.constant 0 : index
    %c0_0 = arith.constant 0 : index
    %0 = vector.load %arg1[%c0, %c0_0] : memref<512x128xf32, #tpu.memory_space<vmem>>, vector<512x128xf32>
    %c0_1 = arith.constant 0 : index
    %c0_2 = arith.constant 0 : index
    %1 = vector.load %arg2[%c0_1, %c0_2] : memref<1x128xf32, #tpu.memory_space<vmem>>, vector<1x128xf32>
    %2 = vector.broadcast %1 : vector<1x128xf32> to vector<512x128xf32>
    %3 = arith.mulf %0, %2 : vector<512x128xf32>
    %c0_3 = arith.constant 0 : index
    %c0_4 = arith.constant 0 : index
    %4 = vector.load %arg3[%c0_3, %c0_4] : memref<1x128xf32, #tpu.memory_space<vmem>>, vector<1x128xf32>
    %5 = vector.broadcast %4 : vector<1x128xf32> to vector<512x128xf32>
    %6 = arith.addf %3, %5 : vector<512x128xf32>
    %cst = arith.constant 0.000000e+00 : f32
    %7 = vector.broadcast %cst : f32 to vector<512x128xf32>
    %8 = arith.cmpf oge, %6, %7 : vector<512x128xf32>
    %cst_5 = arith.constant 2.000000e-01 : f32
    %9 = vector.broadcast %cst_5 : f32 to vector<512x128xf32>
    %10 = arith.mulf %9, %6 : vector<512x128xf32>
    %11 = arith.select %8, %6, %10 : vector<512x128xi1>, vector<512x128xf32>
    %12 = arith.truncf %11 : vector<512x128xf32> to vector<512x128xbf16>
    %c0_6 = arith.constant 0 : index
    %c0_7 = arith.constant 0 : index
    %13 = vector.load %arg4[%c0_6, %c0_7] : memref<512x128xbf16, #tpu.memory_space<vmem>>, vector<512x128xbf16>
    tpu.vector_store %arg4[%c0_6, %c0_7], %12 {strides = array<i32>} : memref<512x128xbf16, #tpu.memory_space<vmem>>, vector<512x128xbf16>,
    return
  }
  func.func @transform_0(%arg0: i32) -> (i32, i32) {
    %c0_i32 = arith.constant 0 : i32
    %c0_i32_0 = arith.constant 0 : i32
    return %arg0, %c0_i32 : i32, i32
  }
  func.func @transform_1(%arg0: i32) -> (i32, i32) {
    %c0_i32 = arith.constant 0 : i32
    %c0_i32_0 = arith.constant 0 : i32
    %c0_i32_1 = arith.constant 0 : i32
    return %c0_i32, %c0_i32_0 : i32, i32
  }
  func.func @transform_2(%arg0: i32) -> (i32, i32) {
    %c0_i32 = arith.constant 0 : i32
    %c0_i32_0 = arith.constant 0 : i32
    %c0_i32_1 = arith.constant 0 : i32
    return %c0_i32, %c0_i32_0 : i32, i32
  }
  func.func @transform_3(%arg0: i32) -> (i32, i32) {
    %c0_i32 = arith.constant 0 : i32
    %c0_i32_0 = arith.constant 0 : i32
    return %arg0, %c0_i32 : i32, i32
  }
}

module attributes {stable_mosaic.version = 11 : i64} {
  func.func @_conv_stats_kernel(%arg0: i32, %arg1: memref<512x256xbf16, #tpu.memory_space<vmem>>, %arg2: memref<256x128xbf16, #tpu.memory_space<vmem>>, %arg3: memref<512x128xf32, #tpu.memory_space<vmem>>, %arg4: memref<1x8x128xf32, #tpu.memory_space<vmem>>, %arg5: memref<1x8x128xf32, #tpu.memory_space<vmem>>) attributes {dimension_semantics = [#tpu.dimension_semantics<parallel>], iteration_bounds = array<i64: 2>, scalar_prefetch = 0 : i64, scratch_operands = 0 : i64, tpu.core_type = #tpu.core_type<tc>, window_params = [{transform_indices = @transform_0, window_bounds = array<i64: 512, 256>}, {pipeline_mode = #tpu.pipeline_mode<synchronous>, transform_indices = @transform_1, window_bounds = array<i64: 256, 128>}, {transform_indices = @transform_2, window_bounds = array<i64: 512, 128>}, {transform_indices = @transform_3, window_bounds = array<i64: 1, 8, 128>}, {transform_indices = @transform_4, window_bounds = array<i64: 1, 8, 128>}]} {
    %c0 = arith.constant 0 : index
    %c0_0 = arith.constant 0 : index
    %0 = vector.load %arg1[%c0, %c0_0] : memref<512x256xbf16, #tpu.memory_space<vmem>>, vector<512x256xbf16>
    %c0_1 = arith.constant 0 : index
    %c0_2 = arith.constant 0 : index
    %1 = vector.load %arg2[%c0_1, %c0_2] : memref<256x128xbf16, #tpu.memory_space<vmem>>, vector<256x128xbf16>
    %cst = arith.constant dense<0.000000e+00> : vector<512x128xf32>
    %2 = tpu.matmul %0, %1, %cst {dimension_numbers = #tpu.dot_dimension_numbers<[1], [0], [0], [1], [0, 0, 1, 1], [], []>} : vector<512x256xbf16>, vector<256x128xbf16>, vector<512x128xf32> -> vector<512x128xf32>
    %c0_3 = arith.constant 0 : index
    %c0_4 = arith.constant 0 : index
    %3 = vector.load %arg3[%c0_3, %c0_4] : memref<512x128xf32, #tpu.memory_space<vmem>>, vector<512x128xf32>
    tpu.vector_store %arg3[%c0_3, %c0_4], %2 {strides = array<i32>} : memref<512x128xf32, #tpu.memory_space<vmem>>, vector<512x128xf32>,
    %cst_5 = arith.constant dense<0.000000e+00> : vector<128xf32>
    %4 = vector.multi_reduction <add>, %2, %cst_5 [0] : vector<512x128xf32> to vector<128xf32>
    %5 = vector.shape_cast %4 : vector<128xf32> to vector<1x128xf32>
    %6 = arith.mulf %2, %2 : vector<512x128xf32>
    %cst_6 = arith.constant dense<0.000000e+00> : vector<128xf32>
    %7 = vector.multi_reduction <add>, %6, %cst_6 [0] : vector<512x128xf32> to vector<128xf32>
    %8 = vector.shape_cast %7 : vector<128xf32> to vector<1x128xf32>
    %9 = vector.shape_cast %5 : vector<1x128xf32> to vector<1x128xf32>
    %10 = vector.broadcast %9 : vector<1x128xf32> to vector<8x128xf32>
    %c0_7 = arith.constant 0 : index
    %c0_8 = arith.constant 0 : index
    %c0_9 = arith.constant 0 : index
    %11 = vector.load %arg4[%c0_7, %c0_8, %c0_9] : memref<1x8x128xf32, #tpu.memory_space<vmem>>, vector<1x8x128xf32>
    %12 = vector.shape_cast %11 : vector<1x8x128xf32> to vector<8x128xf32>
    %13 = vector.shape_cast %10 : vector<8x128xf32> to vector<1x8x128xf32>
    tpu.vector_store %arg4[%c0_7, %c0_8, %c0_9], %13 {strides = array<i32>} : memref<1x8x128xf32, #tpu.memory_space<vmem>>, vector<1x8x128xf32>,
    %14 = vector.shape_cast %8 : vector<1x128xf32> to vector<1x128xf32>
    %15 = vector.broadcast %14 : vector<1x128xf32> to vector<8x128xf32>
    %c0_10 = arith.constant 0 : index
    %c0_11 = arith.constant 0 : index
    %c0_12 = arith.constant 0 : index
    %16 = vector.load %arg5[%c0_10, %c0_11, %c0_12] : memref<1x8x128xf32, #tpu.memory_space<vmem>>, vector<1x8x128xf32>
    %17 = vector.shape_cast %16 : vector<1x8x128xf32> to vector<8x128xf32>
    %18 = vector.shape_cast %15 : vector<8x128xf32> to vector<1x8x128xf32>
    tpu.vector_store %arg5[%c0_10, %c0_11, %c0_12], %18 {strides = array<i32>} : memref<1x8x128xf32, #tpu.memory_space<vmem>>, vector<1x8x128xf32>,
    return
  }
  func.func @transform_0(%arg0: i32) -> (i32, i32) {
    %c0_i32 = arith.constant 0 : i32
    %c0_i32_0 = arith.constant 0 : i32
    return %arg0, %c0_i32 : i32, i32
  }
  func.func @transform_1(%arg0: i32) -> (i32, i32) {
    %c0_i32 = arith.constant 0 : i32
    %c0_i32_0 = arith.constant 0 : i32
    %c0_i32_1 = arith.constant 0 : i32
    return %c0_i32, %c0_i32_0 : i32, i32
  }
  func.func @transform_2(%arg0: i32) -> (i32, i32) {
    %c0_i32 = arith.constant 0 : i32
    %c0_i32_0 = arith.constant 0 : i32
    return %arg0, %c0_i32 : i32, i32
  }
  func.func @transform_3(%arg0: i32) -> (i32, i32, i32) {
    %c0_i32 = arith.constant 0 : i32
    %c0_i32_0 = arith.constant 0 : i32
    %c0_i32_1 = arith.constant 0 : i32
    return %arg0, %c0_i32, %c0_i32_0 : i32, i32, i32
  }
  func.func @transform_4(%arg0: i32) -> (i32, i32, i32) {
    %c0_i32 = arith.constant 0 : i32
    %c0_i32_0 = arith.constant 0 : i32
    %c0_i32_1 = arith.constant 0 : i32
    return %arg0, %c0_i32, %c0_i32_0 : i32, i32, i32
  }
}

module attributes {stable_mosaic.version = 11 : i64} {
  func.func @_bn_lrelu_kernel(%arg0: i32, %arg1: memref<512x128xf32, #tpu.memory_space<vmem>>, %arg2: memref<1x128xf32, #tpu.memory_space<vmem>>, %arg3: memref<1x128xf32, #tpu.memory_space<vmem>>, %arg4: memref<512x128xf32, #tpu.memory_space<vmem>>) attributes {dimension_semantics = [#tpu.dimension_semantics<parallel>], iteration_bounds = array<i64: 2>, scalar_prefetch = 0 : i64, scratch_operands = 0 : i64, tpu.core_type = #tpu.core_type<tc>, window_params = [{transform_indices = @transform_0, window_bounds = array<i64: 512, 128>}, {pipeline_mode = #tpu.pipeline_mode<synchronous>, transform_indices = @transform_1, window_bounds = array<i64: 1, 128>}, {pipeline_mode = #tpu.pipeline_mode<synchronous>, transform_indices = @transform_2, window_bounds = array<i64: 1, 128>}, {transform_indices = @transform_3, window_bounds = array<i64: 512, 128>}]} {
    %c0 = arith.constant 0 : index
    %c0_0 = arith.constant 0 : index
    %0 = vector.load %arg1[%c0, %c0_0] : memref<512x128xf32, #tpu.memory_space<vmem>>, vector<512x128xf32>
    %c0_1 = arith.constant 0 : index
    %c0_2 = arith.constant 0 : index
    %1 = vector.load %arg2[%c0_1, %c0_2] : memref<1x128xf32, #tpu.memory_space<vmem>>, vector<1x128xf32>
    %2 = vector.broadcast %1 : vector<1x128xf32> to vector<512x128xf32>
    %3 = arith.mulf %0, %2 : vector<512x128xf32>
    %c0_3 = arith.constant 0 : index
    %c0_4 = arith.constant 0 : index
    %4 = vector.load %arg3[%c0_3, %c0_4] : memref<1x128xf32, #tpu.memory_space<vmem>>, vector<1x128xf32>
    %5 = vector.broadcast %4 : vector<1x128xf32> to vector<512x128xf32>
    %6 = arith.addf %3, %5 : vector<512x128xf32>
    %cst = arith.constant 0.000000e+00 : f32
    %7 = vector.broadcast %cst : f32 to vector<512x128xf32>
    %8 = arith.cmpf oge, %6, %7 : vector<512x128xf32>
    %cst_5 = arith.constant 2.000000e-01 : f32
    %9 = vector.broadcast %cst_5 : f32 to vector<512x128xf32>
    %10 = arith.mulf %9, %6 : vector<512x128xf32>
    %11 = arith.select %8, %6, %10 : vector<512x128xi1>, vector<512x128xf32>
    %c0_6 = arith.constant 0 : index
    %c0_7 = arith.constant 0 : index
    %12 = vector.load %arg4[%c0_6, %c0_7] : memref<512x128xf32, #tpu.memory_space<vmem>>, vector<512x128xf32>
    tpu.vector_store %arg4[%c0_6, %c0_7], %11 {strides = array<i32>} : memref<512x128xf32, #tpu.memory_space<vmem>>, vector<512x128xf32>,
    return
  }
  func.func @transform_0(%arg0: i32) -> (i32, i32) {
    %c0_i32 = arith.constant 0 : i32
    %c0_i32_0 = arith.constant 0 : i32
    return %arg0, %c0_i32 : i32, i32
  }
  func.func @transform_1(%arg0: i32) -> (i32, i32) {
    %c0_i32 = arith.constant 0 : i32
    %c0_i32_0 = arith.constant 0 : i32
    %c0_i32_1 = arith.constant 0 : i32
    return %c0_i32, %c0_i32_0 : i32, i32
  }
  func.func @transform_2(%arg0: i32) -> (i32, i32) {
    %c0_i32 = arith.constant 0 : i32
    %c0_i32_0 = arith.constant 0 : i32
    %c0_i32_1 = arith.constant 0 : i32
    return %c0_i32, %c0_i32_0 : i32, i32
  }
  func.func @transform_3(%arg0: i32) -> (i32, i32) {
    %c0_i32 = arith.constant 0 : i32
    %c0_i32_0 = arith.constant 0 : i32
    return %arg0, %c0_i32 : i32, i32
  }
}

</mosaic_0001>

<bundles_post_ra>
// kernel: double_conv.4
= control target key start
LH: loop header
LB: loop body
LE: loop exit
PB: predicated region body
PF: predicated region fallthrough
CT: control target
= control target key end

     0   :  { %s1375_s15 = smov 0   ;;  %s1819_s0 = inlined_call_operand.vmem [shape: bf16[1024,128], index: 0, kind: input, shape index: {}]   ;;  %s1820_s1 = inlined_call_operand.vmem [shape: bf16[128,128], index: 1, kind: input, shape index: {}]   ;;  %s1821_s2 = inlined_call_operand.vmem [shape: f32[1024,128], index: 2, kind: output, shape index: {0}]   ;;  %s1822_s3 = inlined_call_operand.vmem [shape: f32[2,8,128], index: 3, kind: output, shape index: {1}]   ;;  %s1823_s4 = inlined_call_operand.vmem [shape: f32[2,8,128], index: 4, kind: output, shape index: {2}]  }
   0x1 LB: > { %s1381_s16 = sadd.s32 4294967295, %s1348_s15   ;;  %p1101_p0 = scmp.ge.s32.totalorder %s1348_s15, 1  ;;  %s1348_s15 = sphi %s1375_s15, %s15_s15  }
   0x2   : > { %p168_p1 = scmp.lt.s32.totalorder %s1348_s15, 3 }
   0x4   : > { %p169_p2 = pnand %p1101_p0, %p168_p1 }
   0x5   : > { %s1102_s25 = sshll.u32 (!%p169_p2), %s1381_s16, 6  ;;  %p214_p4 = scmp.lt.s32.totalorder (!%p169_p2), %s1381_s16, 1 }
   0x6   : > { %172 = sbr.rel (%p169_p2) target bundleno = 402 (0x192), region = 28  ;;  %p203_p3 = scmp.lt.s32.totalorder (!%p169_p2), %s1102_s25, 127 }
   0xb   : > { %v1309_v0 = vld [vmem:[%s1820_s1 + $0x38] sm:$0xff]  ;;  %v1308_v1 = vld [vmem:[%s1820_s1 + $0x30] sm:$0xff]  ;;  %v1307_v2 = vld [vmem:[%s1820_s1 + $0x28] sm:$0xff]  ;;  %s1825_s25 = smov (!%p203_p3, %s1102_s25), 127  ;;  %s1827_s16 = smov (!%p214_p4, %s1381_s16), 1 }
   0xc   : > { %542 = vmatpush.bf16.msra.mxu0 %v1309_v0  ;;  %1310 = vmatpush.bf16.msra.mxu1 %v1309_v0  ;;  %v1306_v3 = vld [vmem:[%s1820_s1 + $0x20] sm:$0xff]  ;;  %v1305_v4 = vld [vmem:[%s1820_s1 + $0x18] sm:$0xff]  ;;  %v1304_v5 = vld [vmem:[%s1820_s1 + $0x10] sm:$0xff]  ;;  %s1103_s6 = sshll.u32 %s1825_s25, 2  ;;  %s1105_s12 = sshll.u32 %s1825_s25, 3 }
   0xd   : > { %1311 = vmatpush.bf16.msra.mxu2 %v1309_v0  ;;  %1312 = vmatpush.bf16.msra.mxu3 %v1309_v0  ;;  %v1303_v6 = vld [vmem:[%s1820_s1 + $0x8] sm:$0xff]  ;;  %v1302_v7 = vld [vmem:[%s1820_s1] sm:$0xff]  ;;  %s1416_s11 = scalar_lea.vmem %s1819_s0, %s1103_s6  ;;  %s1450_s17 = scalar_lea.vmem %s1821_s2, %s1105_s12 }
   0xe   : > { %v1270_v8 = vld [vmem:[%s1416_s11] sm:$0xff]  ;;  %v1271_v10 = vld [vmem:[%s1416_s11 + $0x8] sm:$0xff]  ;;  %v1272_v13 = vld [vmem:[%s1416_s11 + $0x10] sm:$0xff]  ;;  %s1106_s18 = sshll.u32 %s1827_s16, 3 }
   0xf   : > { %v1278_v9 = vld [vmem:[%s1416_s11 + $0x40] sm:$0xff]  ;;  %v1279_v11 = vld [vmem:[%s1416_s11 + $0x48] sm:$0xff]  ;;  %v1280_v14 = vld [vmem:[%s1416_s11 + $0x50] sm:$0xff]  ;;  %s217_s21 = scalar_lea.vmem %s1822_s3, %s1106_s18  ;;  %s221_s24 = scalar_lea.vmem %s1823_s4, %s1106_s18 }
  0x10   : > { %543 = vmatpush.bf16.msra.mxu0 %v1308_v1  ;;  %1313 = vmatpush.bf16.msra.mxu1 %v1308_v1  ;;  %v1286_v12 = vld [vmem:[%s1416_s11 + $0x80] sm:$0xff]  ;;  %v1287_v15 = vld [vmem:[%s1416_s11 + $0x88] sm:$0xff]  ;;  %v1273_v16 = vld [vmem:[%s1416_s11 + $0x18] sm:$0xff] }
  0x11   : > { %1314 = vmatpush.bf16.msra.mxu2 %v1308_v1  ;;  %1315 = vmatpush.bf16.msra.mxu3 %v1308_v1  ;;  %v1281_v17 = vld [vmem:[%s1416_s11 + $0x58] sm:$0xff]  ;;  %v1288_v18 = vld [vmem:[%s1416_s11 + $0x90] sm:$0xff]  ;;  %v1294_v19 = vld [vmem:[%s1416_s11 + $0xc0] sm:$0xff] }
  0x12   : > { %v1274_v20 = vld [vmem:[%s1416_s11 + $0x20] sm:$0xff]  ;;  %v1289_v22 = vld [vmem:[%s1416_s11 + $0x98] sm:$0xff]  ;;  %v1295_v23 = vld [vmem:[%s1416_s11 + $0xc8] sm:$0xff] }
  0x13   : > { %v1282_v21 = vld [vmem:[%s1416_s11 + $0x60] sm:$0xff]  ;;  %v1275_v24 = vld [vmem:[%s1416_s11 + $0x28] sm:$0xff]  ;;  %v1296_v27 = vld [vmem:[%s1416_s11 + $0xd0] sm:$0xff] }
  0x14   : > { %544 = vmatpush.bf16.msra.mxu0 %v1307_v2  ;;  %1316 = vmatpush.bf16.msra.mxu1 %v1307_v2  ;;  %v1283_v25 = vld [vmem:[%s1416_s11 + $0x68] sm:$0xff]  ;;  %v1290_v26 = vld [vmem:[%s1416_s11 + $0xa0] sm:$0xff]  ;;  %v1276_v28 = vld [vmem:[%s1416_s11 + $0x30] sm:$0xff] }
  0x15   : > { %1317 = vmatpush.bf16.msra.mxu2 %v1307_v2  ;;  %1318 = vmatpush.bf16.msra.mxu3 %v1307_v2  ;;  %v1284_v29 = vld [vmem:[%s1416_s11 + $0x70] sm:$0xff]  ;;  %v1291_v30 = vld [vmem:[%s1416_s11 + $0xa8] sm:$0xff]  ;;  %v1297_v31 = vld [vmem:[%s1416_s11 + $0xd8] sm:$0xff] }
  0x16   : > { %v1277_v32 = vld [vmem:[%s1416_s11 + $0x38] sm:$0xff]  ;;  %v1292_v34 = vld [vmem:[%s1416_s11 + $0xb0] sm:$0xff]  ;;  %v1298_v35 = vld [vmem:[%s1416_s11 + $0xe0] sm:$0xff] }
  0x17   : > { %v1285_v33 = vld [vmem:[%s1416_s11 + $0x78] sm:$0xff]  ;;  %v1299_v39 = vld [vmem:[%s1416_s11 + $0xe8] sm:$0xff]  ;;  %v1300_v51 = vld [vmem:[%s1416_s11 + $0xf0] sm:$0xff] }
  0x18   : > { %545 = vmatpush.bf16.msra.mxu0 %v1306_v3  ;;  %1319 = vmatpush.bf16.msra.mxu1 %v1306_v3  ;;  %v1293_v38 = vld [vmem:[%s1416_s11 + $0xb8] sm:$0xff] }
  0x19   : > { %1320 = vmatpush.bf16.msra.mxu2 %v1306_v3  ;;  %1321 = vmatpush.bf16.msra.mxu3 %v1306_v3  ;;  %v1301_v0 = vld [vmem:[%s1416_s11 + $0xf8] sm:$0xff] }
  0x1c   : > { %546 = vmatpush.bf16.msra.mxu0 %v1305_v4  ;;  %1322 = vmatpush.bf16.msra.mxu1 %v1305_v4 }
  0x1d   : > { %1323 = vmatpush.bf16.msra.mxu2 %v1305_v4  ;;  %1324 = vmatpush.bf16.msra.mxu3 %v1305_v4 }
  0x20   : > { %547 = vmatpush.bf16.msra.mxu0 %v1304_v5  ;;  %1325 = vmatpush.bf16.msra.mxu1 %v1304_v5 }
  0x21   : > { %1326 = vmatpush.bf16.msra.mxu2 %v1304_v5  ;;  %1327 = vmatpush.bf16.msra.mxu3 %v1304_v5 }
  0x24   : > { %548 = vmatpush.bf16.msra.mxu0 %v1303_v6  ;;  %1328 = vmatpush.bf16.msra.mxu1 %v1303_v6 }
  0x25   : > { %1329 = vmatpush.bf16.msra.mxu2 %v1303_v6  ;;  %1330 = vmatpush.bf16.msra.mxu3 %v1303_v6 }
  0x28   : > { %549 = vmatpush.bf16.msra.mxu0 %v1302_v7  ;;  %1331 = vmatpush.bf16.msra.mxu1 %v1302_v7 }
  0x29   : > { %1332 = vmatpush.bf16.msra.mxu2 %v1302_v7  ;;  %1333 = vmatpush.bf16.msra.mxu3 %v1302_v7 }
  0x2b   : > { %550 = vmatmul.bf16.vlgmr.msra.gmra.mxu0 %v1270_v8  ;;  %590 = vmatmul.bf16.vlgmr.msra.gmra.mxu1 %v1278_v9 }
  0x2c   : > { %630 = vmatmul.bf16.vlgmr.msra.gmra.mxu2 %v1286_v12  ;;  %670 = vmatmul.bf16.vlgmr.msra.gmra.mxu3 %v1294_v19 }
  0x3b   : > { %555 = vmatmul.bf16.gmra.mxu0 %v1271_v10  ;;  %595 = vmatmul.bf16.gmra.mxu1 %v1279_v11 }
  0x3c   : > { %635 = vmatmul.bf16.gmra.mxu2 %v1287_v15  ;;  %675 = vmatmul.bf16.gmra.mxu3 %v1295_v23 }
  0x4b   : > { %560 = vmatmul.bf16.gmra.mxu0 %v1272_v13  ;;  %600 = vmatmul.bf16.gmra.mxu1 %v1280_v14 }
  0x4c   : > { %640 = vmatmul.bf16.gmra.mxu2 %v1288_v18  ;;  %680 = vmatmul.bf16.gmra.mxu3 %v1296_v27 }
  0x5b   : > { %565 = vmatmul.bf16.gmra.mxu0 %v1273_v16  ;;  %605 = vmatmul.bf16.gmra.mxu1 %v1281_v17 }
  0x5c   : > { %645 = vmatmul.bf16.gmra.mxu2 %v1289_v22  ;;  %685 = vmatmul.bf16.gmra.mxu3 %v1297_v31 }
  0x6b   : > { %570 = vmatmul.bf16.gmra.mxu0 %v1274_v20  ;;  %610 = vmatmul.bf16.gmra.mxu1 %v1282_v21 }
  0x6c   : > { %650 = vmatmul.bf16.gmra.mxu2 %v1290_v26  ;;  %690 = vmatmul.bf16.gmra.mxu3 %v1298_v35 }
  0x7b   : > { %575 = vmatmul.bf16.gmra.mxu0 %v1275_v24  ;;  %615 = vmatmul.bf16.gmra.mxu1 %v1283_v25 }
  0x7c   : > { %655 = vmatmul.bf16.gmra.mxu2 %v1291_v30  ;;  %695 = vmatmul.bf16.gmra.mxu3 %v1299_v39 }
  0x8b   : > { %580 = vmatmul.bf16.gmra.mxu0 %v1276_v28  ;;  %620 = vmatmul.bf16.gmra.mxu1 %v1284_v29 }
  0x8c   : > { %660 = vmatmul.bf16.gmra.mxu2 %v1292_v34  ;;  %700 = vmatmul.bf16.gmra.mxu3 %v1300_v51 }
  0x9b   : > { %585 = vmatmul.bf16.gmra.mxu0 %v1277_v32  ;;  %625 = vmatmul.bf16.gmra.mxu1 %v1285_v33 }
  0x9c   : > { %665 = vmatmul.bf16.gmra.mxu2 %v1293_v38  ;;  %705 = vmatmul.bf16.gmra.mxu3 %v1301_v0 }
  0xa8   : > { %v551_v36 = vpop.f32.mrf.mxu0  ;;  %v1452_v37 = vpop.f32.mrf.mxu1 }
  0xa9   : > { %711 = vst [vmem:[%s1450_s17] sm:$0xff] %v551_v36  ;;  %v844_v42 = vmul.f32 %v551_v36, %v551_v36 }
  0xaa   : > { %727 = vst [vmem:[%s1450_s17 + $0x80] sm:$0xff] %v1452_v37 }
  0xaf   : > { %v1473_v56 = vpop.f32.mrf.mxu2  ;;  %v1516_v10 = vpop.f32.mrf.mxu3 }
  0xb0   : > { %v553_v40 = vpop.f32.mrf.mxu0  ;;  %v1459_v41 = vpop.f32.mrf.mxu1  ;;  %743 = vst [vmem:[%s1450_s17 + $0x100] sm:$0xff] %v1473_v56 }
  0xb1   : > { %712 = vst [vmem:[%s1450_s17 + $0x8] sm:$0xff] %v553_v40  ;;  %v775_v43 = vadd.f32 %v553_v40, %v551_v36  ;;  %v845_v44 = vmul.f32 %v553_v40, %v553_v40 }
  0xb2   : > { %728 = vst [vmem:[%s1450_s17 + $0x88] sm:$0xff] %v1459_v41 }
  0xb3   : > { %v908_v45 = vadd.f32 %v845_v44, %v844_v42  ;;  %759 = vst [vmem:[%s1450_s17 + $0x180] sm:$0xff] %v1516_v10 }
  0xb7   : > { %v1484_v62 = vpop.f32.mrf.mxu2  ;;  %v1529_v14 = vpop.f32.mrf.mxu3 }
  0xb8   : > { %v556_v46 = vpop.f32.mrf.mxu0  ;;  %v1464_v47 = vpop.f32.mrf.mxu1  ;;  %744 = vst [vmem:[%s1450_s17 + $0x108] sm:$0xff] %v1484_v62 }
  0xb9   : > { %713 = vst [vmem:[%s1450_s17 + $0x10] sm:$0xff] %v556_v46  ;;  %v776_v48 = vadd.f32 %v775_v43, %v556_v46  ;;  %v846_v49 = vmul.f32 %v556_v46, %v556_v46 }
  0xba   : > { %729 = vst [vmem:[%s1450_s17 + $0x90] sm:$0xff] %v1464_v47 }
  0xbb   : > { %v909_v50 = vadd.f32 %v908_v45, %v846_v49  ;;  %760 = vst [vmem:[%s1450_s17 + $0x188] sm:$0xff] %v1529_v14 }
  0xbf   : > { %v1496_v3 = vpop.f32.mrf.mxu2  ;;  %v1542_v18 = vpop.f32.mrf.mxu3 }
  0xc0   : > { %v558_v52 = vpop.f32.mrf.mxu0  ;;  %v1470_v53 = vpop.f32.mrf.mxu1  ;;  %745 = vst [vmem:[%s1450_s17 + $0x110] sm:$0xff] %v1496_v3 }
  0xc1   : > { %714 = vst [vmem:[%s1450_s17 + $0x18] sm:$0xff] %v558_v52  ;;  %v777_v54 = vadd.f32 %v776_v48, %v558_v52  ;;  %v847_v55 = vmul.f32 %v558_v52, %v558_v52 }
  0xc2   : > { %730 = vst [vmem:[%s1450_s17 + $0x98] sm:$0xff] %v1470_v53 }
  0xc3   : > { %v910_v57 = vadd.f32 %v909_v50, %v847_v55  ;;  %761 = vst [vmem:[%s1450_s17 + $0x190] sm:$0xff] %v1542_v18 }
  0xc7   : > { %v1505_v6 = vpop.f32.mrf.mxu2  ;;  %v1555_v22 = vpop.f32.mrf.mxu3 }
  0xc8   : > { %v561_v58 = vpop.f32.mrf.mxu0  ;;  %v1479_v59 = vpop.f32.mrf.mxu1  ;;  %746 = vst [vmem:[%s1450_s17 + $0x118] sm:$0xff] %v1505_v6 }
  0xc9   : > { %715 = vst [vmem:[%s1450_s17 + $0x20] sm:$0xff] %v561_v58  ;;  %v1482_v60 = vadd.f32 %v777_v54, %v561_v58  ;;  %v848_v61 = vmul.f32 %v561_v58, %v561_v58 }
  0xca   : > { %731 = vst [vmem:[%s1450_s17 + $0xa0] sm:$0xff] %v1479_v59 }
  0xcb   : > { %v1488_v63 = vadd.f32 %v910_v57, %v848_v61  ;;  %762 = vst [vmem:[%s1450_s17 + $0x198] sm:$0xff] %v1555_v22 }
  0xcf   : > { %v1514_v9 = vpop.f32.mrf.mxu2  ;;  %v1568_v26 = vpop.f32.mrf.mxu3 }
  0xd0   : > { %v563_v1 = vpop.f32.mrf.mxu0  ;;  %v1493_v2 = vpop.f32.mrf.mxu1  ;;  %747 = vst [vmem:[%s1450_s17 + $0x120] sm:$0xff] %v1514_v9 }
  0xd1   : > { %716 = vst [vmem:[%s1450_s17 + $0x28] sm:$0xff] %v563_v1  ;;  %v849_v31 = vmul.f32 %v563_v1, %v563_v1  ;;  %v779_v32 = vadd.f32 %v1482_v60, %v563_v1 }
  0xd2   : > { %732 = vst [vmem:[%s1450_s17 + $0xa8] sm:$0xff] %v1493_v2 }
  0xd3   : > { %763 = vst [vmem:[%s1450_s17 + $0x1a0] sm:$0xff] %v1568_v26  ;;  %v912_v34 = vadd.f32 %v1488_v63, %v849_v31 }
  0xd7   : > { %v1527_v13 = vpop.f32.mrf.mxu2  ;;  %v1581_v30 = vpop.f32.mrf.mxu3 }
  0xd8   : > { %v566_v4 = vpop.f32.mrf.mxu0  ;;  %v1502_v5 = vpop.f32.mrf.mxu1  ;;  %748 = vst [vmem:[%s1450_s17 + $0x128] sm:$0xff] %v1527_v13 }
  0xd9   : > { %717 = vst [vmem:[%s1450_s17 + $0x30] sm:$0xff] %v566_v4  ;;  %v850_v33 = vmul.f32 %v566_v4, %v566_v4  ;;  %v780_v35 = vadd.f32 %v779_v32, %v566_v4 }
  0xda   : > { %733 = vst [vmem:[%s1450_s17 + $0xb0] sm:$0xff] %v1502_v5 }
  0xdb   : > { %764 = vst [vmem:[%s1450_s17 + $0x1a8] sm:$0xff] %v1581_v30  ;;  %v913_v40 = vadd.f32 %v912_v34, %v850_v33 }
  0xdf   : > { %v1540_v17 = vpop.f32.mrf.mxu2  ;;  %v1596_v45 = vpop.f32.mrf.mxu3 }
  0xe0   : > { %v568_v7 = vpop.f32.mrf.mxu0  ;;  %v1511_v8 = vpop.f32.mrf.mxu1  ;;  %749 = vst [vmem:[%s1450_s17 + $0x130] sm:$0xff] %v1540_v17 }
  0xe1   : > { %718 = vst [vmem:[%s1450_s17 + $0x38] sm:$0xff] %v568_v7  ;;  %v851_v36 = vmul.f32 %v568_v7, %v568_v7  ;;  %v781_v42 = vadd.f32 %v780_v35, %v568_v7 }
  0xe2   : > { %734 = vst [vmem:[%s1450_s17 + $0xb8] sm:$0xff] %v1511_v8 }
  0xe3   : > { %v914_v46 = vadd.f32 %v913_v40, %v851_v36  ;;  %765 = vst [vmem:[%s1450_s17 + $0x1b0] sm:$0xff] %v1596_v45 }
  0xe7   : > { %v1553_v21 = vpop.f32.mrf.mxu2  ;;  %v1609_v4 = vpop.f32.mrf.mxu3 }
  0xe8   : > { %v571_v11 = vpop.f32.mrf.mxu0  ;;  %v1524_v12 = vpop.f32.mrf.mxu1  ;;  %750 = vst [vmem:[%s1450_s17 + $0x138] sm:$0xff] %v1553_v21 }
  0xe9   : > { %719 = vst [vmem:[%s1450_s17 + $0x40] sm:$0xff] %v571_v11  ;;  %v852_v43 = vmul.f32 %v571_v11, %v571_v11  ;;  %v782_v48 = vadd.f32 %v781_v42, %v571_v11 }
  0xea   : > { %735 = vst [vmem:[%s1450_s17 + $0xc0] sm:$0xff] %v1524_v12 }
  0xeb   : > { %v915_v50 = vadd.f32 %v914_v46, %v852_v43  ;;  %766 = vst [vmem:[%s1450_s17 + $0x1b8] sm:$0xff] %v1609_v4 }
  0xef   : > { %v1566_v25 = vpop.f32.mrf.mxu2  ;;  %v1622_v43 = vpop.f32.mrf.mxu3 }
  0xf0   : > { %v573_v15 = vpop.f32.mrf.mxu0  ;;  %v1537_v16 = vpop.f32.mrf.mxu1  ;;  %751 = vst [vmem:[%s1450_s17 + $0x140] sm:$0xff] %v1566_v25 }
  0xf1   : > { %720 = vst [vmem:[%s1450_s17 + $0x48] sm:$0xff] %v573_v15  ;;  %v853_v49 = vmul.f32 %v573_v15, %v573_v15  ;;  %v783_v51 = vadd.f32 %v782_v48, %v573_v15 }
  0xf2   : > { %736 = vst [vmem:[%s1450_s17 + $0xc8] sm:$0xff] %v1537_v16 }
  0xf3   : > { %v916_v54 = vadd.f32 %v915_v50, %v853_v49  ;;  %767 = vst [vmem:[%s1450_s17 + $0x1c0] sm:$0xff] %v1622_v43  ;;  %v861_v49 = vmul.f32 %v1459_v41, %v1459_v41 }
  0xf7   : > { %v1579_v29 = vpop.f32.mrf.mxu2 }
  0xf8   : > { %v576_v19 = vpop.f32.mrf.mxu0  ;;  %v1550_v20 = vpop.f32.mrf.mxu1  ;;  %752 = vst [vmem:[%s1450_s17 + $0x148] sm:$0xff] %v1579_v29 }
  0xf9   : > { %721 = vst [vmem:[%s1450_s17 + $0x50] sm:$0xff] %v576_v19  ;;  %v854_v52 = vmul.f32 %v576_v19, %v576_v19  ;;  %v784_v55 = vadd.f32 %v783_v51, %v576_v19 }
  0xfa   : > { %737 = vst [vmem:[%s1450_s17 + $0xd0] sm:$0xff] %v1550_v20 }
  0xfb   : > { %v917_v61 = vadd.f32 %v916_v54, %v854_v52  ;;  %v862_v52 = vmul.f32 %v1464_v47, %v1464_v47 }
  0xff   : > { %v1594_v44 = vpop.f32.mrf.mxu2 }
 0x100   : > { %v578_v23 = vpop.f32.mrf.mxu0  ;;  %v1563_v24 = vpop.f32.mrf.mxu1  ;;  %753 = vst [vmem:[%s1450_s17 + $0x150] sm:$0xff] %v1594_v44 }
 0x101   : > { %722 = vst [vmem:[%s1450_s17 + $0x58] sm:$0xff] %v578_v23  ;;  %v855_v57 = vmul.f32 %v578_v23, %v578_v23  ;;  %v785_v63 = vadd.f32 %v784_v55, %v578_v23 }
 0x102   : > { %738 = vst [vmem:[%s1450_s17 + $0xd8] sm:$0xff] %v1563_v24 }
 0x103   : > { %v918_v7 = vadd.f32 %v917_v61, %v855_v57 }
 0x107   : > { %v1607_v1 = vpop.f32.mrf.mxu2 }
 0x108   : > { %v581_v27 = vpop.f32.mrf.mxu0  ;;  %v1576_v28 = vpop.f32.mrf.mxu1  ;;  %754 = vst [vmem:[%s1450_s17 + $0x158] sm:$0xff] %v1607_v1 }
 0x109   : > { %723 = vst [vmem:[%s1450_s17 + $0x60] sm:$0xff] %v581_v27  ;;  %v856_v0 = vmul.f32 %v581_v27, %v581_v27  ;;  %v786_v11 = vadd.f32 %v785_v63, %v581_v27  ;;  %v1644_v63 = vpop.f32.mrf.mxu3 }
 0x10a   : > { %739 = vst [vmem:[%s1450_s17 + $0xe0] sm:$0xff] %v1576_v28 }
 0x10b   : > { %v919_v19 = vadd.f32 %v918_v7, %v856_v0  ;;  %768 = vst [vmem:[%s1450_s17 + $0x1c8] sm:$0xff] %v1644_v63 }
 0x10f   : > { %v1620_v42 = vpop.f32.mrf.mxu2 }
 0x110   : > { %v583_v38 = vpop.f32.mrf.mxu0  ;;  %v1591_v39 = vpop.f32.mrf.mxu1  ;;  %755 = vst [vmem:[%s1450_s17 + $0x160] sm:$0xff] %v1620_v42 }
 0x111   : > { %724 = vst [vmem:[%s1450_s17 + $0x68] sm:$0xff] %v583_v38  ;;  %v857_v15 = vmul.f32 %v583_v38, %v583_v38  ;;  %v787_v31 = vadd.f32 %v786_v11, %v583_v38  ;;  %v860_v38 = vmul.f32 %v1452_v37, %v1452_v37 }
 0x112   : > { %740 = vst [vmem:[%s1450_s17 + $0xe8] sm:$0xff] %v1591_v39 }
 0x113   : > { %v920_v32 = vadd.f32 %v919_v19, %v857_v15  ;;  %v866_v15 = vmul.f32 %v1502_v5, %v1502_v5 }
 0x117   : > { %v1642_v61 = vpop.f32.mrf.mxu2 }
 0x118   : > { %v586_v58 = vpop.f32.mrf.mxu0  ;;  %v1604_v60 = vpop.f32.mrf.mxu1  ;;  %756 = vst [vmem:[%s1450_s17 + $0x168] sm:$0xff] %v1642_v61 }
 0x119   : > { %725 = vst [vmem:[%s1450_s17 + $0x70] sm:$0xff] %v586_v58  ;;  %v858_v23 = vmul.f32 %v586_v58, %v586_v58  ;;  %v788_v33 = vadd.f32 %v787_v31, %v586_v58 }
 0x11a   : > { %741 = vst [vmem:[%s1450_s17 + $0xf0] sm:$0xff] %v1604_v60 }
 0x11b   : > { %v921_v36 = vadd.f32 %v920_v32, %v858_v23  ;;  %v867_v23 = vmul.f32 %v1511_v8, %v1511_v8 }
 0x120   : > { %v588_v34 = vpop.f32.mrf.mxu0  ;;  %v1617_v35 = vpop.f32.mrf.mxu1 }
 0x121   : > { %726 = vst [vmem:[%s1450_s17 + $0x78] sm:$0xff] %v588_v34  ;;  %v789_v40 = vadd.f32 %v788_v33, %v588_v34  ;;  %v859_v27 = vmul.f32 %v588_v34, %v588_v34  ;;  %v1662_v33 = vpop.f32.mrf.mxu2  ;;  %v1664_v34 = vpop.f32.mrf.mxu3 }
 0x122   : > { %742 = vst [vmem:[%s1450_s17 + $0xf8] sm:$0xff] %v1617_v35 }
 0x123   : > { %v790_v46 = vadd.f32 %v789_v40, %v1452_v37  ;;  %v922_v48 = vadd.f32 %v921_v36, %v859_v27  ;;  %v863_v37 = vmul.f32 %v1470_v53, %v1470_v53  ;;  %757 = vst [vmem:[%s1450_s17 + $0x170] sm:$0xff] %v1662_v33 }
 0x124   : > { %769 = vst [vmem:[%s1450_s17 + $0x1d0] sm:$0xff] %v1664_v34 }
 0x125   : > { %v791_v50 = vadd.f32 %v790_v46, %v1459_v41  ;;  %v923_v51 = vadd.f32 %v922_v48, %v860_v38  ;;  %v864_v41 = vmul.f32 %v1479_v59, %v1479_v59  ;;  %v870_v38 = vmul.f32 %v1550_v20, %v1550_v20 }
 0x127   : > { %v792_v54 = vadd.f32 %v791_v50, %v1464_v47  ;;  %v924_v55 = vadd.f32 %v923_v51, %v861_v49  ;;  %v871_v49 = vmul.f32 %v1563_v24, %v1563_v24 }
 0x129   : > { %v793_v57 = vadd.f32 %v792_v54, %v1470_v53  ;;  %v925_v58 = vadd.f32 %v924_v55, %v862_v52  ;;  %v865_v53 = vmul.f32 %v1493_v2, %v1493_v2  ;;  %v1682_v51 = vpop.f32.mrf.mxu2  ;;  %v1684_v52 = vpop.f32.mrf.mxu3  ;;  %v872_v54 = vmul.f32 %v1576_v28, %v1576_v28 }
 0x12a   : > { %758 = vst [vmem:[%s1450_s17 + $0x178] sm:$0xff] %v1682_v51 }
 0x12b   : > { %v794_v0 = vadd.f32 %v793_v57, %v1479_v59  ;;  %v926_v47 = vadd.f32 %v925_v58, %v863_v37  ;;  %770 = vst [vmem:[%s1450_s17 + $0x1d8] sm:$0xff] %v1684_v52 }
 0x12d   : > { %v795_v7 = vadd.f32 %v794_v0, %v1493_v2  ;;  %v927_v11 = vadd.f32 %v926_v47, %v864_v41  ;;  %v868_v2 = vmul.f32 %v1524_v12, %v1524_v12  ;;  %v874_v41 = vmul.f32 %v1604_v60, %v1604_v60 }
 0x12f   : > { %v928_v19 = vadd.f32 %v927_v11, %v865_v53  ;;  %v796_v31 = vadd.f32 %v795_v7, %v1502_v5  ;;  %v869_v5 = vmul.f32 %v1537_v16, %v1537_v16 }
 0x131   : > { %v797_v59 = vadd.f32 %v796_v31, %v1511_v8  ;;  %v929_v32 = vadd.f32 %v928_v19, %v866_v15  ;;  %v1702_v53 = vpop.f32.mrf.mxu3 }
 0x132   : > { %771 = vst [vmem:[%s1450_s17 + $0x1e0] sm:$0xff] %v1702_v53 }
 0x133   : > { %v798_v36 = vadd.f32 %v797_v59, %v1524_v12  ;;  %v930_v40 = vadd.f32 %v929_v32, %v867_v23  ;;  %v879_v59 = vmul.f32 %v1505_v6, %v1505_v6 }
 0x135   : > { %v799_v8 = vadd.f32 %v798_v36, %v1537_v16  ;;  %v931_v27 = vadd.f32 %v930_v40, %v868_v2 }
 0x137   : > { %v800_v46 = vadd.f32 %v799_v8, %v1550_v20  ;;  %v932_v48 = vadd.f32 %v931_v27, %v869_v5 }
 0x139   : > { %v801_v12 = vadd.f32 %v800_v46, %v1563_v24  ;;  %v933_v50 = vadd.f32 %v932_v48, %v870_v38  ;;  %v873_v24 = vmul.f32 %v1591_v39, %v1591_v39  ;;  %v883_v46 = vmul.f32 %v1553_v21, %v1553_v21 }
 0x13b   : > { %v802_v16 = vadd.f32 %v801_v12, %v1576_v28  ;;  %v934_v20 = vadd.f32 %v933_v50, %v871_v49  ;;  %v875_v28 = vmul.f32 %v1617_v35, %v1617_v35 }
 0x13d   : > { %v935_v55 = vadd.f32 %v934_v20, %v872_v54  ;;  %v803_v37 = vadd.f32 %v802_v16, %v1591_v39  ;;  %v876_v39 = vmul.f32 %v1473_v56, %v1473_v56 }
 0x13f   : > { %v936_v57 = vadd.f32 %v935_v55, %v873_v24  ;;  %v804_v58 = vadd.f32 %v803_v37, %v1604_v60  ;;  %v877_v60 = vmul.f32 %v1484_v62, %v1484_v62  ;;  %v887_v24 = vmul.f32 %v1607_v1, %v1607_v1 }
 0x141   : > { %v937_v0 = vadd.f32 %v936_v57, %v874_v41  ;;  %v805_v47 = vadd.f32 %v804_v58, %v1617_v35  ;;  %v878_v35 = vmul.f32 %v1496_v3, %v1496_v3 }
 0x143   : > { %v806_v7 = vadd.f32 %v805_v47, %v1473_v56  ;;  %v938_v11 = vadd.f32 %v937_v0, %v875_v28  ;;  %v1718_v56 = vpop.f32.mrf.mxu3 }
 0x144   : > { %772 = vst [vmem:[%s1450_s17 + $0x1e8] sm:$0xff] %v1718_v56 }
 0x145   : > { %v807_v15 = vadd.f32 %v806_v7, %v1484_v62  ;;  %v939_v19 = vadd.f32 %v938_v11, %v876_v39  ;;  %v880_v62 = vmul.f32 %v1514_v9, %v1514_v9 }
 0x147   : > { %v808_v31 = vadd.f32 %v807_v15, %v1496_v3  ;;  %v940_v23 = vadd.f32 %v939_v19, %v877_v60  ;;  %v881_v3 = vmul.f32 %v1527_v13, %v1527_v13  ;;  %v891_v60 = vmul.f32 %v1682_v51, %v1682_v51 }
 0x149   : > { %v809_v32 = vadd.f32 %v808_v31, %v1505_v6  ;;  %v941_v2 = vadd.f32 %v940_v23, %v878_v35  ;;  %v882_v6 = vmul.f32 %v1540_v17, %v1540_v17 }
 0x14b   : > { %v810_v36 = vadd.f32 %v809_v32, %v1514_v9  ;;  %v942_v40 = vadd.f32 %v941_v2, %v879_v59  ;;  %v1734_v9 = vpop.f32.mrf.mxu3 }
 0x14c   : > { %773 = vst [vmem:[%s1450_s17 + $0x1f0] sm:$0xff] %v1734_v9 }
 0x14d   : > { %v811_v5 = vadd.f32 %v810_v36, %v1527_v13  ;;  %v943_v8 = vadd.f32 %v942_v40, %v880_v62  ;;  %v884_v13 = vmul.f32 %v1566_v25, %v1566_v25 }
 0x14f   : > { %v944_v27 = vadd.f32 %v943_v8, %v881_v3  ;;  %v812_v38 = vadd.f32 %v811_v5, %v1540_v17  ;;  %v885_v17 = vmul.f32 %v1579_v29, %v1579_v29 }
 0x151   : > { %v813_v48 = vadd.f32 %v812_v38, %v1553_v21  ;;  %v945_v49 = vadd.f32 %v944_v27, %v882_v6  ;;  %v886_v21 = vmul.f32 %v1594_v44, %v1594_v44 }
 0x153   : > { %v814_v12 = vadd.f32 %v813_v48, %v1566_v25  ;;  %v946_v50 = vadd.f32 %v945_v49, %v883_v46  ;;  %v708_v25 = vpop.f32.mrf.mxu3 }
 0x154   : > { %774 = vst [vmem:[%s1450_s17 + $0x1f8] sm:$0xff] %v708_v25 }
 0x155   : > { %v815_v16 = vadd.f32 %v814_v12, %v1579_v29  ;;  %v947_v54 = vadd.f32 %v946_v50, %v884_v13  ;;  %v888_v29 = vmul.f32 %v1620_v42, %v1620_v42  ;;  %v903_v50 = vmul.f32 %v1684_v52, %v1684_v52 }
 0x157   : > { %v816_v20 = vadd.f32 %v815_v16, %v1594_v44  ;;  %v948_v55 = vadd.f32 %v947_v54, %v885_v17  ;;  %v889_v44 = vmul.f32 %v1642_v61, %v1642_v61 }
 0x159   : > { %v817_v37 = vadd.f32 %v816_v20, %v1607_v1  ;;  %v949_v57 = vadd.f32 %v948_v55, %v886_v21  ;;  %v890_v1 = vmul.f32 %v1662_v33, %v1662_v33 }
 0x15b   : > { %v950_v58 = vadd.f32 %v949_v57, %v887_v24  ;;  %v818_v41 = vadd.f32 %v817_v37, %v1620_v42  ;;  %v892_v42 = vmul.f32 %v1516_v10, %v1516_v10  ;;  %v907_v57 = vmul.f32 %v708_v25, %v708_v25 }
 0x15d   : > { %v951_v0 = vadd.f32 %v950_v58, %v888_v29  ;;  %v819_v47 = vadd.f32 %v818_v41, %v1642_v61  ;;  %v893_v61 = vmul.f32 %v1529_v14, %v1529_v14 }
 0x15f   : > { %v952_v28 = vadd.f32 %v951_v0, %v889_v44  ;;  %v820_v39 = vadd.f32 %v819_v47, %v1662_v33  ;;  %v894_v33 = vmul.f32 %v1542_v18, %v1542_v18 }
 0x161   : > { %v953_v7 = vadd.f32 %v952_v28, %v890_v1  ;;  %v821_v11 = vadd.f32 %v820_v39, %v1682_v51  ;;  %v895_v51 = vmul.f32 %v1555_v22, %v1555_v22 }
 0x163   : > { %v822_v15 = vadd.f32 %v821_v11, %v1516_v10  ;;  %v954_v19 = vadd.f32 %v953_v7, %v891_v60  ;;  %v896_v10 = vmul.f32 %v1568_v26, %v1568_v26 }
 0x165   : > { %v823_v35 = vadd.f32 %v822_v15, %v1529_v14  ;;  %v955_v31 = vadd.f32 %v954_v19, %v892_v42  ;;  %v897_v14 = vmul.f32 %v1581_v30, %v1581_v30 }
 0x167   : > { %v824_v23 = vadd.f32 %v823_v35, %v1542_v18  ;;  %v956_v59 = vadd.f32 %v955_v31, %v893_v61  ;;  %v898_v18 = vmul.f32 %v1596_v45, %v1596_v45 }
 0x169   : > { %v825_v32 = vadd.f32 %v824_v23, %v1555_v22  ;;  %v957_v2 = vadd.f32 %v956_v59, %v894_v33  ;;  %v899_v22 = vmul.f32 %v1609_v4, %v1609_v4 }
 0x16b   : > { %v826_v62 = vadd.f32 %v825_v32, %v1568_v26  ;;  %v958_v36 = vadd.f32 %v957_v2, %v895_v51  ;;  %v900_v26 = vmul.f32 %v1622_v43, %v1622_v43 }
 0x16d   : > { %v827_v40 = vadd.f32 %v826_v62, %v1581_v30  ;;  %v959_v3 = vadd.f32 %v958_v36, %v896_v10  ;;  %v901_v30 = vmul.f32 %v1644_v63, %v1644_v63 }
 0x16f   : > { %v960_v5 = vadd.f32 %v959_v3, %v897_v14  ;;  %v828_v8 = vadd.f32 %v827_v40, %v1596_v45  ;;  %v902_v45 = vmul.f32 %v1664_v34, %v1664_v34 }
 0x171   : > { %v829_v6 = vadd.f32 %v828_v8, %v1609_v4  ;;  %v961_v27 = vadd.f32 %v960_v5, %v898_v18 }
 0x173   : > { %v830_v38 = vadd.f32 %v829_v6, %v1622_v43  ;;  %v962_v46 = vadd.f32 %v961_v27, %v899_v22 }
 0x175   : > { %v831_v48 = vadd.f32 %v830_v38, %v1644_v63  ;;  %v963_v49 = vadd.f32 %v962_v46, %v900_v26  ;;  %v904_v63 = vmul.f32 %v1702_v53, %v1702_v53 }
 0x177   : > { %v832_v13 = vadd.f32 %v831_v48, %v1664_v34  ;;  %v964_v4 = vadd.f32 %v963_v49, %v901_v30  ;;  %v905_v34 = vmul.f32 %v1718_v56, %v1718_v56 }
 0x179   : > { %v833_v12 = vadd.f32 %v832_v13, %v1684_v52  ;;  %v965_v43 = vadd.f32 %v964_v4, %v902_v45  ;;  %v906_v52 = vmul.f32 %v1734_v9, %v1734_v9 }
 0x17b   : > { %v966_v17 = vadd.f32 %v965_v43, %v903_v50  ;;  %v834_v16 = vadd.f32 %v833_v12, %v1702_v53 }
 0x17d   : > { %v967_v54 = vadd.f32 %v966_v17, %v904_v63  ;;  %v835_v21 = vadd.f32 %v834_v16, %v1718_v56 }
 0x17f   : > { %v968_v20 = vadd.f32 %v967_v54, %v905_v34  ;;  %v836_v55 = vadd.f32 %v835_v21, %v1734_v9 }
 0x181   : > { %v969_v37 = vadd.f32 %v968_v20, %v906_v52  ;;  %v837_v24 = vadd.f32 %v836_v55, %v708_v25 }
 0x183   : > { %v838_v58 = vrot.slane %v837_v24, 4  ;;  %v970_v41 = vadd.f32 %v969_v37, %v907_v57 }
 0x185   : > { %v839_v53 = vadd.f32 %v838_v58, %v837_v24  ;;  %v971_v29 = vrot.slane %v970_v41, 4 }
 0x187   : > { %v840_v0 = vrot.slane %v839_v53, 2  ;;  %v972_v47 = vadd.f32 %v971_v29, %v970_v41 }
 0x189   : > { %v841_v44 = vadd.f32 %v840_v0, %v839_v53  ;;  %v973_v56 = vrot.slane %v972_v47, 2 }
 0x18b   : > { %v842_v28 = vrot.slane %v841_v44, 1  ;;  %v974_v39 = vadd.f32 %v973_v56, %v972_v47 }
 0x18d   : > { %v843_v9 = vadd.f32 %v842_v28, %v841_v44  ;;  %v975_v1 = vrot.slane %v974_v39, 1 }
 0x18f   : > { %v976_v25 = vadd.f32 %v975_v1, %v974_v39  ;;  %977 = vst [vmem:[%s217_s21] sm:$0xff] %v843_v9 }
 0x191   : > { %978 = vst [vmem:[%s221_s24] sm:$0xff] %v976_v25 }
 0x192 PF: > { %s15_s15 = sadd.s32 1, %s1348_s15  }
 0x193   : > { %p12_p5 = scmp.ge.s32.totalorder %s15_s15, 4  }
 0x195   :  { %14 = sbr.rel (!%p12_p5) target bundleno = 1 (0x1), region = 82 }

// kernel: double_conv.5
= control target key start
LH: loop header
LB: loop body
LE: loop exit
PB: predicated region body
PF: predicated region fallthrough
CT: control target
= control target key end

     0   :  { %s990_s12 = smov 0   ;;  %s1250_s0 = inlined_call_operand.vmem [shape: f32[1024,128], index: 0, kind: input, shape index: {}]   ;;  %s1251_s1 = inlined_call_operand.vmem [shape: f32[1,128], index: 1, kind: input, shape index: {}]   ;;  %s1252_s2 = inlined_call_operand.vmem [shape: f32[1,128], index: 2, kind: input, shape index: {}]   ;;  %s1253_s3 = inlined_call_operand.vmem [shape: bf16[1024,128], index: 3, kind: output, shape index: {}]  }
   0x1 LB: > { %s750_s13 = sadd.s32 4294967295, %s968_s12   ;;  %p754_p0 = scmp.ge.s32.totalorder %s968_s12, 1  ;;  %s968_s12 = sphi %s990_s12, %s13_s12  }
   0x2   : > { %p138_p1 = scmp.lt.s32.totalorder %s968_s12, 3 }
   0x4   : > { %p139_p2 = pnand %p754_p0, %p138_p1 }
   0x5   : > { %s755_s14 = sshll.u32 (!%p139_p2), %s750_s13, 6 }
   0x6   : > { %142 = sbr.rel (%p139_p2) target bundleno = 109 (0x6d), region = 32  ;;  %p163_p3 = scmp.lt.s32.totalorder (!%p139_p2), %s755_s14, 127 }
   0xb   : > { %s1255_s14 = smov (!%p163_p3, %s755_s14), 127  ;;  %v1003_v0 = vld [vmem:[%s1251_s1] ss:$0 sm:$0xff] }
   0xc   : > { %s756_s17 = sshll.u32 %s1255_s14, 3  ;;  %v1014_v1 = vld [vmem:[%s1252_s2] ss:$0 sm:$0xff]  ;;  %s758_s23 = sshll.u32 %s1255_s14, 2 }
   0xd   : > { %s1009_s20 = scalar_lea.vmem %s1250_s0, %s756_s17  ;;  %s1042_s26 = scalar_lea.vmem %s1253_s3, %s758_s23 }
   0xe   : > { %v174_v2 = vld [vmem:[%s1009_s20] sm:$0xff]  ;;  %v175_v3 = vld [vmem:[%s1009_s20 + $0x8] sm:$0xff]  ;;  %v176_v4 = vld [vmem:[%s1009_s20 + $0x10] sm:$0xff] }
   0xf   : > { %v242_v5 = vmul.f32 %v1003_v0, %v174_v2  ;;  %v243_v6 = vmul.f32 %v1003_v0, %v175_v3  ;;  %v177_v7 = vld [vmem:[%s1009_s20 + $0x18] sm:$0xff]  ;;  %v244_v8 = vmul.f32 %v1003_v0, %v176_v4  ;;  %v178_v9 = vld [vmem:[%s1009_s20 + $0x20] sm:$0xff]  ;;  %v179_v10 = vld [vmem:[%s1009_s20 + $0x28] sm:$0xff] }
  0x10   : > { %v245_v11 = vmul.f32 %v1003_v0, %v177_v7  ;;  %v246_v12 = vmul.f32 %v1003_v0, %v178_v9  ;;  %v247_v13 = vmul.f32 %v1003_v0, %v179_v10  ;;  %v180_v14 = vld [vmem:[%s1009_s20 + $0x30] sm:$0xff]  ;;  %v181_v15 = vld [vmem:[%s1009_s20 + $0x38] sm:$0xff]  ;;  %v182_v30 = vld [vmem:[%s1009_s20 + $0x40] sm:$0xff] }
  0x11   : > { %v310_v16 = vadd.f32 %v1014_v1, %v242_v5  ;;  %v311_v17 = vadd.f32 %v1014_v1, %v243_v6  ;;  %v312_v18 = vadd.f32 %v1014_v1, %v244_v8  ;;  %v248_v19 = vmul.f32 %v1003_v0, %v180_v14  ;;  %v183_v31 = vld [vmem:[%s1009_s20 + $0x48] sm:$0xff]  ;;  %v184_v32 = vld [vmem:[%s1009_s20 + $0x50] sm:$0xff]  ;;  %v185_v44 = vld [vmem:[%s1009_s20 + $0x58] sm:$0xff] }
  0x12   : > { %v313_v20 = vadd.f32 %v1014_v1, %v245_v11  ;;  %v314_v21 = vadd.f32 %v1014_v1, %v246_v12  ;;  %v315_v22 = vadd.f32 %v1014_v1, %v247_v13  ;;  %v249_v23 = vmul.f32 %v1003_v0, %v181_v15  ;;  %v186_v46 = vld [vmem:[%s1009_s20 + $0x60] sm:$0xff]  ;;  %v187_v56 = vld [vmem:[%s1009_s20 + $0x68] sm:$0xff]  ;;  %v188_v60 = vld [vmem:[%s1009_s20 + $0x70] sm:$0xff] }
  0x13   : > { %vm374_vm0 = vcmp.ge.f32.partialorder %v310_v16, 0.0  ;;  %vm375_vm1 = vcmp.ge.f32.partialorder %v311_v17, 0.0  ;;  %v438_v24 = vmul.f32 0.2, %v310_v16  ;;  %v439_v25 = vmul.f32 0.2, %v311_v17 }
  0x14   : > { %vm376_vm2 = vcmp.ge.f32.partialorder %v312_v18, 0.0  ;;  %vm377_vm3 = vcmp.ge.f32.partialorder %v313_v20, 0.0  ;;  %v440_v26 = vmul.f32 0.2, %v312_v18  ;;  %v441_v27 = vmul.f32 0.2, %v313_v20 }
  0x15   : > { %v502_v28 = vsel %vm374_vm0, %v310_v16, %v438_v24  ;;  %v503_v29 = vsel %vm375_vm1, %v311_v17, %v439_v25  ;;  %vm378_vm4 = vcmp.ge.f32.partialorder %v314_v21, 0.0  ;;  %vm379_vm5 = vcmp.ge.f32.partialorder %v315_v22, 0.0  ;;  %v189_v6 = vld [vmem:[%s1009_s20 + $0x78] sm:$0xff]  ;;  %v190_v10 = vld [vmem:[%s1009_s20 + $0x80] sm:$0xff] }
  0x16   : > { %v764_v33 = vpack.c.bf16 %v503_v29, %v502_v28  ;;  %v504_v34 = vsel %vm376_vm2, %v312_v18, %v440_v26  ;;  %v505_v35 = vsel %vm377_vm3, %v313_v20, %v441_v27  ;;  %v442_v36 = vmul.f32 0.2, %v314_v21  ;;  %v191_v18 = vld [vmem:[%s1009_s20 + $0x88] sm:$0xff]  ;;  %v193_v26 = vld [vmem:[%s1009_s20 + $0x98] sm:$0xff] }
  0x17   : > { %v769_v37 = vpack.c.bf16 %v505_v35, %v504_v34  ;;  %v443_v38 = vmul.f32 0.2, %v315_v22  ;;  %v316_v39 = vadd.f32 %v1014_v1, %v248_v19  ;;  %v317_v40 = vadd.f32 %v1014_v1, %v249_v23  ;;  %v192_v19 = vld [vmem:[%s1009_s20 + $0x90] sm:$0xff] }
  0x18   : > { %765 = vst [vmem:[%s1042_s26] sm:$0xff] %v764_v33   ;;  %v506_v41 = vsel %vm378_vm4, %v314_v21, %v442_v36  ;;  %v250_v42 = vmul.f32 %v1003_v0, %v182_v30  ;;  %v251_v43 = vmul.f32 %v1003_v0, %v183_v31  ;;  %v252_v45 = vmul.f32 %v1003_v0, %v184_v32  ;;  %v194_v31 = vld [vmem:[%s1009_s20 + $0xa0] sm:$0xff]  ;;  %v195_v32 = vld [vmem:[%s1009_s20 + $0xa8] sm:$0xff] }
  0x19   : > { %921 = vst [vmem:[%s1042_s26 + $0x8] sm:$0xff] %v769_v37   ;;  %v507_v47 = vsel %vm379_vm5, %v315_v22, %v443_v38  ;;  %vm380_vm6 = vcmp.ge.f32.partialorder %v316_v39, 0.0  ;;  %vm381_vm7 = vcmp.ge.f32.partialorder %v317_v40, 0.0  ;;  %v444_v48 = vmul.f32 0.2, %v316_v39 }
  0x1a   : > { %v774_v49 = vpack.c.bf16 %v507_v47, %v506_v41  ;;  %v445_v50 = vmul.f32 0.2, %v317_v40  ;;  %v318_v51 = vadd.f32 %v1014_v1, %v250_v42  ;;  %v319_v52 = vadd.f32 %v1014_v1, %v251_v43  ;;  %v196_v43 = vld [vmem:[%s1009_s20 + $0xb0] sm:$0xff] }
  0x1b   : > { %v508_v53 = vsel %vm380_vm6, %v316_v39, %v444_v48  ;;  %v253_v54 = vmul.f32 %v1003_v0, %v185_v44  ;;  %v320_v55 = vadd.f32 %v1014_v1, %v252_v45  ;;  %v254_v57 = vmul.f32 %v1003_v0, %v186_v46  ;;  %v197_v44 = vld [vmem:[%s1009_s20 + $0xb8] sm:$0xff] }
  0x1c   : > { %922 = vst [vmem:[%s1042_s26 + $0x10] sm:$0xff] %v774_v49   ;;  %v509_v58 = vsel %vm381_vm7, %v317_v40, %v445_v50  ;;  %vm382_vm8 = vcmp.ge.f32.partialorder %v318_v51, 0.0  ;;  %vm383_vm9 = vcmp.ge.f32.partialorder %v319_v52, 0.0  ;;  %v446_v59 = vmul.f32 0.2, %v318_v51 }
  0x1d   : > { %v779_v61 = vpack.c.bf16 %v509_v58, %v508_v53  ;;  %v447_v62 = vmul.f32 0.2, %v319_v52  ;;  %v321_v63 = vadd.f32 %v1014_v1, %v253_v54  ;;  %vm384_vm10 = vcmp.ge.f32.partialorder %v320_v55, 0.0 }
  0x1e   : > { %v510_v2 = vsel %vm382_vm8, %v318_v51, %v446_v59  ;;  %v448_v3 = vmul.f32 0.2, %v320_v55  ;;  %v255_v4 = vmul.f32 %v1003_v0, %v187_v56  ;;  %v322_v5 = vadd.f32 %v1014_v1, %v254_v57  ;;  %v199_v59 = vld [vmem:[%s1009_s20 + $0xc8] sm:$0xff] }
  0x1f   : > { %923 = vst [vmem:[%s1042_s26 + $0x18] sm:$0xff] %v779_v61   ;;  %v511_v7 = vsel %vm383_vm9, %v319_v52, %v447_v62  ;;  %vm385_vm11 = vcmp.ge.f32.partialorder %v321_v63, 0.0  ;;  %v449_v8 = vmul.f32 0.2, %v321_v63  ;;  %v256_v9 = vmul.f32 %v1003_v0, %v188_v60 }
  0x20   : > { %v784_v11 = vpack.c.bf16 %v511_v7, %v510_v2  ;;  %v512_v12 = vsel %vm384_vm10, %v320_v55, %v448_v3  ;;  %v323_v13 = vadd.f32 %v1014_v1, %v255_v4  ;;  %vm386_vm12 = vcmp.ge.f32.partialorder %v322_v5, 0.0  ;;  %v198_v55 = vld [vmem:[%s1009_s20 + $0xc0] sm:$0xff]  ;;  %v200_v4 = vld [vmem:[%s1009_s20 + $0xd0] sm:$0xff] }
  0x21   : > { %v513_v14 = vsel %vm385_vm11, %v321_v63, %v449_v8  ;;  %v450_v15 = vmul.f32 0.2, %v322_v5  ;;  %v257_v16 = vmul.f32 %v1003_v0, %v189_v6  ;;  %v324_v17 = vadd.f32 %v1014_v1, %v256_v9  ;;  %v201_v9 = vld [vmem:[%s1009_s20 + $0xd8] sm:$0xff] }
  0x22   : > { %924 = vst [vmem:[%s1042_s26 + $0x20] sm:$0xff] %v784_v11   ;;  %v789_v20 = vpack.c.bf16 %v513_v14, %v512_v12  ;;  %vm387_vm13 = vcmp.ge.f32.partialorder %v323_v13, 0.0  ;;  %v451_v21 = vmul.f32 0.2, %v323_v13  ;;  %v258_v22 = vmul.f32 %v1003_v0, %v190_v10  ;;  %v202_v10 = vld [vmem:[%s1009_s20 + $0xe0] sm:$0xff]  ;;  %v203_v11 = vld [vmem:[%s1009_s20 + $0xe8] sm:$0xff] }
  0x23   : > { %v514_v23 = vsel %vm386_vm12, %v322_v5, %v450_v15  ;;  %v325_v24 = vadd.f32 %v1014_v1, %v257_v16  ;;  %vm388_vm14 = vcmp.ge.f32.partialorder %v324_v17, 0.0  ;;  %v452_v25 = vmul.f32 0.2, %v324_v17 }
  0x24   : > { %925 = vst [vmem:[%s1042_s26 + $0x28] sm:$0xff] %v789_v20   ;;  %v515_v27 = vsel %vm387_vm13, %v323_v13, %v451_v21  ;;  %v259_v28 = vmul.f32 %v1003_v0, %v191_v18  ;;  %v326_v29 = vadd.f32 %v1014_v1, %v258_v22  ;;  %v260_v30 = vmul.f32 %v1003_v0, %v192_v19  ;;  %v204_v22 = vld [vmem:[%s1009_s20 + $0xf0] sm:$0xff] }
  0x25   : > { %v794_v33 = vpack.c.bf16 %v515_v27, %v514_v23  ;;  %vm389_vm15 = vcmp.ge.f32.partialorder %v325_v24, 0.0  ;;  %v453_v34 = vmul.f32 0.2, %v325_v24  ;;  %v516_v35 = vsel %vm388_vm14, %v324_v17, %v452_v25 }
  0x26   : > { %v327_v36 = vadd.f32 %v1014_v1, %v259_v28  ;;  %vm390_vm0 = vcmp.ge.f32.partialorder %v326_v29, 0.0  ;;  %v454_v37 = vmul.f32 0.2, %v326_v29  ;;  %v261_v38 = vmul.f32 %v1003_v0, %v193_v26 }
  0x27   : > { %926 = vst [vmem:[%s1042_s26 + $0x30] sm:$0xff] %v794_v33   ;;  %v517_v39 = vsel %vm389_vm15, %v325_v24, %v453_v34  ;;  %v328_v40 = vadd.f32 %v1014_v1, %v260_v30  ;;  %v262_v41 = vmul.f32 %v1003_v0, %v194_v31  ;;  %v263_v42 = vmul.f32 %v1003_v0, %v195_v32  ;;  %v205_v32 = vld [vmem:[%s1009_s20 + $0xf8] sm:$0xff]  ;;  %v206_v34 = vld [vmem:[%s1009_s20 + $0x100] sm:$0xff] }
  0x28   : > { %v799_v45 = vpack.c.bf16 %v517_v39, %v516_v35  ;;  %vm391_vm1 = vcmp.ge.f32.partialorder %v327_v36, 0.0  ;;  %v455_v46 = vmul.f32 0.2, %v327_v36  ;;  %v518_v47 = vsel %vm390_vm0, %v326_v29, %v454_v37  ;;  %v207_v37 = vld [vmem:[%s1009_s20 + $0x108] sm:$0xff] }
  0x29   : > { %v329_v48 = vadd.f32 %v1014_v1, %v261_v38  ;;  %vm392_vm2 = vcmp.ge.f32.partialorder %v328_v40, 0.0  ;;  %v456_v49 = vmul.f32 0.2, %v328_v40  ;;  %v330_v50 = vadd.f32 %v1014_v1, %v262_v41 }
  0x2a   : > { %927 = vst [vmem:[%s1042_s26 + $0x38] sm:$0xff] %v799_v45   ;;  %v519_v51 = vsel %vm391_vm1, %v327_v36, %v455_v46  ;;  %v331_v52 = vadd.f32 %v1014_v1, %v263_v42  ;;  %v264_v53 = vmul.f32 %v1003_v0, %v196_v43  ;;  %v265_v54 = vmul.f32 %v1003_v0, %v197_v44 }
  0x2b   : > { %v804_v56 = vpack.c.bf16 %v519_v51, %v518_v47  ;;  %vm393_vm3 = vcmp.ge.f32.partialorder %v329_v48, 0.0  ;;  %v457_v57 = vmul.f32 0.2, %v329_v48  ;;  %v520_v58 = vsel %vm392_vm2, %v328_v40, %v456_v49 }
  0x2c   : > { %vm394_vm4 = vcmp.ge.f32.partialorder %v330_v50, 0.0  ;;  %vm395_vm5 = vcmp.ge.f32.partialorder %v331_v52, 0.0  ;;  %v458_v60 = vmul.f32 0.2, %v330_v50  ;;  %v459_v61 = vmul.f32 0.2, %v331_v52 }
  0x2d   : > { %928 = vst [vmem:[%s1042_s26 + $0x40] sm:$0xff] %v804_v56   ;;  %v521_v62 = vsel %vm393_vm3, %v329_v48, %v457_v57  ;;  %v332_v63 = vadd.f32 %v1014_v1, %v264_v53  ;;  %v333_v2 = vadd.f32 %v1014_v1, %v265_v54  ;;  %v266_v3 = vmul.f32 %v1003_v0, %v198_v55  ;;  %v208_v48 = vld [vmem:[%s1009_s20 + $0x110] sm:$0xff]  ;;  %v209_v53 = vld [vmem:[%s1009_s20 + $0x118] sm:$0xff] }
  0x2e   : > { %v809_v5 = vpack.c.bf16 %v521_v62, %v520_v58  ;;  %v522_v6 = vsel %vm394_vm4, %v330_v50, %v458_v60  ;;  %v523_v7 = vsel %vm395_vm5, %v331_v52, %v459_v61  ;;  %v267_v8 = vmul.f32 %v1003_v0, %v199_v59  ;;  %v210_v60 = vld [vmem:[%s1009_s20 + $0x120] sm:$0xff] }
  0x2f   : > { %v814_v12 = vpack.c.bf16 %v523_v7, %v522_v6  ;;  %vm396_vm6 = vcmp.ge.f32.partialorder %v332_v63, 0.0  ;;  %vm397_vm7 = vcmp.ge.f32.partialorder %v333_v2, 0.0  ;;  %v460_v13 = vmul.f32 0.2, %v332_v63 }
  0x30   : > { %929 = vst [vmem:[%s1042_s26 + $0x48] sm:$0xff] %v809_v5   ;;  %v461_v14 = vmul.f32 0.2, %v333_v2  ;;  %v334_v15 = vadd.f32 %v1014_v1, %v266_v3  ;;  %v335_v16 = vadd.f32 %v1014_v1, %v267_v8  ;;  %v268_v17 = vmul.f32 %v1003_v0, %v200_v4 }
  0x31   : > { %930 = vst [vmem:[%s1042_s26 + $0x50] sm:$0xff] %v814_v12   ;;  %v524_v18 = vsel %vm396_vm6, %v332_v63, %v460_v13  ;;  %v269_v19 = vmul.f32 %v1003_v0, %v201_v9  ;;  %v270_v20 = vmul.f32 %v1003_v0, %v202_v10  ;;  %v271_v21 = vmul.f32 %v1003_v0, %v203_v11  ;;  %v212_v10 = vld [vmem:[%s1009_s20 + $0x130] sm:$0xff]  ;;  %v213_v11 = vld [vmem:[%s1009_s20 + $0x138] sm:$0xff] }
  0x32   : > { %v525_v23 = vsel %vm397_vm7, %v333_v2, %v461_v14  ;;  %vm398_vm8 = vcmp.ge.f32.partialorder %v334_v15, 0.0  ;;  %vm399_vm9 = vcmp.ge.f32.partialorder %v335_v16, 0.0  ;;  %v462_v24 = vmul.f32 0.2, %v334_v15  ;;  %v211_v2 = vld [vmem:[%s1009_s20 + $0x128] sm:$0xff] }
  0x33   : > { %v819_v25 = vpack.c.bf16 %v525_v23, %v524_v18  ;;  %v463_v26 = vmul.f32 0.2, %v335_v16  ;;  %v336_v27 = vadd.f32 %v1014_v1, %v268_v17  ;;  %v337_v28 = vadd.f32 %v1014_v1, %v269_v19  ;;  %v215_v23 = vld [vmem:[%s1009_s20 + $0x148] sm:$0xff] }
  0x34   : > { %v526_v29 = vsel %vm398_vm8, %v334_v15, %v462_v24  ;;  %v338_v30 = vadd.f32 %v1014_v1, %v270_v20  ;;  %v339_v31 = vadd.f32 %v1014_v1, %v271_v21  ;;  %v272_v33 = vmul.f32 %v1003_v0, %v204_v22  ;;  %v214_v15 = vld [vmem:[%s1009_s20 + $0x140] sm:$0xff] }
  0x35   : > { %931 = vst [vmem:[%s1042_s26 + $0x58] sm:$0xff] %v819_v25   ;;  %v527_v35 = vsel %vm399_vm9, %v335_v16, %v463_v26  ;;  %vm400_vm10 = vcmp.ge.f32.partialorder %v336_v27, 0.0  ;;  %vm401_vm11 = vcmp.ge.f32.partialorder %v337_v28, 0.0  ;;  %v464_v36 = vmul.f32 0.2, %v336_v27 }
  0x36   : > { %v824_v38 = vpack.c.bf16 %v527_v35, %v526_v29  ;;  %v465_v39 = vmul.f32 0.2, %v337_v28  ;;  %vm402_vm12 = vcmp.ge.f32.partialorder %v338_v30, 0.0  ;;  %vm403_vm13 = vcmp.ge.f32.partialorder %v339_v31, 0.0  ;;  %v217_v35 = vld [vmem:[%s1009_s20 + $0x158] sm:$0xff] }
  0x37   : > { %v528_v40 = vsel %vm400_vm10, %v336_v27, %v464_v36  ;;  %v466_v41 = vmul.f32 0.2, %v338_v30  ;;  %v467_v42 = vmul.f32 0.2, %v339_v31  ;;  %v273_v43 = vmul.f32 %v1003_v0, %v205_v32  ;;  %v216_v27 = vld [vmem:[%s1009_s20 + $0x150] sm:$0xff] }
  0x38   : > { %932 = vst [vmem:[%s1042_s26 + $0x60] sm:$0xff] %v824_v38   ;;  %v529_v44 = vsel %vm401_vm11, %v337_v28, %v465_v39  ;;  %v340_v45 = vadd.f32 %v1014_v1, %v272_v33  ;;  %v274_v46 = vmul.f32 %v1003_v0, %v206_v34  ;;  %v275_v47 = vmul.f32 %v1003_v0, %v207_v37 }
  0x39   : > { %v829_v49 = vpack.c.bf16 %v529_v44, %v528_v40  ;;  %v530_v50 = vsel %vm402_vm12, %v338_v30, %v466_v41  ;;  %v531_v51 = vsel %vm403_vm13, %v339_v31, %v467_v42  ;;  %v341_v52 = vadd.f32 %v1014_v1, %v273_v43  ;;  %v218_v42 = vld [vmem:[%s1009_s20 + $0x160] sm:$0xff] }
  0x3a   : > { %v834_v54 = vpack.c.bf16 %v531_v51, %v530_v50  ;;  %vm404_vm14 = vcmp.ge.f32.partialorder %v340_v45, 0.0  ;;  %v468_v55 = vmul.f32 0.2, %v340_v45  ;;  %v342_v56 = vadd.f32 %v1014_v1, %v274_v46  ;;  %v219_v46 = vld [vmem:[%s1009_s20 + $0x168] sm:$0xff] }
  0x3b   : > { %933 = vst [vmem:[%s1042_s26 + $0x68] sm:$0xff] %v829_v49   ;;  %vm405_vm15 = vcmp.ge.f32.partialorder %v341_v52, 0.0  ;;  %v469_v57 = vmul.f32 0.2, %v341_v52  ;;  %v343_v58 = vadd.f32 %v1014_v1, %v275_v47  ;;  %v276_v59 = vmul.f32 %v1003_v0, %v208_v48 }
  0x3c   : > { %934 = vst [vmem:[%s1042_s26 + $0x70] sm:$0xff] %v834_v54   ;;  %v532_v61 = vsel %vm404_vm14, %v340_v45, %v468_v55  ;;  %vm406_vm0 = vcmp.ge.f32.partialorder %v342_v56, 0.0  ;;  %v470_v62 = vmul.f32 0.2, %v342_v56  ;;  %v277_v63 = vmul.f32 %v1003_v0, %v209_v53  ;;  %v220_v54 = vld [vmem:[%s1009_s20 + $0x170] sm:$0xff]  ;;  %v221_v55 = vld [vmem:[%s1009_s20 + $0x178] sm:$0xff] }
  0x3d   : > { %v533_v3 = vsel %vm405_vm15, %v341_v52, %v469_v57  ;;  %vm407_vm1 = vcmp.ge.f32.partialorder %v343_v58, 0.0  ;;  %v471_v4 = vmul.f32 0.2, %v343_v58  ;;  %v344_v5 = vadd.f32 %v1014_v1, %v276_v59  ;;  %v222_v59 = vld [vmem:[%s1009_s20 + $0x180] sm:$0xff] }
  0x3e   : > { %v839_v6 = vpack.c.bf16 %v533_v3, %v532_v61  ;;  %v534_v7 = vsel %vm406_vm0, %v342_v56, %v470_v62  ;;  %v345_v8 = vadd.f32 %v1014_v1, %v277_v63  ;;  %v278_v9 = vmul.f32 %v1003_v0, %v210_v60 }
  0x3f   : > { %v535_v12 = vsel %vm407_vm1, %v343_v58, %v471_v4  ;;  %vm408_vm2 = vcmp.ge.f32.partialorder %v344_v5, 0.0  ;;  %v472_v13 = vmul.f32 0.2, %v344_v5  ;;  %v279_v14 = vmul.f32 %v1003_v0, %v211_v2 }
  0x40   : > { %935 = vst [vmem:[%s1042_s26 + $0x78] sm:$0xff] %v839_v6   ;;  %v844_v16 = vpack.c.bf16 %v535_v12, %v534_v7  ;;  %vm409_vm3 = vcmp.ge.f32.partialorder %v345_v8, 0.0  ;;  %v473_v17 = vmul.f32 0.2, %v345_v8  ;;  %v346_v18 = vadd.f32 %v1014_v1, %v278_v9  ;;  %v224_v9 = vld [vmem:[%s1009_s20 + $0x190] sm:$0xff] }
  0x41   : > { %v536_v19 = vsel %vm408_vm2, %v344_v5, %v472_v13  ;;  %v347_v20 = vadd.f32 %v1014_v1, %v279_v14  ;;  %v280_v21 = vmul.f32 %v1003_v0, %v212_v10  ;;  %v281_v22 = vmul.f32 %v1003_v0, %v213_v11  ;;  %v223_v5 = vld [vmem:[%s1009_s20 + $0x188] sm:$0xff] }
  0x42   : > { %936 = vst [vmem:[%s1042_s26 + $0x80] sm:$0xff] %v844_v16   ;;  %v537_v24 = vsel %vm409_vm3, %v345_v8, %v473_v17  ;;  %vm410_vm4 = vcmp.ge.f32.partialorder %v346_v18, 0.0  ;;  %v474_v25 = vmul.f32 0.2, %v346_v18  ;;  %v282_v26 = vmul.f32 %v1003_v0, %v214_v15  ;;  %v225_v17 = vld [vmem:[%s1009_s20 + $0x198] sm:$0xff] }
  0x43   : > { %v849_v28 = vpack.c.bf16 %v537_v24, %v536_v19  ;;  %vm411_vm5 = vcmp.ge.f32.partialorder %v347_v20, 0.0  ;;  %v475_v29 = vmul.f32 0.2, %v347_v20  ;;  %v348_v30 = vadd.f32 %v1014_v1, %v280_v21  ;;  %v226_v24 = vld [vmem:[%s1009_s20 + $0x1a0] sm:$0xff] }
  0x44   : > { %v538_v31 = vsel %vm410_vm4, %v346_v18, %v474_v25  ;;  %v349_v32 = vadd.f32 %v1014_v1, %v281_v22  ;;  %v283_v33 = vmul.f32 %v1003_v0, %v215_v23  ;;  %v350_v34 = vadd.f32 %v1014_v1, %v282_v26 }
  0x45   : > { %937 = vst [vmem:[%s1042_s26 + $0x88] sm:$0xff] %v849_v28   ;;  %v539_v36 = vsel %vm411_vm5, %v347_v20, %v475_v29  ;;  %vm412_vm6 = vcmp.ge.f32.partialorder %v348_v30, 0.0  ;;  %v476_v37 = vmul.f32 0.2, %v348_v30  ;;  %v284_v38 = vmul.f32 %v1003_v0, %v216_v27  ;;  %v227_v28 = vld [vmem:[%s1009_s20 + $0x1a8] sm:$0xff] }
  0x46   : > { %v854_v39 = vpack.c.bf16 %v539_v36, %v538_v31  ;;  %vm413_vm7 = vcmp.ge.f32.partialorder %v349_v32, 0.0  ;;  %v477_v40 = vmul.f32 0.2, %v349_v32  ;;  %v351_v41 = vadd.f32 %v1014_v1, %v283_v33  ;;  %v228_v36 = vld [vmem:[%s1009_s20 + $0x1b0] sm:$0xff] }
  0x47   : > { %v540_v43 = vsel %vm412_vm6, %v348_v30, %v476_v37  ;;  %vm414_vm8 = vcmp.ge.f32.partialorder %v350_v34, 0.0  ;;  %v478_v44 = vmul.f32 0.2, %v350_v34  ;;  %v285_v45 = vmul.f32 %v1003_v0, %v217_v35  ;;  %v229_v37 = vld [vmem:[%s1009_s20 + $0x1b8] sm:$0xff] }
  0x48   : > { %938 = vst [vmem:[%s1042_s26 + $0x90] sm:$0xff] %v854_v39   ;;  %v541_v47 = vsel %vm413_vm7, %v349_v32, %v477_v40  ;;  %vm415_vm9 = vcmp.ge.f32.partialorder %v351_v41, 0.0  ;;  %v479_v48 = vmul.f32 0.2, %v351_v41  ;;  %v352_v49 = vadd.f32 %v1014_v1, %v284_v38 }
  0x49   : > { %v859_v50 = vpack.c.bf16 %v541_v47, %v540_v43  ;;  %v542_v51 = vsel %vm414_vm8, %v350_v34, %v478_v44  ;;  %v353_v52 = vadd.f32 %v1014_v1, %v285_v45  ;;  %v286_v53 = vmul.f32 %v1003_v0, %v218_v42 }
  0x4a   : > { %v543_v56 = vsel %vm415_vm9, %v351_v41, %v479_v48  ;;  %vm416_vm10 = vcmp.ge.f32.partialorder %v352_v49, 0.0  ;;  %v480_v57 = vmul.f32 0.2, %v352_v49  ;;  %v287_v58 = vmul.f32 %v1003_v0, %v219_v46  ;;  %v230_v41 = vld [vmem:[%s1009_s20 + $0x1c0] sm:$0xff] }
  0x4b   : > { %939 = vst [vmem:[%s1042_s26 + $0x98] sm:$0xff] %v859_v50   ;;  %v864_v60 = vpack.c.bf16 %v543_v56, %v542_v51  ;;  %vm417_vm11 = vcmp.ge.f32.partialorder %v353_v52, 0.0  ;;  %v481_v61 = vmul.f32 0.2, %v353_v52  ;;  %v354_v62 = vadd.f32 %v1014_v1, %v286_v53  ;;  %v232_v53 = vld [vmem:[%s1009_s20 + $0x1d0] sm:$0xff] }
  0x4c   : > { %v544_v63 = vsel %vm416_vm10, %v352_v49, %v480_v57  ;;  %v355_v2 = vadd.f32 %v1014_v1, %v287_v58  ;;  %v288_v3 = vmul.f32 %v1003_v0, %v220_v54  ;;  %v289_v4 = vmul.f32 %v1003_v0, %v221_v55  ;;  %v231_v49 = vld [vmem:[%s1009_s20 + $0x1c8] sm:$0xff] }
  0x4d   : > { %940 = vst [vmem:[%s1042_s26 + $0xa0] sm:$0xff] %v864_v60   ;;  %v545_v6 = vsel %vm417_vm11, %v353_v52, %v481_v61  ;;  %vm418_vm12 = vcmp.ge.f32.partialorder %v354_v62, 0.0  ;;  %v482_v7 = vmul.f32 0.2, %v354_v62  ;;  %v290_v8 = vmul.f32 %v1003_v0, %v222_v59  ;;  %v233_v61 = vld [vmem:[%s1009_s20 + $0x1d8] sm:$0xff] }
  0x4e   : > { %v869_v10 = vpack.c.bf16 %v545_v6, %v544_v63  ;;  %vm419_vm13 = vcmp.ge.f32.partialorder %v355_v2, 0.0  ;;  %v483_v11 = vmul.f32 0.2, %v355_v2  ;;  %v356_v12 = vadd.f32 %v1014_v1, %v288_v3  ;;  %v234_v6 = vld [vmem:[%s1009_s20 + $0x1e0] sm:$0xff] }
  0x4f   : > { %v546_v13 = vsel %vm418_vm12, %v354_v62, %v482_v7  ;;  %v357_v14 = vadd.f32 %v1014_v1, %v289_v4  ;;  %v291_v15 = vmul.f32 %v1003_v0, %v223_v5  ;;  %v358_v16 = vadd.f32 %v1014_v1, %v290_v8 }
  0x50   : > { %941 = vst [vmem:[%s1042_s26 + $0xa8] sm:$0xff] %v869_v10   ;;  %v547_v18 = vsel %vm419_vm13, %v355_v2, %v483_v11  ;;  %vm420_vm14 = vcmp.ge.f32.partialorder %v356_v12, 0.0  ;;  %v484_v19 = vmul.f32 0.2, %v356_v12  ;;  %v292_v20 = vmul.f32 %v1003_v0, %v224_v9  ;;  %v235_v10 = vld [vmem:[%s1009_s20 + $0x1e8] sm:$0xff] }
  0x51   : > { %v874_v21 = vpack.c.bf16 %v547_v18, %v546_v13  ;;  %vm421_vm15 = vcmp.ge.f32.partialorder %v357_v14, 0.0  ;;  %v485_v22 = vmul.f32 0.2, %v357_v14  ;;  %v359_v23 = vadd.f32 %v1014_v1, %v291_v15  ;;  %v236_v18 = vld [vmem:[%s1009_s20 + $0x1f0] sm:$0xff] }
  0x52   : > { %v548_v25 = vsel %vm420_vm14, %v356_v12, %v484_v19  ;;  %vm422_vm0 = vcmp.ge.f32.partialorder %v358_v16, 0.0  ;;  %v486_v26 = vmul.f32 0.2, %v358_v16  ;;  %v293_v27 = vmul.f32 %v1003_v0, %v225_v17  ;;  %v237_v19 = vld [vmem:[%s1009_s20 + $0x1f8] sm:$0xff] }
  0x53   : > { %942 = vst [vmem:[%s1042_s26 + $0xb0] sm:$0xff] %v874_v21   ;;  %v549_v29 = vsel %vm421_vm15, %v357_v14, %v485_v22  ;;  %vm423_vm1 = vcmp.ge.f32.partialorder %v359_v23, 0.0  ;;  %v487_v30 = vmul.f32 0.2, %v359_v23  ;;  %v360_v31 = vadd.f32 %v1014_v1, %v292_v20 }
  0x54   : > { %v879_v32 = vpack.c.bf16 %v549_v29, %v548_v25  ;;  %v550_v33 = vsel %vm422_vm0, %v358_v16, %v486_v26  ;;  %v361_v34 = vadd.f32 %v1014_v1, %v293_v27  ;;  %v294_v35 = vmul.f32 %v1003_v0, %v226_v24 }
  0x55   : > { %v551_v38 = vsel %vm423_vm1, %v359_v23, %v487_v30  ;;  %vm424_vm2 = vcmp.ge.f32.partialorder %v360_v31, 0.0  ;;  %v488_v39 = vmul.f32 0.2, %v360_v31  ;;  %v295_v40 = vmul.f32 %v1003_v0, %v227_v28 }
  0x56   : > { %943 = vst [vmem:[%s1042_s26 + $0xb8] sm:$0xff] %v879_v32   ;;  %v884_v42 = vpack.c.bf16 %v551_v38, %v550_v33  ;;  %vm425_vm3 = vcmp.ge.f32.partialorder %v361_v34, 0.0  ;;  %v489_v43 = vmul.f32 0.2, %v361_v34  ;;  %v362_v44 = vadd.f32 %v1014_v1, %v294_v35 }
  0x57   : > { %v552_v45 = vsel %vm424_vm2, %v360_v31, %v488_v39  ;;  %v363_v46 = vadd.f32 %v1014_v1, %v295_v40  ;;  %v296_v47 = vmul.f32 %v1003_v0, %v228_v36  ;;  %v297_v48 = vmul.f32 %v1003_v0, %v229_v37 }
  0x58   : > { %944 = vst [vmem:[%s1042_s26 + $0xc0] sm:$0xff] %v884_v42   ;;  %v553_v50 = vsel %vm425_vm3, %v361_v34, %v489_v43  ;;  %vm426_vm4 = vcmp.ge.f32.partialorder %v362_v44, 0.0  ;;  %v490_v51 = vmul.f32 0.2, %v362_v44  ;;  %v298_v52 = vmul.f32 %v1003_v0, %v230_v41 }
  0x59   : > { %v889_v54 = vpack.c.bf16 %v553_v50, %v552_v45  ;;  %vm427_vm5 = vcmp.ge.f32.partialorder %v363_v46, 0.0  ;;  %v491_v55 = vmul.f32 0.2, %v363_v46  ;;  %v364_v56 = vadd.f32 %v1014_v1, %v296_v47 }
  0x5a   : > { %v554_v57 = vsel %vm426_vm4, %v362_v44, %v490_v51  ;;  %v365_v58 = vadd.f32 %v1014_v1, %v297_v48  ;;  %v299_v59 = vmul.f32 %v1003_v0, %v231_v49  ;;  %v366_v60 = vadd.f32 %v1014_v1, %v298_v52 }
  0x5b   : > { %945 = vst [vmem:[%s1042_s26 + $0xc8] sm:$0xff] %v889_v54   ;;  %v555_v62 = vsel %vm427_vm5, %v363_v46, %v491_v55  ;;  %vm428_vm6 = vcmp.ge.f32.partialorder %v364_v56, 0.0  ;;  %v492_v63 = vmul.f32 0.2, %v364_v56  ;;  %v300_v2 = vmul.f32 %v1003_v0, %v232_v53 }
  0x5c   : > { %v894_v3 = vpack.c.bf16 %v555_v62, %v554_v57  ;;  %vm429_vm7 = vcmp.ge.f32.partialorder %v365_v58, 0.0  ;;  %v493_v4 = vmul.f32 0.2, %v365_v58  ;;  %v367_v5 = vadd.f32 %v1014_v1, %v299_v59 }
  0x5d   : > { %v556_v7 = vsel %vm428_vm6, %v364_v56, %v492_v63  ;;  %vm430_vm8 = vcmp.ge.f32.partialorder %v366_v60, 0.0  ;;  %v494_v8 = vmul.f32 0.2, %v366_v60  ;;  %v301_v9 = vmul.f32 %v1003_v0, %v233_v61 }
  0x5e   : > { %946 = vst [vmem:[%s1042_s26 + $0xd0] sm:$0xff] %v894_v3   ;;  %v557_v11 = vsel %vm429_vm7, %v365_v58, %v493_v4  ;;  %vm431_vm9 = vcmp.ge.f32.partialorder %v367_v5, 0.0  ;;  %v495_v12 = vmul.f32 0.2, %v367_v5  ;;  %v368_v13 = vadd.f32 %v1014_v1, %v300_v2 }
  0x5f   : > { %v899_v14 = vpack.c.bf16 %v557_v11, %v556_v7  ;;  %v558_v15 = vsel %vm430_vm8, %v366_v60, %v494_v8  ;;  %v369_v16 = vadd.f32 %v1014_v1, %v301_v9  ;;  %v302_v17 = vmul.f32 %v1003_v0, %v234_v6 }
  0x60   : > { %v559_v20 = vsel %vm431_vm9, %v367_v5, %v495_v12  ;;  %vm432_vm10 = vcmp.ge.f32.partialorder %v368_v13, 0.0  ;;  %v496_v21 = vmul.f32 0.2, %v368_v13  ;;  %v303_v22 = vmul.f32 %v1003_v0, %v235_v10 }
  0x61   : > { %947 = vst [vmem:[%s1042_s26 + $0xd8] sm:$0xff] %v899_v14   ;;  %v904_v23 = vpack.c.bf16 %v559_v20, %v558_v15  ;;  %vm433_vm11 = vcmp.ge.f32.partialorder %v369_v16, 0.0  ;;  %v497_v24 = vmul.f32 0.2, %v369_v16  ;;  %v370_v25 = vadd.f32 %v1014_v1, %v302_v17 }
  0x62   : > { %v560_v26 = vsel %vm432_vm10, %v368_v13, %v496_v21  ;;  %v371_v27 = vadd.f32 %v1014_v1, %v303_v22  ;;  %v304_v28 = vmul.f32 %v1003_v0, %v236_v18  ;;  %v305_v29 = vmul.f32 %v1003_v0, %v237_v19 }
  0x63   : > { %948 = vst [vmem:[%s1042_s26 + $0xe0] sm:$0xff] %v904_v23   ;;  %v561_v30 = vsel %vm433_vm11, %v369_v16, %v497_v24  ;;  %vm434_vm12 = vcmp.ge.f32.partialorder %v370_v25, 0.0  ;;  %v498_v31 = vmul.f32 0.2, %v370_v25 }
  0x64   : > { %v909_v32 = vpack.c.bf16 %v561_v30, %v560_v26  ;;  %vm435_vm13 = vcmp.ge.f32.partialorder %v371_v27, 0.0  ;;  %v499_v33 = vmul.f32 0.2, %v371_v27  ;;  %v372_v34 = vadd.f32 %v1014_v1, %v304_v28 }
  0x65   : > { %v562_v35 = vsel %vm434_vm12, %v370_v25, %v498_v31  ;;  %v373_v36 = vadd.f32 %v1014_v1, %v305_v29 }
  0x66   : > { %949 = vst [vmem:[%s1042_s26 + $0xe8] sm:$0xff] %v909_v32   ;;  %v563_v37 = vsel %vm435_vm13, %v371_v27, %v499_v33  ;;  %vm436_vm14 = vcmp.ge.f32.partialorder %v372_v34, 0.0  ;;  %v500_v38 = vmul.f32 0.2, %v372_v34 }
  0x67   : > { %v914_v39 = vpack.c.bf16 %v563_v37, %v562_v35  ;;  %vm437_vm15 = vcmp.ge.f32.partialorder %v373_v36, 0.0  ;;  %v501_v0 = vmul.f32 0.2, %v373_v36 }
  0x68   : > { %v564_v40 = vsel %vm436_vm14, %v372_v34, %v500_v38 }
  0x69   : > { %950 = vst [vmem:[%s1042_s26 + $0xf0] sm:$0xff] %v914_v39   ;;  %v565_v41 = vsel %vm437_vm15, %v373_v36, %v501_v0 }
  0x6a   : > { %v919_v42 = vpack.c.bf16 %v565_v41, %v564_v40 }
  0x6c   : > { %951 = vst [vmem:[%s1042_s26 + $0xf8] sm:$0xff] %v919_v42  }
  0x6d PF: > { %s13_s12 = sadd.s32 1, %s968_s12  }
  0x6e   : > { %p10_p4 = scmp.ge.s32.totalorder %s13_s12, 4  }
  0x70   :  { %12 = sbr.rel (!%p10_p4) target bundleno = 1 (0x1), region = 62 }

// kernel: double_conv.6
= control target key start
LH: loop header
LB: loop body
LE: loop exit
PB: predicated region body
PF: predicated region fallthrough
CT: control target
= control target key end

     0   :  { %s1933_s15 = smov 0   ;;  %s2416_s0 = inlined_call_operand.vmem [shape: bf16[1024,256], index: 0, kind: input, shape index: {}]   ;;  %s2417_s1 = inlined_call_operand.vmem [shape: bf16[256,128], index: 1, kind: input, shape index: {}]   ;;  %s2418_s2 = inlined_call_operand.vmem [shape: f32[1024,128], index: 2, kind: output, shape index: {0}]   ;;  %s2419_s3 = inlined_call_operand.vmem [shape: f32[2,8,128], index: 3, kind: output, shape index: {1}]   ;;  %s2420_s4 = inlined_call_operand.vmem [shape: f32[2,8,128], index: 4, kind: output, shape index: {2}]  }
   0x1 LB: > { %s1939_s16 = sadd.s32 4294967295, %s1906_s15   ;;  %p1465_p0 = scmp.ge.s32.totalorder %s1906_s15, 1  ;;  %s1906_s15 = sphi %s1933_s15, %s15_s15  }
   0x2   : > { %p169_p1 = scmp.lt.s32.totalorder %s1906_s15, 3 }
   0x4   : > { %p170_p2 = pnand %p1465_p0, %p169_p1 }
   0x5   : > { %s1466_s29 = sshll.u32 (!%p170_p2), %s1939_s16, 6  ;;  %p217_p4 = scmp.lt.s32.totalorder (!%p170_p2), %s1939_s16, 1 }
   0x6   : > { %173 = sbr.rel (%p170_p2) target bundleno = 501 (0x1f5), region = 28  ;;  %p205_p3 = scmp.lt.s32.totalorder (!%p170_p2), %s1466_s29, 127 }
   0xb   : > { %v1867_v0 = vld [vmem:[%s2417_s1 + $0x38] sm:$0xff]  ;;  %v1866_v2 = vld [vmem:[%s2417_s1 + $0x30] sm:$0xff]  ;;  %v1865_v4 = vld [vmem:[%s2417_s1 + $0x28] sm:$0xff]  ;;  %s2422_s29 = smov (!%p205_p3, %s1466_s29), 127  ;;  %s2424_s16 = smov (!%p217_p4, %s1939_s16), 1 }
   0xc   : > { %v1875_v1 = vld [vmem:[%s2417_s1 + $0x78] sm:$0xff]  ;;  %737 = vmatpush.bf16.msra.mxu0 %v1867_v0  ;;  %v1874_v3 = vld [vmem:[%s2417_s1 + $0x70] sm:$0xff]  ;;  %1876 = vmatpush.bf16.msra.mxu2 %v1867_v0  ;;  %v1873_v5 = vld [vmem:[%s2417_s1 + $0x68] sm:$0xff]  ;;  %s1795_s18 = sshll.u32 %s2422_s29, 3  ;;  %s1471_s29 = sshll.u32 %s2424_s16, 3 }
   0xd   : > { %906 = vmatpush.bf16.msra.mxu1 %v1875_v1  ;;  %1884 = vmatpush.bf16.msra.mxu3 %v1875_v1  ;;  %v1864_v6 = vld [vmem:[%s2417_s1 + $0x20] sm:$0xff]  ;;  %v1863_v8 = vld [vmem:[%s2417_s1 + $0x18] sm:$0xff]  ;;  %v1862_v10 = vld [vmem:[%s2417_s1 + $0x10] sm:$0xff]  ;;  %s1994_s25 = scalar_lea.vmem %s2416_s0, %s1795_s18  ;;  %s2071_s7 = scalar_lea.vmem %s2418_s2, %s1795_s18 }
   0xe   : > { %v1872_v7 = vld [vmem:[%s2417_s1 + $0x60] sm:$0xff]  ;;  %v1871_v9 = vld [vmem:[%s2417_s1 + $0x58] sm:$0xff]  ;;  %v1870_v11 = vld [vmem:[%s2417_s1 + $0x50] sm:$0xff]  ;;  %s220_s10 = scalar_lea.vmem %s2419_s3, %s1471_s29  ;;  %s224_s13 = scalar_lea.vmem %s2420_s4, %s1471_s29 }
   0xf   : > { %v1861_v12 = vld [vmem:[%s2417_s1 + $0x8] sm:$0xff]  ;;  %v1860_v14 = vld [vmem:[%s2417_s1] sm:$0xff]  ;;  %v1483_v22 = vld [vmem:[%s1994_s25 + $0x10] sm:$0xf] }
  0x10   : > { %738 = vmatpush.bf16.msra.mxu0 %v1866_v2  ;;  %1877 = vmatpush.bf16.msra.mxu2 %v1866_v2  ;;  %v1869_v13 = vld [vmem:[%s2417_s1 + $0x48] sm:$0xff]  ;;  %v1868_v15 = vld [vmem:[%s2417_s1 + $0x40] sm:$0xff]  ;;  %v1799_v23 = vld [vmem:[%s1994_s25 + $0x14] sm:$0xf0] }
  0x11   : > { %907 = vmatpush.bf16.msra.mxu1 %v1874_v3  ;;  %1885 = vmatpush.bf16.msra.mxu3 %v1874_v3  ;;  %v1475_v16 = vld [vmem:[%s1994_s25] sm:$0xf]  ;;  %v1797_v17 = vld [vmem:[%s1994_s25 + $0x4] sm:$0xf0]  ;;  %v1796_v18 = vld [vmem:[%s1994_s25 + $0x4] sm:$0xf]  ;;  %v1484_v26 = vor.u32 %v1799_v23, %v1483_v22 }
  0x12   : > { %v1477_v19 = vld [vmem:[%s1994_s25 + $0x8] sm:$0xf0]  ;;  %v1476_v20 = vor.u32 %v1797_v17, %v1475_v16  ;;  %v1798_v24 = vld [vmem:[%s1994_s25 + $0x14] sm:$0xf]  ;;  %v1485_v25 = vld [vmem:[%s1994_s25 + $0x18] sm:$0xf0] }
  0x13   : > { %v1480_v21 = vor.u32 %v1796_v18, %v1477_v19  ;;  %v1488_v27 = vor.u32 %v1798_v24, %v1485_v25  ;;  %v1603_v28 = vld [vmem:[%s1994_s25 + $0x100] sm:$0xf]  ;;  %v1829_v29 = vld [vmem:[%s1994_s25 + $0x104] sm:$0xf0]  ;;  %v1828_v30 = vld [vmem:[%s1994_s25 + $0x104] sm:$0xf] }
  0x14   : > { %739 = vmatpush.bf16.msra.mxu0 %v1865_v4  ;;  %1878 = vmatpush.bf16.msra.mxu2 %v1865_v4  ;;  %v1604_v31 = vor.u32 %v1829_v29, %v1603_v28  ;;  %v1605_v32 = vld [vmem:[%s1994_s25 + $0x108] sm:$0xf0]  ;;  %v1491_v34 = vld [vmem:[%s1994_s25 + $0x20] sm:$0xf]  ;;  %v1801_v35 = vld [vmem:[%s1994_s25 + $0x24] sm:$0xf0] }
  0x15   : > { %908 = vmatpush.bf16.msra.mxu1 %v1873_v5  ;;  %1886 = vmatpush.bf16.msra.mxu3 %v1873_v5  ;;  %v1608_v33 = vor.u32 %v1828_v30, %v1605_v32  ;;  %v1800_v36 = vld [vmem:[%s1994_s25 + $0x24] sm:$0xf]  ;;  %v1493_v37 = vld [vmem:[%s1994_s25 + $0x28] sm:$0xf0]  ;;  %v1492_v38 = vor.u32 %v1801_v35, %v1491_v34  ;;  %v1611_v40 = vld [vmem:[%s1994_s25 + $0x110] sm:$0xf] }
  0x16   : > { %v1496_v39 = vor.u32 %v1800_v36, %v1493_v37  ;;  %v1831_v41 = vld [vmem:[%s1994_s25 + $0x114] sm:$0xf0]  ;;  %v1830_v42 = vld [vmem:[%s1994_s25 + $0x114] sm:$0xf]  ;;  %v1613_v44 = vld [vmem:[%s1994_s25 + $0x118] sm:$0xf0] }
  0x17   : > { %v1612_v43 = vor.u32 %v1831_v41, %v1611_v40  ;;  %v1616_v45 = vor.u32 %v1830_v42, %v1613_v44  ;;  %v1499_v46 = vld [vmem:[%s1994_s25 + $0x30] sm:$0xf]  ;;  %v1803_v47 = vld [vmem:[%s1994_s25 + $0x34] sm:$0xf0]  ;;  %v1802_v48 = vld [vmem:[%s1994_s25 + $0x34] sm:$0xf] }
  0x18   : > { %740 = vmatpush.bf16.msra.mxu0 %v1864_v6  ;;  %1879 = vmatpush.bf16.msra.mxu2 %v1864_v6  ;;  %v1501_v49 = vld [vmem:[%s1994_s25 + $0x38] sm:$0xf0]  ;;  %v1500_v50 = vor.u32 %v1803_v47, %v1499_v46  ;;  %v1619_v52 = vld [vmem:[%s1994_s25 + $0x120] sm:$0xf]  ;;  %v1833_v53 = vld [vmem:[%s1994_s25 + $0x124] sm:$0xf0] }
  0x19   : > { %909 = vmatpush.bf16.msra.mxu1 %v1872_v7  ;;  %1887 = vmatpush.bf16.msra.mxu3 %v1872_v7  ;;  %v1504_v51 = vor.u32 %v1802_v48, %v1501_v49  ;;  %v1832_v54 = vld [vmem:[%s1994_s25 + $0x124] sm:$0xf]  ;;  %v1620_v55 = vor.u32 %v1833_v53, %v1619_v52  ;;  %v1621_v56 = vld [vmem:[%s1994_s25 + $0x128] sm:$0xf0]  ;;  %v1507_v58 = vld [vmem:[%s1994_s25 + $0x40] sm:$0xf] }
  0x1a   : > { %v1624_v57 = vor.u32 %v1832_v54, %v1621_v56  ;;  %v1805_v59 = vld [vmem:[%s1994_s25 + $0x44] sm:$0xf0]  ;;  %v1804_v60 = vld [vmem:[%s1994_s25 + $0x44] sm:$0xf]  ;;  %v1509_v61 = vld [vmem:[%s1994_s25 + $0x48] sm:$0xf0] }
  0x1b   : > { %v1508_v62 = vor.u32 %v1805_v59, %v1507_v58  ;;  %v1512_v63 = vor.u32 %v1804_v60, %v1509_v61  ;;  %v1627_v0 = vld [vmem:[%s1994_s25 + $0x130] sm:$0xf]  ;;  %v1835_v1 = vld [vmem:[%s1994_s25 + $0x134] sm:$0xf0]  ;;  %v1834_v2 = vld [vmem:[%s1994_s25 + $0x134] sm:$0xf] }
  0x1c   : > { %741 = vmatpush.bf16.msra.mxu0 %v1863_v8  ;;  %1880 = vmatpush.bf16.msra.mxu2 %v1863_v8  ;;  %v1628_v3 = vor.u32 %v1835_v1, %v1627_v0  ;;  %v1629_v4 = vld [vmem:[%s1994_s25 + $0x138] sm:$0xf0]  ;;  %v1515_v6 = vld [vmem:[%s1994_s25 + $0x50] sm:$0xf]  ;;  %v1807_v7 = vld [vmem:[%s1994_s25 + $0x54] sm:$0xf0] }
  0x1d   : > { %910 = vmatpush.bf16.msra.mxu1 %v1871_v9  ;;  %1888 = vmatpush.bf16.msra.mxu3 %v1871_v9  ;;  %v1632_v5 = vor.u32 %v1834_v2, %v1629_v4  ;;  %v1806_v8 = vld [vmem:[%s1994_s25 + $0x54] sm:$0xf]  ;;  %v1517_v9 = vld [vmem:[%s1994_s25 + $0x58] sm:$0xf0]  ;;  %v1637_v16 = vld [vmem:[%s1994_s25 + $0x148] sm:$0xf0] }
  0x1e   : > { %v1523_v18 = vld [vmem:[%s1994_s25 + $0x60] sm:$0xf]  ;;  %v1809_v19 = vld [vmem:[%s1994_s25 + $0x64] sm:$0xf0]  ;;  %v1643_v24 = vld [vmem:[%s1994_s25 + $0x150] sm:$0xf] }
  0x1f   : > { %v1524_v22 = vor.u32 %v1809_v19, %v1523_v18  ;;  %v1839_v25 = vld [vmem:[%s1994_s25 + $0x154] sm:$0xf0]  ;;  %v1645_v28 = vld [vmem:[%s1994_s25 + $0x158] sm:$0xf0]  ;;  %v1531_v30 = vld [vmem:[%s1994_s25 + $0x70] sm:$0xf] }
  0x20   : > { %742 = vmatpush.bf16.msra.mxu0 %v1862_v10  ;;  %1881 = vmatpush.bf16.msra.mxu2 %v1862_v10  ;;  %v1516_v10 = vor.u32 %v1807_v7, %v1515_v6  ;;  %v1810_v32 = vld [vmem:[%s1994_s25 + $0x74] sm:$0xf]  ;;  %v1651_v36 = vld [vmem:[%s1994_s25 + $0x160] sm:$0xf]  ;;  %v1841_v37 = vld [vmem:[%s1994_s25 + $0x164] sm:$0xf0] }
  0x21   : > { %911 = vmatpush.bf16.msra.mxu1 %v1870_v11  ;;  %1889 = vmatpush.bf16.msra.mxu3 %v1870_v11  ;;  %v1520_v11 = vor.u32 %v1806_v8, %v1517_v9  ;;  %v1653_v40 = vld [vmem:[%s1994_s25 + $0x168] sm:$0xf0]  ;;  %v1539_v42 = vld [vmem:[%s1994_s25 + $0x80] sm:$0xf]  ;;  %v1812_v44 = vld [vmem:[%s1994_s25 + $0x84] sm:$0xf] }
  0x22   : > { %v1843_v52 = vld [vmem:[%s1994_s25 + $0x174] sm:$0xf0]  ;;  %v1842_v53 = vld [vmem:[%s1994_s25 + $0x174] sm:$0xf]  ;;  %v1549_v2 = vld [vmem:[%s1994_s25 + $0x98] sm:$0xf0] }
  0x23   : > { %v1815_v0 = vld [vmem:[%s1994_s25 + $0x94] sm:$0xf0]  ;;  %v1814_v1 = vld [vmem:[%s1994_s25 + $0x94] sm:$0xf]  ;;  %v1667_v9 = vld [vmem:[%s1994_s25 + $0x180] sm:$0xf] }
  0x24   : > { %743 = vmatpush.bf16.msra.mxu0 %v1861_v12  ;;  %1882 = vmatpush.bf16.msra.mxu2 %v1861_v12  ;;  %v1635_v12 = vld [vmem:[%s1994_s25 + $0x140] sm:$0xf] }
  0x25   : > { %912 = vmatpush.bf16.msra.mxu1 %v1869_v13  ;;  %1890 = vmatpush.bf16.msra.mxu3 %v1869_v13  ;;  %v1837_v13 = vld [vmem:[%s1994_s25 + $0x144] sm:$0xf0] }
  0x28   : > { %744 = vmatpush.bf16.msra.mxu0 %v1860_v14  ;;  %1883 = vmatpush.bf16.msra.mxu2 %v1860_v14  ;;  %v1836_v14 = vld [vmem:[%s1994_s25 + $0x144] sm:$0xf] }
  0x29   : > { %913 = vmatpush.bf16.msra.mxu1 %v1868_v15  ;;  %1891 = vmatpush.bf16.msra.mxu3 %v1868_v15  ;;  %v1636_v15 = vor.u32 %v1837_v13, %v1635_v12  ;;  %v1640_v17 = vor.u32 %v1836_v14, %v1637_v16 }
  0x2b   : > { %745 = vmatmul.bf16.vlgmr.msra.gmra.mxu0 %v1476_v20  ;;  %825 = vmatmul.bf16.vlgmr.msra.gmra.mxu2 %v1604_v31  ;;  %v1808_v20 = vld [vmem:[%s1994_s25 + $0x64] sm:$0xf]  ;;  %v1811_v31 = vld [vmem:[%s1994_s25 + $0x74] sm:$0xf0] }
  0x2c   : > { %914 = vmatmul.bf16.vlgmr.msra.gmra.mxu1 %v1480_v21  ;;  %994 = vmatmul.bf16.vlgmr.msra.gmra.mxu3 %v1608_v33  ;;  %v1525_v21 = vld [vmem:[%s1994_s25 + $0x68] sm:$0xf0]  ;;  %v1533_v33 = vld [vmem:[%s1994_s25 + $0x78] sm:$0xf0]  ;;  %v1532_v34 = vor.u32 %v1811_v31, %v1531_v30 }
  0x2d   : > { %v1528_v23 = vor.u32 %v1808_v20, %v1525_v21  ;;  %v1536_v35 = vor.u32 %v1810_v32, %v1533_v33 }
  0x3b   : > { %750 = vmatmul.bf16.gmra.mxu0 %v1484_v26  ;;  %830 = vmatmul.bf16.gmra.mxu2 %v1612_v43  ;;  %v1838_v26 = vld [vmem:[%s1994_s25 + $0x154] sm:$0xf]  ;;  %v1813_v43 = vld [vmem:[%s1994_s25 + $0x84] sm:$0xf0] }
  0x3c   : > { %919 = vmatmul.bf16.gmra.mxu1 %v1488_v27  ;;  %999 = vmatmul.bf16.gmra.mxu3 %v1616_v45  ;;  %v1644_v27 = vor.u32 %v1839_v25, %v1643_v24  ;;  %v1648_v29 = vor.u32 %v1838_v26, %v1645_v28  ;;  %v1541_v45 = vld [vmem:[%s1994_s25 + $0x88] sm:$0xf0]  ;;  %v1540_v46 = vor.u32 %v1813_v43, %v1539_v42  ;;  %v1555_v25 = vld [vmem:[%s1994_s25 + $0xa0] sm:$0xf]  ;;  %v1817_v26 = vld [vmem:[%s1994_s25 + $0xa4] sm:$0xf0] }
  0x3d   : > { %v1544_v47 = vor.u32 %v1812_v44, %v1541_v45  ;;  %v1557_v28 = vld [vmem:[%s1994_s25 + $0xa8] sm:$0xf0]  ;;  %v1556_v31 = vor.u32 %v1817_v26, %v1555_v25  ;;  %v1677_v45 = vld [vmem:[%s1994_s25 + $0x198] sm:$0xf0] }
  0x4b   : > { %755 = vmatmul.bf16.gmra.mxu0 %v1492_v38  ;;  %835 = vmatmul.bf16.gmra.mxu2 %v1620_v55  ;;  %v1840_v38 = vld [vmem:[%s1994_s25 + $0x164] sm:$0xf]  ;;  %v1661_v55 = vld [vmem:[%s1994_s25 + $0x178] sm:$0xf0] }
  0x4c   : > { %924 = vmatmul.bf16.gmra.mxu1 %v1496_v39  ;;  %1004 = vmatmul.bf16.gmra.mxu3 %v1624_v57  ;;  %v1652_v39 = vor.u32 %v1841_v37, %v1651_v36  ;;  %v1656_v41 = vor.u32 %v1840_v38, %v1653_v40  ;;  %v1664_v56 = vor.u32 %v1842_v53, %v1661_v55  ;;  %v1847_v40 = vld [vmem:[%s1994_s25 + $0x194] sm:$0xf0]  ;;  %v1563_v55 = vld [vmem:[%s1994_s25 + $0xb0] sm:$0xf] }
  0x5b   : > { %760 = vmatmul.bf16.gmra.mxu0 %v1500_v50  ;;  %840 = vmatmul.bf16.gmra.mxu2 %v1628_v3 }
  0x5c   : > { %929 = vmatmul.bf16.gmra.mxu1 %v1504_v51  ;;  %1009 = vmatmul.bf16.gmra.mxu3 %v1632_v5  ;;  %v1659_v51 = vld [vmem:[%s1994_s25 + $0x170] sm:$0xf]  ;;  %v1552_v5 = vor.u32 %v1814_v1, %v1549_v2 }
  0x5d   : > { %v1660_v54 = vor.u32 %v1843_v52, %v1659_v51 }
  0x6b   : > { %765 = vmatmul.bf16.gmra.mxu0 %v1508_v62  ;;  %845 = vmatmul.bf16.gmra.mxu2 %v1636_v15  ;;  %v1669_v15 = vld [vmem:[%s1994_s25 + $0x188] sm:$0xf0] }
  0x6c   : > { %934 = vmatmul.bf16.gmra.mxu1 %v1512_v63  ;;  %1014 = vmatmul.bf16.gmra.mxu3 %v1640_v17  ;;  %v1547_v63 = vld [vmem:[%s1994_s25 + $0x90] sm:$0xf] }
  0x6d   : > { %v1548_v4 = vor.u32 %v1815_v0, %v1547_v63 }
  0x7b   : > { %770 = vmatmul.bf16.gmra.mxu0 %v1516_v10  ;;  %850 = vmatmul.bf16.gmra.mxu2 %v1644_v27  ;;  %v1845_v10 = vld [vmem:[%s1994_s25 + $0x184] sm:$0xf0]  ;;  %v1816_v27 = vld [vmem:[%s1994_s25 + $0xa4] sm:$0xf] }
  0x7c   : > { %939 = vmatmul.bf16.gmra.mxu1 %v1520_v11  ;;  %1019 = vmatmul.bf16.gmra.mxu3 %v1648_v29  ;;  %v1844_v11 = vld [vmem:[%s1994_s25 + $0x184] sm:$0xf]  ;;  %v1668_v14 = vor.u32 %v1845_v10, %v1667_v9  ;;  %v1560_v32 = vor.u32 %v1816_v27, %v1557_v28 }
  0x7d   : > { %v1672_v16 = vor.u32 %v1844_v11, %v1669_v15  ;;  %v1685_v11 = vld [vmem:[%s1994_s25 + $0x1a8] sm:$0xf0] }
  0x8b   : > { %775 = vmatmul.bf16.gmra.mxu0 %v1524_v22  ;;  %855 = vmatmul.bf16.gmra.mxu2 %v1652_v39  ;;  %v1675_v39 = vld [vmem:[%s1994_s25 + $0x190] sm:$0xf] }
  0x8c   : > { %944 = vmatmul.bf16.gmra.mxu1 %v1528_v23  ;;  %1024 = vmatmul.bf16.gmra.mxu3 %v1656_v41  ;;  %v1846_v41 = vld [vmem:[%s1994_s25 + $0x194] sm:$0xf]  ;;  %v1676_v44 = vor.u32 %v1847_v40, %v1675_v39 }
  0x8d   : > { %v1850_v39 = vld [vmem:[%s1994_s25 + $0x1b4] sm:$0xf] }
  0x9b   : > { %780 = vmatmul.bf16.gmra.mxu0 %v1532_v34  ;;  %860 = vmatmul.bf16.gmra.mxu2 %v1660_v54 }
  0x9c   : > { %949 = vmatmul.bf16.gmra.mxu1 %v1536_v35  ;;  %1029 = vmatmul.bf16.gmra.mxu3 %v1664_v56  ;;  %v1819_v56 = vld [vmem:[%s1994_s25 + $0xb4] sm:$0xf0] }
  0xa8   : > { %v746_v48 = vpop.f32.mrf.mxu0 }
  0xa9   : > { %v915_v49 = vpop.f32.mrf.mxu1 }
  0xaa   : > { %v916_v50 = vadd.f32 %v915_v49, %v746_v48 }
  0xab   : > { %785 = vmatmul.bf16.gmra.mxu0 %v1540_v46  ;;  %865 = vmatmul.bf16.gmra.mxu2 %v1668_v14  ;;  %v1680_v46 = vor.u32 %v1846_v41, %v1677_v45 }
  0xac   : > { %1075 = vst [vmem:[%s2071_s7] sm:$0xff] %v916_v50  ;;  %954 = vmatmul.bf16.gmra.mxu1 %v1544_v47  ;;  %v1208_v60 = vmul.f32 %v916_v50, %v916_v50  ;;  %1034 = vmatmul.bf16.gmra.mxu3 %v1672_v16 }
  0xae   : > { %v826_v21 = vpop.f32.mrf.mxu2 }
  0xaf   : > { %v995_v22 = vpop.f32.mrf.mxu3 }
  0xb0   : > { %v748_v57 = vpop.f32.mrf.mxu0  ;;  %v2093_v30 = vadd.f32 %v995_v22, %v826_v21  ;;  %v1571_v21 = vld [vmem:[%s1994_s25 + $0xc0] sm:$0xf]  ;;  %v1821_v22 = vld [vmem:[%s1994_s25 + $0xc4] sm:$0xf0] }
  0xb1   : > { %v917_v58 = vpop.f32.mrf.mxu1  ;;  %v1572_v27 = vor.u32 %v1821_v22, %v1571_v21  ;;  %v1587_v21 = vld [vmem:[%s1994_s25 + $0xe0] sm:$0xf]  ;;  %v1825_v22 = vld [vmem:[%s1994_s25 + $0xe4] sm:$0xf0] }
  0xb2   : > { %v918_v59 = vadd.f32 %v917_v58, %v748_v57  ;;  %1107 = vst [vmem:[%s2071_s7 + $0x100] sm:$0xff] %v2093_v30  ;;  %v1818_v57 = vld [vmem:[%s1994_s25 + $0xb4] sm:$0xf]  ;;  %v1565_v58 = vld [vmem:[%s1994_s25 + $0xb8] sm:$0xf0] }
  0xb4   : > { %1076 = vst [vmem:[%s2071_s7 + $0x8] sm:$0xff] %v918_v59  ;;  %v1139_v61 = vadd.f32 %v918_v59, %v916_v50  ;;  %v1209_v62 = vmul.f32 %v918_v59, %v918_v59 }
  0xb6   : > { %v1272_v3 = vadd.f32 %v1209_v62, %v1208_v60  ;;  %v828_v36 = vpop.f32.mrf.mxu2  ;;  %v1568_v62 = vor.u32 %v1818_v57, %v1565_v58 }
  0xb7   : > { %v997_v37 = vpop.f32.mrf.mxu3 }
  0xb8   : > { %v751_v6 = vpop.f32.mrf.mxu0  ;;  %v2097_v38 = vadd.f32 %v997_v37, %v828_v36  ;;  %v1691_v36 = vld [vmem:[%s1994_s25 + $0x1b0] sm:$0xf]  ;;  %v1851_v37 = vld [vmem:[%s1994_s25 + $0x1b4] sm:$0xf0] }
  0xb9   : > { %v920_v7 = vpop.f32.mrf.mxu1 }
  0xba   : > { %v921_v8 = vadd.f32 %v920_v7, %v751_v6  ;;  %1108 = vst [vmem:[%s2071_s7 + $0x108] sm:$0xff] %v2097_v38  ;;  %v1849_v6 = vld [vmem:[%s1994_s25 + $0x1a4] sm:$0xf0]  ;;  %v1848_v7 = vld [vmem:[%s1994_s25 + $0x1a4] sm:$0xf] }
  0xbb   : > { %790 = vmatmul.bf16.gmra.mxu0 %v1548_v4  ;;  %870 = vmatmul.bf16.gmra.mxu2 %v1676_v44 }
  0xbc   : > { %1077 = vst [vmem:[%s2071_s7 + $0x10] sm:$0xff] %v921_v8  ;;  %v1140_v12 = vadd.f32 %v1139_v61, %v921_v8  ;;  %v1210_v13 = vmul.f32 %v921_v8, %v921_v8  ;;  %959 = vmatmul.bf16.gmra.mxu1 %v1552_v5  ;;  %1039 = vmatmul.bf16.gmra.mxu3 %v1680_v46  ;;  %v1683_v5 = vld [vmem:[%s1994_s25 + $0x1a0] sm:$0xf] }
  0xbd   : > { %v1564_v61 = vor.u32 %v1819_v56, %v1563_v55  ;;  %v1684_v10 = vor.u32 %v1849_v6, %v1683_v5  ;;  %v1822_v55 = vld [vmem:[%s1994_s25 + $0xd4] sm:$0xf]  ;;  %v1581_v56 = vld [vmem:[%s1994_s25 + $0xd8] sm:$0xf0]  ;;  %v1699_v5 = vld [vmem:[%s1994_s25 + $0x1c0] sm:$0xf] }
  0xbe   : > { %v1273_v17 = vadd.f32 %v1272_v3, %v1210_v13  ;;  %v831_v51 = vpop.f32.mrf.mxu2  ;;  %v1853_v6 = vld [vmem:[%s1994_s25 + $0x1c4] sm:$0xf0] }
  0xbf   : > { %v1000_v52 = vpop.f32.mrf.mxu3 }
  0xc0   : > { %v753_v18 = vpop.f32.mrf.mxu0  ;;  %v2111_v60 = vadd.f32 %v1000_v52, %v831_v51 }
  0xc1   : > { %v922_v19 = vpop.f32.mrf.mxu1 }
  0xc2   : > { %v923_v20 = vadd.f32 %v922_v19, %v753_v18  ;;  %1109 = vst [vmem:[%s2071_s7 + $0x110] sm:$0xff] %v2111_v60 }
  0xc4   : > { %1078 = vst [vmem:[%s2071_s7 + $0x18] sm:$0xff] %v923_v20  ;;  %v1141_v23 = vadd.f32 %v1140_v12, %v923_v20  ;;  %v1211_v24 = vmul.f32 %v923_v20, %v923_v20  ;;  %v1688_v12 = vor.u32 %v1848_v7, %v1685_v11  ;;  %v1852_v7 = vld [vmem:[%s1994_s25 + $0x1c4] sm:$0xf]  ;;  %v1701_v11 = vld [vmem:[%s1994_s25 + $0x1c8] sm:$0xf0] }
  0xc6   : > { %v1274_v29 = vadd.f32 %v1273_v17, %v1211_v24  ;;  %v833_v2 = vpop.f32.mrf.mxu2  ;;  %v1573_v24 = vld [vmem:[%s1994_s25 + $0xc8] sm:$0xf0] }
  0xc7   : > { %v1002_v3 = vpop.f32.mrf.mxu3 }
  0xc8   : > { %v756_v33 = vpop.f32.mrf.mxu0  ;;  %v2115_v4 = vadd.f32 %v1002_v3, %v833_v2 }
  0xc9   : > { %v925_v34 = vpop.f32.mrf.mxu1 }
  0xca   : > { %v926_v35 = vadd.f32 %v925_v34, %v756_v33  ;;  %1110 = vst [vmem:[%s2071_s7 + $0x118] sm:$0xff] %v2115_v4 }
  0xcb   : > { %795 = vmatmul.bf16.gmra.mxu0 %v1556_v31  ;;  %875 = vmatmul.bf16.gmra.mxu2 %v1684_v10  ;;  %v1700_v10 = vor.u32 %v1853_v6, %v1699_v5 }
  0xcc   : > { %1079 = vst [vmem:[%s2071_s7 + $0x20] sm:$0xff] %v926_v35  ;;  %v1142_v42 = vadd.f32 %v1141_v23, %v926_v35  ;;  %v1212_v43 = vmul.f32 %v926_v35, %v926_v35  ;;  %964 = vmatmul.bf16.gmra.mxu1 %v1560_v32  ;;  %1044 = vmatmul.bf16.gmra.mxu3 %v1688_v12  ;;  %v1820_v23 = vld [vmem:[%s1994_s25 + $0xc4] sm:$0xf] }
  0xcd   : > { %v1576_v28 = vor.u32 %v1820_v23, %v1573_v24  ;;  %v1704_v12 = vor.u32 %v1852_v7, %v1701_v11  ;;  %v1824_v23 = vld [vmem:[%s1994_s25 + $0xe4] sm:$0xf]  ;;  %v1589_v24 = vld [vmem:[%s1994_s25 + $0xe8] sm:$0xf0] }
  0xce   : > { %v1275_v47 = vadd.f32 %v1274_v29, %v1212_v43  ;;  %v836_v17 = vpop.f32.mrf.mxu2  ;;  %v1693_v43 = vld [vmem:[%s1994_s25 + $0x1b8] sm:$0xf0]  ;;  %v1856_v11 = vld [vmem:[%s1994_s25 + $0x1e4] sm:$0xf] }
  0xcf   : > { %v1005_v18 = vpop.f32.mrf.mxu3  ;;  %v1696_v44 = vor.u32 %v1850_v39, %v1693_v43  ;;  %v1707_v39 = vld [vmem:[%s1994_s25 + $0x1d0] sm:$0xf] }
  0xd0   : > { %v758_v48 = vpop.f32.mrf.mxu0  ;;  %v2129_v26 = vadd.f32 %v1005_v18, %v836_v17 }
  0xd1   : > { %v927_v49 = vpop.f32.mrf.mxu1 }
  0xd2   : > { %v928_v50 = vadd.f32 %v927_v49, %v758_v48  ;;  %1111 = vst [vmem:[%s2071_s7 + $0x120] sm:$0xff] %v2129_v26 }
  0xd4   : > { %1080 = vst [vmem:[%s2071_s7 + $0x28] sm:$0xff] %v928_v50  ;;  %v1143_v53 = vadd.f32 %v1142_v42, %v928_v50  ;;  %v1213_v54 = vmul.f32 %v928_v50, %v928_v50  ;;  %v1692_v42 = vor.u32 %v1851_v37, %v1691_v36 }
  0xd6   : > { %v1276_v59 = vadd.f32 %v1275_v47, %v1213_v54  ;;  %v838_v33 = vpop.f32.mrf.mxu2  ;;  %v1823_v54 = vld [vmem:[%s1994_s25 + $0xd4] sm:$0xf0] }
  0xd7   : > { %v1007_v34 = vpop.f32.mrf.mxu3 }
  0xd8   : > { %v761_v63 = vpop.f32.mrf.mxu0  ;;  %v2133_v35 = vadd.f32 %v1007_v34, %v838_v33 }
  0xd9   : > { %v930_v0 = vpop.f32.mrf.mxu1 }
  0xda   : > { %v931_v1 = vadd.f32 %v930_v0, %v761_v63  ;;  %1112 = vst [vmem:[%s2071_s7 + $0x128] sm:$0xff] %v2133_v35 }
  0xdb   : > { %800 = vmatmul.bf16.gmra.mxu0 %v1564_v61  ;;  %880 = vmatmul.bf16.gmra.mxu2 %v1692_v42  ;;  %v1584_v61 = vor.u32 %v1822_v55, %v1581_v56  ;;  %v1595_v55 = vld [vmem:[%s1994_s25 + $0xf0] sm:$0xf]  ;;  %v1827_v56 = vld [vmem:[%s1994_s25 + $0xf4] sm:$0xf0] }
  0xdc   : > { %1081 = vst [vmem:[%s2071_s7 + $0x30] sm:$0xff] %v931_v1  ;;  %v1144_v8 = vadd.f32 %v1143_v53, %v931_v1  ;;  %v1214_v9 = vmul.f32 %v931_v1, %v931_v1  ;;  %969 = vmatmul.bf16.gmra.mxu1 %v1568_v62  ;;  %1049 = vmatmul.bf16.gmra.mxu3 %v1696_v44  ;;  %v1579_v53 = vld [vmem:[%s1994_s25 + $0xd0] sm:$0xf] }
  0xde   : > { %v1277_v13 = vadd.f32 %v1276_v59, %v1214_v9  ;;  %v841_v49 = vpop.f32.mrf.mxu2  ;;  %v1580_v59 = vor.u32 %v1823_v54, %v1579_v53 }
  0xdf   : > { %v1010_v50 = vpop.f32.mrf.mxu3 }
  0xe0   : > { %v763_v14 = vpop.f32.mrf.mxu0  ;;  %v2147_v58 = vadd.f32 %v1010_v50, %v841_v49 }
  0xe1   : > { %v932_v15 = vpop.f32.mrf.mxu1 }
  0xe2   : > { %v933_v16 = vadd.f32 %v932_v15, %v763_v14  ;;  %1113 = vst [vmem:[%s2071_s7 + $0x130] sm:$0xff] %v2147_v58 }
  0xe4   : > { %1082 = vst [vmem:[%s2071_s7 + $0x38] sm:$0xff] %v933_v16  ;;  %v1145_v19 = vadd.f32 %v1144_v8, %v933_v16  ;;  %v1215_v20 = vmul.f32 %v933_v16, %v933_v16 }
  0xe6   : > { %v1278_v25 = vadd.f32 %v1277_v13, %v1215_v20  ;;  %v843_v1 = vpop.f32.mrf.mxu2 }
  0xe7   : > { %v1012_v2 = vpop.f32.mrf.mxu3 }
  0xe8   : > { %v766_v29 = vpop.f32.mrf.mxu0  ;;  %v2151_v3 = vadd.f32 %v1012_v2, %v843_v1 }
  0xe9   : > { %v935_v31 = vpop.f32.mrf.mxu1 }
  0xea   : > { %v936_v32 = vadd.f32 %v935_v31, %v766_v29  ;;  %1114 = vst [vmem:[%s2071_s7 + $0x138] sm:$0xff] %v2151_v3  ;;  %v1592_v29 = vor.u32 %v1824_v23, %v1589_v24 }
  0xeb   : > { %805 = vmatmul.bf16.gmra.mxu0 %v1572_v27  ;;  %885 = vmatmul.bf16.gmra.mxu2 %v1700_v10  ;;  %v1857_v10 = vld [vmem:[%s1994_s25 + $0x1e4] sm:$0xf0] }
  0xec   : > { %1083 = vst [vmem:[%s2071_s7 + $0x40] sm:$0xff] %v936_v32  ;;  %v1146_v40 = vadd.f32 %v1145_v19, %v936_v32  ;;  %v1216_v41 = vmul.f32 %v936_v32, %v936_v32  ;;  %974 = vmatmul.bf16.gmra.mxu1 %v1576_v28  ;;  %1054 = vmatmul.bf16.gmra.mxu3 %v1704_v12 }
  0xed   : > { %v1588_v28 = vor.u32 %v1825_v22, %v1587_v21 }
  0xee   : > { %v1279_v45 = vadd.f32 %v1278_v25, %v1216_v41  ;;  %v846_v17 = vpop.f32.mrf.mxu2  ;;  %v1854_v41 = vld [vmem:[%s1994_s25 + $0x1d4] sm:$0xf] }
  0xef   : > { %v1015_v18 = vpop.f32.mrf.mxu3 }
  0xf0   : > { %v768_v46 = vpop.f32.mrf.mxu0  ;;  %v2165_v27 = vadd.f32 %v1015_v18, %v846_v17 }
  0xf1   : > { %v937_v47 = vpop.f32.mrf.mxu1 }
  0xf2   : > { %v938_v48 = vadd.f32 %v937_v47, %v768_v46  ;;  %1115 = vst [vmem:[%s2071_s7 + $0x140] sm:$0xff] %v2165_v27 }
  0xf4   : > { %1084 = vst [vmem:[%s2071_s7 + $0x48] sm:$0xff] %v938_v48  ;;  %v1147_v51 = vadd.f32 %v1146_v40, %v938_v48  ;;  %v1217_v52 = vmul.f32 %v938_v48, %v938_v48  ;;  %v1855_v40 = vld [vmem:[%s1994_s25 + $0x1d4] sm:$0xf0] }
  0xf5   : > { %v1708_v44 = vor.u32 %v1855_v40, %v1707_v39  ;;  %v1723_v39 = vld [vmem:[%s1994_s25 + $0x1f0] sm:$0xf]  ;;  %v1859_v40 = vld [vmem:[%s1994_s25 + $0x1f4] sm:$0xf0] }
  0xf6   : > { %v1280_v57 = vadd.f32 %v1279_v45, %v1217_v52  ;;  %v848_v34 = vpop.f32.mrf.mxu2  ;;  %v1709_v45 = vld [vmem:[%s1994_s25 + $0x1d8] sm:$0xf0] }
  0xf7   : > { %v1017_v36 = vpop.f32.mrf.mxu3  ;;  %v1712_v46 = vor.u32 %v1854_v41, %v1709_v45  ;;  %v1858_v41 = vld [vmem:[%s1994_s25 + $0x1f4] sm:$0xf]  ;;  %v1725_v45 = vld [vmem:[%s1994_s25 + $0x1f8] sm:$0xf0] }
  0xf8   : > { %v771_v62 = vpop.f32.mrf.mxu0  ;;  %v2169_v37 = vadd.f32 %v1017_v36, %v848_v34 }
  0xf9   : > { %v940_v63 = vpop.f32.mrf.mxu1 }
  0xfa   : > { %v941_v0 = vadd.f32 %v940_v63, %v771_v62  ;;  %1116 = vst [vmem:[%s2071_s7 + $0x148] sm:$0xff] %v2169_v37  ;;  %v1596_v63 = vor.u32 %v1827_v56, %v1595_v55 }
  0xfb   : > { %810 = vmatmul.bf16.gmra.mxu0 %v1580_v59  ;;  %890 = vmatmul.bf16.gmra.mxu2 %v1708_v44  ;;  %v1597_v59 = vld [vmem:[%s1994_s25 + $0xf8] sm:$0xf0]  ;;  %v1724_v44 = vor.u32 %v1859_v40, %v1723_v39 }
  0xfc   : > { %1085 = vst [vmem:[%s2071_s7 + $0x50] sm:$0xff] %v941_v0  ;;  %v1148_v8 = vadd.f32 %v1147_v51, %v941_v0  ;;  %v1218_v9 = vmul.f32 %v941_v0, %v941_v0  ;;  %979 = vmatmul.bf16.gmra.mxu1 %v1584_v61  ;;  %1059 = vmatmul.bf16.gmra.mxu3 %v1712_v46 }
  0xfd   : > { %v1728_v46 = vor.u32 %v1858_v41, %v1725_v45 }
  0xfe   : > { %v1281_v13 = vadd.f32 %v1280_v57, %v1218_v9  ;;  %v851_v51 = vpop.f32.mrf.mxu2  ;;  %v1826_v57 = vld [vmem:[%s1994_s25 + $0xf4] sm:$0xf]  ;;  %v1715_v9 = vld [vmem:[%s1994_s25 + $0x1e0] sm:$0xf] }
  0xff   : > { %v1020_v52 = vpop.f32.mrf.mxu3  ;;  %v1600_v0 = vor.u32 %v1826_v57, %v1597_v59 }
 0x100   : > { %v773_v14 = vpop.f32.mrf.mxu0  ;;  %v2183_v62 = vadd.f32 %v1020_v52, %v851_v51 }
 0x101   : > { %v942_v15 = vpop.f32.mrf.mxu1 }
 0x102   : > { %v943_v16 = vadd.f32 %v942_v15, %v773_v14  ;;  %1117 = vst [vmem:[%s2071_s7 + $0x150] sm:$0xff] %v2183_v62  ;;  %v1716_v14 = vor.u32 %v1857_v10, %v1715_v9  ;;  %v1717_v15 = vld [vmem:[%s1994_s25 + $0x1e8] sm:$0xf0] }
 0x104   : > { %1086 = vst [vmem:[%s2071_s7 + $0x58] sm:$0xff] %v943_v16  ;;  %v1149_v19 = vadd.f32 %v1148_v8, %v943_v16  ;;  %v1219_v20 = vmul.f32 %v943_v16, %v943_v16  ;;  %v1720_v16 = vor.u32 %v1856_v11, %v1717_v15 }
 0x106   : > { %v1282_v25 = vadd.f32 %v1281_v13, %v1219_v20  ;;  %v853_v6 = vpop.f32.mrf.mxu2 }
 0x107   : > { %v1022_v7 = vpop.f32.mrf.mxu3 }
 0x108   : > { %v776_v31 = vpop.f32.mrf.mxu0  ;;  %v2187_v8 = vadd.f32 %v1022_v7, %v853_v6 }
 0x109   : > { %v945_v32 = vpop.f32.mrf.mxu1 }
 0x10a   : > { %v946_v33 = vadd.f32 %v945_v32, %v776_v31  ;;  %1118 = vst [vmem:[%s2071_s7 + $0x158] sm:$0xff] %v2187_v8 }
 0x10b   : > { %815 = vmatmul.bf16.gmra.mxu0 %v1588_v28  ;;  %895 = vmatmul.bf16.gmra.mxu2 %v1716_v14 }
 0x10c   : > { %1087 = vst [vmem:[%s2071_s7 + $0x60] sm:$0xff] %v946_v33  ;;  %v1150_v42 = vadd.f32 %v1149_v19, %v946_v33  ;;  %v1220_v43 = vmul.f32 %v946_v33, %v946_v33  ;;  %984 = vmatmul.bf16.gmra.mxu1 %v1592_v29  ;;  %1064 = vmatmul.bf16.gmra.mxu3 %v1720_v16 }
 0x10e   : > { %v1283_v47 = vadd.f32 %v1282_v25, %v1220_v43  ;;  %v856_v21 = vpop.f32.mrf.mxu2 }
 0x10f   : > { %v1025_v22 = vpop.f32.mrf.mxu3 }
 0x110   : > { %v778_v48 = vpop.f32.mrf.mxu0  ;;  %v2197_v28 = vadd.f32 %v1025_v22, %v856_v21 }
 0x111   : > { %v947_v49 = vpop.f32.mrf.mxu1 }
 0x112   : > { %v948_v50 = vadd.f32 %v947_v49, %v778_v48  ;;  %1119 = vst [vmem:[%s2071_s7 + $0x160] sm:$0xff] %v2197_v28 }
 0x114   : > { %1088 = vst [vmem:[%s2071_s7 + $0x68] sm:$0xff] %v948_v50  ;;  %v1151_v53 = vadd.f32 %v1150_v42, %v948_v50  ;;  %v1221_v54 = vmul.f32 %v948_v50, %v948_v50 }
 0x116   : > { %v1284_v61 = vadd.f32 %v1283_v47, %v1221_v54  ;;  %v858_v33 = vpop.f32.mrf.mxu2 }
 0x117   : > { %v1027_v34 = vpop.f32.mrf.mxu3 }
 0x118   : > { %v781_v1 = vpop.f32.mrf.mxu0  ;;  %v2201_v36 = vadd.f32 %v1027_v34, %v858_v33 }
 0x119   : > { %v950_v2 = vpop.f32.mrf.mxu1 }
 0x11a   : > { %v951_v5 = vadd.f32 %v950_v2, %v781_v1  ;;  %1120 = vst [vmem:[%s2071_s7 + $0x168] sm:$0xff] %v2201_v36 }
 0x11b   : > { %820 = vmatmul.bf16.gmra.mxu0 %v1596_v63  ;;  %900 = vmatmul.bf16.gmra.mxu2 %v1724_v44 }
 0x11c   : > { %1089 = vst [vmem:[%s2071_s7 + $0x70] sm:$0xff] %v951_v5  ;;  %v1152_v12 = vadd.f32 %v1151_v53, %v951_v5  ;;  %v1222_v13 = vmul.f32 %v951_v5, %v951_v5  ;;  %989 = vmatmul.bf16.gmra.mxu1 %v1600_v0  ;;  %1069 = vmatmul.bf16.gmra.mxu3 %v1728_v46 }
 0x11e   : > { %v1285_v17 = vadd.f32 %v1284_v61, %v1222_v13  ;;  %v861_v51 = vpop.f32.mrf.mxu2 }
 0x11f   : > { %v1030_v52 = vpop.f32.mrf.mxu3 }
 0x120   : > { %v783_v18 = vpop.f32.mrf.mxu0  ;;  %v2211_v56 = vadd.f32 %v1030_v52, %v861_v51 }
 0x121   : > { %v952_v19 = vpop.f32.mrf.mxu1 }
 0x122   : > { %v953_v20 = vadd.f32 %v952_v19, %v783_v18  ;;  %1121 = vst [vmem:[%s2071_s7 + $0x170] sm:$0xff] %v2211_v56 }
 0x124   : > { %1090 = vst [vmem:[%s2071_s7 + $0x78] sm:$0xff] %v953_v20  ;;  %v1153_v23 = vadd.f32 %v1152_v12, %v953_v20  ;;  %v1223_v24 = vmul.f32 %v953_v20, %v953_v20 }
 0x126   : > { %v1286_v25 = vadd.f32 %v1285_v17, %v1223_v24  ;;  %v863_v63 = vpop.f32.mrf.mxu2 }
 0x127   : > { %v1032_v0 = vpop.f32.mrf.mxu3 }
 0x128   : > { %v786_v29 = vpop.f32.mrf.mxu0  ;;  %v2215_v1 = vadd.f32 %v1032_v0, %v863_v63 }
 0x129   : > { %v955_v31 = vpop.f32.mrf.mxu1 }
 0x12a   : > { %v956_v32 = vadd.f32 %v955_v31, %v786_v29  ;;  %1122 = vst [vmem:[%s2071_s7 + $0x178] sm:$0xff] %v2215_v1 }
 0x12c   : > { %1091 = vst [vmem:[%s2071_s7 + $0x80] sm:$0xff] %v956_v32  ;;  %v1154_v42 = vadd.f32 %v1153_v23, %v956_v32  ;;  %v1224_v43 = vmul.f32 %v956_v32, %v956_v32 }
 0x12e   : > { %v1287_v47 = vadd.f32 %v1286_v25, %v1224_v43  ;;  %v866_v11 = vpop.f32.mrf.mxu2 }
 0x12f   : > { %v1035_v12 = vpop.f32.mrf.mxu3 }
 0x130   : > { %v788_v48 = vpop.f32.mrf.mxu0  ;;  %v2221_v16 = vadd.f32 %v1035_v12, %v866_v11 }
 0x131   : > { %v957_v49 = vpop.f32.mrf.mxu1 }
 0x132   : > { %v958_v50 = vadd.f32 %v957_v49, %v788_v48  ;;  %1123 = vst [vmem:[%s2071_s7 + $0x180] sm:$0xff] %v2221_v16 }
 0x134   : > { %1092 = vst [vmem:[%s2071_s7 + $0x88] sm:$0xff] %v958_v50  ;;  %v1155_v53 = vadd.f32 %v1154_v42, %v958_v50  ;;  %v1225_v54 = vmul.f32 %v958_v50, %v958_v50 }
 0x136   : > { %v1288_v55 = vadd.f32 %v1287_v47, %v1225_v54  ;;  %v868_v20 = vpop.f32.mrf.mxu2 }
 0x137   : > { %v1037_v21 = vpop.f32.mrf.mxu3 }
 0x138   : > { %v791_v57 = vpop.f32.mrf.mxu0  ;;  %v2225_v22 = vadd.f32 %v1037_v21, %v868_v20 }
 0x139   : > { %v960_v59 = vpop.f32.mrf.mxu1 }
 0x13a   : > { %v961_v61 = vadd.f32 %v960_v59, %v791_v57  ;;  %1124 = vst [vmem:[%s2071_s7 + $0x188] sm:$0xff] %v2225_v22 }
 0x13c   : > { %1093 = vst [vmem:[%s2071_s7 + $0x90] sm:$0xff] %v961_v61  ;;  %v1156_v2 = vadd.f32 %v1155_v53, %v961_v61  ;;  %v1226_v5 = vmul.f32 %v961_v61, %v961_v61 }
 0x13e   : > { %v1289_v6 = vadd.f32 %v1288_v55, %v1226_v5  ;;  %v871_v33 = vpop.f32.mrf.mxu2 }
 0x13f   : > { %v1040_v34 = vpop.f32.mrf.mxu3 }
 0x140   : > { %v793_v7 = vpop.f32.mrf.mxu0  ;;  %v2238_v39 = vadd.f32 %v1040_v34, %v871_v33 }
 0x141   : > { %v962_v9 = vpop.f32.mrf.mxu1 }
 0x142   : > { %v963_v10 = vadd.f32 %v962_v9, %v793_v7  ;;  %1125 = vst [vmem:[%s2071_s7 + $0x190] sm:$0xff] %v2238_v39 }
 0x144   : > { %1094 = vst [vmem:[%s2071_s7 + $0x98] sm:$0xff] %v963_v10  ;;  %v1157_v13 = vadd.f32 %v1156_v2, %v963_v10  ;;  %v1227_v14 = vmul.f32 %v963_v10, %v963_v10 }
 0x146   : > { %v1290_v15 = vadd.f32 %v1289_v6, %v1227_v14  ;;  %v873_v43 = vpop.f32.mrf.mxu2 }
 0x147   : > { %v1042_v44 = vpop.f32.mrf.mxu3 }
 0x148   : > { %v796_v17 = vpop.f32.mrf.mxu0  ;;  %v2242_v45 = vadd.f32 %v1042_v44, %v873_v43 }
 0x149   : > { %v965_v18 = vpop.f32.mrf.mxu1 }
 0x14a   : > { %v966_v19 = vadd.f32 %v965_v18, %v796_v17  ;;  %1126 = vst [vmem:[%s2071_s7 + $0x198] sm:$0xff] %v2242_v45 }
 0x14c   : > { %1095 = vst [vmem:[%s2071_s7 + $0xa0] sm:$0xff] %v966_v19  ;;  %v2228_v23 = vadd.f32 %v1157_v13, %v966_v19  ;;  %v1228_v24 = vmul.f32 %v966_v19, %v966_v19 }
 0x14e   : > { %v2232_v25 = vadd.f32 %v1290_v15, %v1228_v24  ;;  %v876_v49 = vpop.f32.mrf.mxu2 }
 0x14f   : > { %v1045_v50 = vpop.f32.mrf.mxu3 }
 0x150   : > { %v798_v29 = vpop.f32.mrf.mxu0  ;;  %v2248_v51 = vadd.f32 %v1045_v50, %v876_v49 }
 0x151   : > { %v967_v31 = vpop.f32.mrf.mxu1 }
 0x152   : > { %v2234_v32 = vadd.f32 %v967_v31, %v798_v29  ;;  %1127 = vst [vmem:[%s2071_s7 + $0x1a0] sm:$0xff] %v2248_v51 }
 0x154   : > { %1096 = vst [vmem:[%s2071_s7 + $0xa8] sm:$0xff] %v2234_v32  ;;  %v1159_v43 = vadd.f32 %v2228_v23, %v2234_v32 }
 0x156   : > { %v878_v55 = vpop.f32.mrf.mxu2 }
 0x157   : > { %v1047_v57 = vpop.f32.mrf.mxu3 }
 0x158   : > { %v801_v40 = vpop.f32.mrf.mxu0  ;;  %v2252_v59 = vadd.f32 %v1047_v57, %v878_v55 }
 0x159   : > { %v970_v41 = vpop.f32.mrf.mxu1 }
 0x15a   : > { %v971_v42 = vadd.f32 %v970_v41, %v801_v40  ;;  %1128 = vst [vmem:[%s2071_s7 + $0x1a8] sm:$0xff] %v2252_v59  ;;  %v1229_v40 = vmul.f32 %v2234_v32, %v2234_v32 }
 0x15c   : > { %1097 = vst [vmem:[%s2071_s7 + $0xb0] sm:$0xff] %v971_v42  ;;  %v1230_v41 = vmul.f32 %v971_v42, %v971_v42  ;;  %v1292_v44 = vadd.f32 %v2232_v25, %v1229_v40  ;;  %v1160_v50 = vadd.f32 %v1159_v43, %v971_v42 }
 0x15e   : > { %v881_v2 = vpop.f32.mrf.mxu2  ;;  %v1293_v57 = vadd.f32 %v1292_v44, %v1230_v41 }
 0x15f   : > { %v1050_v5 = vpop.f32.mrf.mxu3 }
 0x160   : > { %v803_v46 = vpop.f32.mrf.mxu0  ;;  %v2258_v6 = vadd.f32 %v1050_v5, %v881_v2 }
 0x161   : > { %v972_v47 = vpop.f32.mrf.mxu1 }
 0x162   : > { %v973_v48 = vadd.f32 %v972_v47, %v803_v46  ;;  %1129 = vst [vmem:[%s2071_s7 + $0x1b0] sm:$0xff] %v2258_v6 }
 0x164   : > { %1098 = vst [vmem:[%s2071_s7 + $0xb8] sm:$0xff] %v973_v48  ;;  %v1231_v46 = vmul.f32 %v973_v48, %v973_v48 }
 0x166   : > { %v883_v11 = vpop.f32.mrf.mxu2  ;;  %v1294_v2 = vadd.f32 %v1293_v57, %v1231_v46 }
 0x167   : > { %v1052_v12 = vpop.f32.mrf.mxu3 }
 0x168   : > { %v806_v52 = vpop.f32.mrf.mxu0  ;;  %v2262_v13 = vadd.f32 %v1052_v12, %v883_v11 }
 0x169   : > { %v975_v53 = vpop.f32.mrf.mxu1 }
 0x16a   : > { %v976_v54 = vadd.f32 %v975_v53, %v806_v52  ;;  %1130 = vst [vmem:[%s2071_s7 + $0x1b8] sm:$0xff] %v2262_v13 }
 0x16c   : > { %1099 = vst [vmem:[%s2071_s7 + $0xc0] sm:$0xff] %v976_v54 }
 0x16e   : > { %v886_v18 = vpop.f32.mrf.mxu2 }
 0x16f   : > { %v1055_v19 = vpop.f32.mrf.mxu3 }
 0x170   : > { %v808_v61 = vpop.f32.mrf.mxu0  ;;  %v2268_v29 = vadd.f32 %v1055_v19, %v886_v18 }
 0x171   : > { %v977_v63 = vpop.f32.mrf.mxu1 }
 0x172   : > { %v978_v0 = vadd.f32 %v977_v63, %v808_v61  ;;  %1131 = vst [vmem:[%s2071_s7 + $0x1c0] sm:$0xff] %v2268_v29  ;;  %v1232_v61 = vmul.f32 %v976_v54, %v976_v54  ;;  %v1161_v63 = vadd.f32 %v1160_v50, %v973_v48 }
 0x174   : > { %1100 = vst [vmem:[%s2071_s7 + $0xc8] sm:$0xff] %v978_v0  ;;  %v1233_v5 = vmul.f32 %v978_v0, %v978_v0 }
 0x176   : > { %v888_v31 = vpop.f32.mrf.mxu2 }
 0x177   : > { %v1057_v33 = vpop.f32.mrf.mxu3 }
 0x178   : > { %v811_v7 = vpop.f32.mrf.mxu0  ;;  %v2270_v34 = vadd.f32 %v1057_v33, %v888_v31 }
 0x179   : > { %v980_v9 = vpop.f32.mrf.mxu1 }
 0x17a   : > { %v981_v10 = vadd.f32 %v980_v9, %v811_v7  ;;  %1132 = vst [vmem:[%s2071_s7 + $0x1c8] sm:$0xff] %v2270_v34  ;;  %v1162_v7 = vadd.f32 %v1161_v63, %v976_v54  ;;  %v1295_v9 = vadd.f32 %v1294_v2, %v1232_v61  ;;  %v1241_v2 = vmul.f32 %v2097_v38, %v2097_v38 }
 0x17c   : > { %1101 = vst [vmem:[%s2071_s7 + $0xd0] sm:$0xff] %v981_v10  ;;  %v1163_v11 = vadd.f32 %v1162_v7, %v978_v0  ;;  %v1234_v23 = vmul.f32 %v981_v10, %v981_v10  ;;  %v1296_v25 = vadd.f32 %v1295_v9, %v1233_v5  ;;  %v1242_v9 = vmul.f32 %v2111_v60, %v2111_v60 }
 0x17e   : > { %v891_v53 = vpop.f32.mrf.mxu2  ;;  %v1164_v42 = vadd.f32 %v1163_v11, %v981_v10 }
 0x17f   : > { %v1060_v55 = vpop.f32.mrf.mxu3 }
 0x180   : > { %v813_v14 = vpop.f32.mrf.mxu0  ;;  %v2283_v18 = vadd.f32 %v1060_v55, %v891_v53 }
 0x181   : > { %v982_v15 = vpop.f32.mrf.mxu1 }
 0x182   : > { %v983_v17 = vadd.f32 %v982_v15, %v813_v14  ;;  %1133 = vst [vmem:[%s2071_s7 + $0x1d0] sm:$0xff] %v2283_v18 }
 0x184   : > { %1102 = vst [vmem:[%s2071_s7 + $0xd8] sm:$0xff] %v983_v17  ;;  %v1235_v14 = vmul.f32 %v983_v17, %v983_v17  ;;  %v1165_v54 = vadd.f32 %v1164_v42, %v983_v17 }
 0x186   : > { %v893_v19 = vpop.f32.mrf.mxu2 }
 0x187   : > { %v1062_v48 = vpop.f32.mrf.mxu3 }
 0x188   : > { %v816_v20 = vpop.f32.mrf.mxu0 }
 0x189   : > { %v985_v21 = vpop.f32.mrf.mxu1 }
 0x18a   : > { %v986_v24 = vadd.f32 %v985_v21, %v816_v20  ;;  %v2285_v20 = vadd.f32 %v1062_v48, %v893_v19  ;;  %v1297_v21 = vadd.f32 %v1296_v25, %v1234_v23  ;;  %v1245_v48 = vmul.f32 %v2133_v35, %v2133_v35 }
 0x18c   : > { %1103 = vst [vmem:[%s2071_s7 + $0xe0] sm:$0xff] %v986_v24  ;;  %v1236_v31 = vmul.f32 %v986_v24, %v986_v24  ;;  %v1298_v0 = vadd.f32 %v1297_v21, %v1235_v14  ;;  %v1166_v33 = vadd.f32 %v1165_v54, %v986_v24  ;;  %v1240_v24 = vmul.f32 %v2093_v30, %v2093_v30 }
 0x18d   : > { %1134 = vst [vmem:[%s2071_s7 + $0x1d8] sm:$0xff] %v2285_v20 }
 0x18e   : > { %v1299_v10 = vadd.f32 %v1298_v0, %v1236_v31  ;;  %v896_v53 = vpop.f32.mrf.mxu2 }
 0x18f   : > { %v1065_v17 = vpop.f32.mrf.mxu3 }
 0x190   : > { %v818_v47 = vpop.f32.mrf.mxu0  ;;  %v2302_v25 = vadd.f32 %v1065_v17, %v896_v53 }
 0x191   : > { %v987_v49 = vpop.f32.mrf.mxu1 }
 0x192   : > { %v988_v52 = vadd.f32 %v987_v49, %v818_v47  ;;  %1135 = vst [vmem:[%s2071_s7 + $0x1e0] sm:$0xff] %v2302_v25 }
 0x194   : > { %1104 = vst [vmem:[%s2071_s7 + $0xe8] sm:$0xff] %v988_v52  ;;  %v1237_v40 = vmul.f32 %v988_v52, %v988_v52  ;;  %v1167_v41 = vadd.f32 %v1166_v33, %v988_v52 }
 0x196   : > { %v1300_v47 = vadd.f32 %v1299_v10, %v1237_v40  ;;  %v1247_v10 = vmul.f32 %v2151_v3, %v2151_v3 }
 0x198   : > { %v821_v32 = vpop.f32.mrf.mxu0 }
 0x199   : > { %v990_v12 = vpop.f32.mrf.mxu1 }
 0x19a   : > { %v991_v15 = vadd.f32 %v990_v12, %v821_v32  ;;  %v898_v32 = vpop.f32.mrf.mxu2  ;;  %v1067_v12 = vpop.f32.mrf.mxu3 }
 0x19b   : > { %v2304_v42 = vadd.f32 %v1067_v12, %v898_v32 }
 0x19c   : > { %1105 = vst [vmem:[%s2071_s7 + $0xf0] sm:$0xff] %v991_v15  ;;  %v1238_v43 = vmul.f32 %v991_v15, %v991_v15  ;;  %v1168_v49 = vadd.f32 %v1167_v41, %v991_v15 }
 0x19d   : > { %1136 = vst [vmem:[%s2071_s7 + $0x1e8] sm:$0xff] %v2304_v42 }
 0x19e   : > { %v1301_v55 = vadd.f32 %v1300_v47, %v1238_v43  ;;  %v1248_v43 = vmul.f32 %v2165_v27, %v2165_v27 }
 0x1a0   : > { %v823_v44 = vpop.f32.mrf.mxu0 }
 0x1a1   : > { %v992_v46 = vpop.f32.mrf.mxu1 }
 0x1a2   : > { %v993_v50 = vadd.f32 %v992_v46, %v823_v44  ;;  %v901_v33 = vpop.f32.mrf.mxu2  ;;  %v1070_v40 = vpop.f32.mrf.mxu3 }
 0x1a3   : > { %v2334_v53 = vadd.f32 %v1070_v40, %v901_v33 }
 0x1a4   : > { %1106 = vst [vmem:[%s2071_s7 + $0xf8] sm:$0xff] %v993_v50  ;;  %v1169_v57 = vadd.f32 %v1168_v49, %v993_v50  ;;  %v1239_v61 = vmul.f32 %v993_v50, %v993_v50  ;;  %v1250_v49 = vmul.f32 %v2183_v62, %v2183_v62 }
 0x1a5   : > { %1137 = vst [vmem:[%s2071_s7 + $0x1f0] sm:$0xff] %v2334_v53 }
 0x1a6   : > { %v1170_v63 = vadd.f32 %v1169_v57, %v2093_v30  ;;  %v1302_v52 = vadd.f32 %v1301_v55, %v1239_v61  ;;  %v1243_v30 = vmul.f32 %v2115_v4, %v2115_v4 }
 0x1a8   : > { %v1171_v5 = vadd.f32 %v1170_v63, %v2097_v38  ;;  %v1303_v7 = vadd.f32 %v1302_v52, %v1240_v24  ;;  %v1244_v38 = vmul.f32 %v2129_v26, %v2129_v26  ;;  %v1253_v52 = vmul.f32 %v2201_v36, %v2201_v36 }
 0x1aa   : > { %v1172_v11 = vadd.f32 %v1171_v5, %v2111_v60  ;;  %v1304_v23 = vadd.f32 %v1303_v7, %v1241_v2  ;;  %v903_v17 = vpop.f32.mrf.mxu2  ;;  %v1072_v55 = vpop.f32.mrf.mxu3 }
 0x1ab   : > { %v2336_v57 = vadd.f32 %v1072_v55, %v903_v17  ;;  %v1269_v17 = vmul.f32 %v2304_v42, %v2304_v42 }
 0x1ac   : > { %v1173_v14 = vadd.f32 %v1172_v11, %v2115_v4  ;;  %v1305_v15 = vadd.f32 %v1304_v23, %v1242_v9  ;;  %v1246_v4 = vmul.f32 %v2147_v58, %v2147_v58  ;;  %v1255_v11 = vmul.f32 %v2215_v1, %v2215_v1 }
 0x1ad   : > { %1138 = vst [vmem:[%s2071_s7 + $0x1f8] sm:$0xff] %v2336_v57 }
 0x1ae   : > { %v1174_v60 = vadd.f32 %v1173_v14, %v2129_v26  ;;  %v1306_v19 = vadd.f32 %v1305_v15, %v1243_v30 }
 0x1b0   : > { %v1175_v21 = vadd.f32 %v1174_v60, %v2133_v35  ;;  %v1307_v54 = vadd.f32 %v1306_v19, %v1244_v38 }
 0x1b2   : > { %v1176_v31 = vadd.f32 %v1175_v21, %v2147_v58  ;;  %v1308_v0 = vadd.f32 %v1307_v54, %v1245_v48  ;;  %v1249_v58 = vmul.f32 %v2169_v37, %v2169_v37 }
 0x1b4   : > { %v1177_v26 = vadd.f32 %v1176_v31, %v2151_v3  ;;  %v1309_v41 = vadd.f32 %v1308_v0, %v1246_v4 }
 0x1b6   : > { %v1178_v35 = vadd.f32 %v1177_v26, %v2165_v27  ;;  %v1310_v44 = vadd.f32 %v1309_v41, %v1247_v10  ;;  %v1251_v27 = vmul.f32 %v2187_v8, %v2187_v8  ;;  %v1264_v26 = vmul.f32 %v2268_v29, %v2268_v29 }
 0x1b8   : > { %v1179_v46 = vadd.f32 %v1178_v35, %v2169_v37  ;;  %v1311_v47 = vadd.f32 %v1310_v44, %v1248_v43  ;;  %v1252_v37 = vmul.f32 %v2197_v28, %v2197_v28  ;;  %v1265_v35 = vmul.f32 %v2270_v34, %v2270_v34 }
 0x1ba   : > { %v1180_v3 = vadd.f32 %v1179_v46, %v2183_v62  ;;  %v1312_v50 = vadd.f32 %v1311_v47, %v1249_v58 }
 0x1bc   : > { %v1181_v61 = vadd.f32 %v1180_v3, %v2187_v8  ;;  %v1313_v24 = vadd.f32 %v1312_v50, %v1250_v49  ;;  %v1254_v8 = vmul.f32 %v2211_v56, %v2211_v56 }
 0x1be   : > { %v1314_v62 = vadd.f32 %v1313_v24, %v1251_v27  ;;  %v1182_v63 = vadd.f32 %v1181_v61, %v2197_v28  ;;  %v1256_v28 = vmul.f32 %v2221_v16, %v2221_v16  ;;  %v1270_v27 = vmul.f32 %v2334_v53, %v2334_v53 }
 0x1bf   : > { %v1271_v24 = vmul.f32 %v2336_v57, %v2336_v57 }
 0x1c0   : > { %v1183_v2 = vadd.f32 %v1182_v63, %v2201_v36  ;;  %v1315_v5 = vadd.f32 %v1314_v62, %v1252_v37  ;;  %v1257_v36 = vmul.f32 %v2225_v22, %v2225_v22 }
 0x1c2   : > { %v1184_v7 = vadd.f32 %v1183_v2, %v2211_v56  ;;  %v1316_v9 = vadd.f32 %v1315_v5, %v1253_v52  ;;  %v1258_v56 = vmul.f32 %v2238_v39, %v2238_v39 }
 0x1c4   : > { %v1185_v23 = vadd.f32 %v1184_v7, %v2215_v1  ;;  %v1317_v32 = vadd.f32 %v1316_v9, %v1254_v8  ;;  %v1259_v1 = vmul.f32 %v2242_v45, %v2242_v45 }
 0x1c6   : > { %v1186_v12 = vadd.f32 %v1185_v23, %v2221_v16  ;;  %v1318_v30 = vadd.f32 %v1317_v32, %v1255_v11  ;;  %v1260_v16 = vmul.f32 %v2248_v51, %v2248_v51 }
 0x1c8   : > { %v1187_v14 = vadd.f32 %v1186_v12, %v2225_v22  ;;  %v1319_v15 = vadd.f32 %v1318_v30, %v1256_v28  ;;  %v1261_v22 = vmul.f32 %v2252_v59, %v2252_v59 }
 0x1ca   : > { %v1188_v38 = vadd.f32 %v1187_v14, %v2238_v39  ;;  %v1320_v60 = vadd.f32 %v1319_v15, %v1257_v36  ;;  %v1262_v39 = vmul.f32 %v2258_v6, %v2258_v6 }
 0x1cc   : > { %v1189_v19 = vadd.f32 %v1188_v38, %v2242_v45  ;;  %v1321_v48 = vadd.f32 %v1320_v60, %v1258_v56  ;;  %v1263_v45 = vmul.f32 %v2262_v13, %v2262_v13 }
 0x1ce   : > { %v1190_v21 = vadd.f32 %v1189_v19, %v2248_v51  ;;  %v1322_v54 = vadd.f32 %v1321_v48, %v1259_v1 }
 0x1d0   : > { %v1191_v4 = vadd.f32 %v1190_v21, %v2252_v59  ;;  %v1323_v31 = vadd.f32 %v1322_v54, %v1260_v16 }
 0x1d2   : > { %v1192_v0 = vadd.f32 %v1191_v4, %v2258_v6  ;;  %v1324_v33 = vadd.f32 %v1323_v31, %v1261_v22 }
 0x1d4   : > { %v1193_v40 = vadd.f32 %v1192_v0, %v2262_v13  ;;  %v1325_v10 = vadd.f32 %v1324_v33, %v1262_v39  ;;  %v1266_v13 = vmul.f32 %v2283_v18, %v2283_v18 }
 0x1d6   : > { %v1194_v51 = vadd.f32 %v1193_v40, %v2268_v29  ;;  %v1326_v41 = vadd.f32 %v1325_v10, %v1263_v45  ;;  %v1267_v29 = vmul.f32 %v2285_v20, %v2285_v20 }
 0x1d8   : > { %v1327_v59 = vadd.f32 %v1326_v41, %v1264_v26  ;;  %v1195_v43 = vadd.f32 %v1194_v51, %v2270_v34  ;;  %v1268_v34 = vmul.f32 %v2302_v25, %v2302_v25 }
 0x1da   : > { %v1328_v6 = vadd.f32 %v1327_v59, %v1265_v35  ;;  %v1196_v44 = vadd.f32 %v1195_v43, %v2283_v18 }
 0x1dc   : > { %v1329_v58 = vadd.f32 %v1328_v6, %v1266_v13  ;;  %v1197_v46 = vadd.f32 %v1196_v44, %v2285_v20 }
 0x1de   : > { %v1330_v47 = vadd.f32 %v1329_v58, %v1267_v29  ;;  %v1198_v49 = vadd.f32 %v1197_v46, %v2302_v25 }
 0x1e0   : > { %v1331_v3 = vadd.f32 %v1330_v47, %v1268_v34  ;;  %v1199_v50 = vadd.f32 %v1198_v49, %v2304_v42 }
 0x1e2   : > { %v1332_v18 = vadd.f32 %v1331_v3, %v1269_v17  ;;  %v1200_v55 = vadd.f32 %v1199_v50, %v2334_v53 }
 0x1e4   : > { %v1333_v20 = vadd.f32 %v1332_v18, %v1270_v27  ;;  %v1201_v61 = vadd.f32 %v1200_v55, %v2336_v57 }
 0x1e6   : > { %v1202_v25 = vrot.slane %v1201_v61, 4  ;;  %v1334_v37 = vadd.f32 %v1333_v20, %v1271_v24 }
 0x1e8   : > { %v1203_v62 = vadd.f32 %v1202_v25, %v1201_v61  ;;  %v1335_v63 = vrot.slane %v1334_v37, 4 }
 0x1ea   : > { %v1204_v52 = vrot.slane %v1203_v62, 2  ;;  %v1336_v42 = vadd.f32 %v1335_v63, %v1334_v37 }
 0x1ec   : > { %v1205_v2 = vadd.f32 %v1204_v52, %v1203_v62  ;;  %v1337_v5 = vrot.slane %v1336_v42, 2 }
 0x1ee   : > { %v1206_v8 = vrot.slane %v1205_v2, 1  ;;  %v1338_v7 = vadd.f32 %v1337_v5, %v1336_v42 }
 0x1f0   : > { %v1207_v53 = vadd.f32 %v1206_v8, %v1205_v2  ;;  %v1339_v9 = vrot.slane %v1338_v7, 1 }
 0x1f2   : > { %v1340_v57 = vadd.f32 %v1339_v9, %v1338_v7  ;;  %1341 = vst [vmem:[%s220_s10] sm:$0xff] %v1207_v53 }
 0x1f4   : > { %1342 = vst [vmem:[%s224_s13] sm:$0xff] %v1340_v57 }
 0x1f5 PF: > { %s15_s15 = sadd.s32 1, %s1906_s15  }
 0x1f6   : > { %p12_p5 = scmp.ge.s32.totalorder %s15_s15, 4  }
 0x1f8   :  { %14 = sbr.rel (!%p12_p5) target bundleno = 1 (0x1), region = 82 }

// kernel: double_conv.7
= control target key start
LH: loop header
LB: loop body
LE: loop exit
PB: predicated region body
PF: predicated region fallthrough
CT: control target
= control target key end

     0   :  { %s735_s12 = smov 0   ;;  %s1027_s0 = inlined_call_operand.vmem [shape: f32[1024,128], index: 0, kind: input, shape index: {}]   ;;  %s1028_s1 = inlined_call_operand.vmem [shape: f32[1,128], index: 1, kind: input, shape index: {}]   ;;  %s1029_s2 = inlined_call_operand.vmem [shape: f32[1,128], index: 2, kind: input, shape index: {}]   ;;  %s1030_s3 = inlined_call_operand.vmem [shape: f32[1024,128], index: 3, kind: output, shape index: {}]  }
   0x1 LB: > { %s686_s13 = sadd.s32 4294967295, %s713_s12   ;;  %p690_p0 = scmp.ge.s32.totalorder %s713_s12, 1  ;;  %s713_s12 = sphi %s735_s12, %s13_s12  }
   0x2   : > { %p138_p1 = scmp.lt.s32.totalorder %s713_s12, 3 }
   0x4   : > { %p139_p2 = pnand %p690_p0, %p138_p1 }
   0x5   : > { %s691_s14 = sshll.u32 (!%p139_p2), %s686_s13, 6 }
   0x6   : > { %142 = sbr.rel (%p139_p2) target bundleno = 100 (0x64), region = 32  ;;  %p163_p3 = scmp.lt.s32.totalorder (!%p139_p2), %s691_s14, 127 }
   0xb   : > { %s1032_s14 = smov (!%p163_p3, %s691_s14), 127  ;;  %v748_v0 = vld [vmem:[%s1028_s1] ss:$0 sm:$0xff] }
   0xc   : > { %s692_s17 = sshll.u32 %s1032_s14, 3  ;;  %v759_v1 = vld [vmem:[%s1029_s2] ss:$0 sm:$0xff] }
   0xd   : > { %s754_s20 = scalar_lea.vmem %s1027_s0, %s692_s17  ;;  %s787_s25 = scalar_lea.vmem %s1030_s3, %s692_s17 }
   0xe   : > { %v174_v2 = vld [vmem:[%s754_s20] sm:$0xff]  ;;  %v175_v3 = vld [vmem:[%s754_s20 + $0x8] sm:$0xff]  ;;  %v176_v4 = vld [vmem:[%s754_s20 + $0x10] sm:$0xff] }
   0xf   : > { %v242_v5 = vmul.f32 %v748_v0, %v174_v2  ;;  %v243_v6 = vmul.f32 %v748_v0, %v175_v3  ;;  %v244_v7 = vmul.f32 %v748_v0, %v176_v4  ;;  %v177_v8 = vld [vmem:[%s754_s20 + $0x18] sm:$0xff]  ;;  %v178_v9 = vld [vmem:[%s754_s20 + $0x20] sm:$0xff]  ;;  %v179_v10 = vld [vmem:[%s754_s20 + $0x28] sm:$0xff] }
  0x10   : > { %v245_v11 = vmul.f32 %v748_v0, %v177_v8  ;;  %v246_v12 = vmul.f32 %v748_v0, %v178_v9  ;;  %v247_v13 = vmul.f32 %v748_v0, %v179_v10  ;;  %v180_v14 = vld [vmem:[%s754_s20 + $0x30] sm:$0xff]  ;;  %v181_v15 = vld [vmem:[%s754_s20 + $0x38] sm:$0xff]  ;;  %v182_v24 = vld [vmem:[%s754_s20 + $0x40] sm:$0xff] }
  0x11   : > { %v310_v16 = vadd.f32 %v759_v1, %v242_v5  ;;  %v311_v17 = vadd.f32 %v759_v1, %v243_v6  ;;  %v312_v18 = vadd.f32 %v759_v1, %v244_v7  ;;  %v248_v19 = vmul.f32 %v748_v0, %v180_v14  ;;  %v183_v32 = vld [vmem:[%s754_s20 + $0x48] sm:$0xff]  ;;  %v184_v33 = vld [vmem:[%s754_s20 + $0x50] sm:$0xff]  ;;  %v185_v34 = vld [vmem:[%s754_s20 + $0x58] sm:$0xff] }
  0x12   : > { %v313_v20 = vadd.f32 %v759_v1, %v245_v11  ;;  %v314_v21 = vadd.f32 %v759_v1, %v246_v12  ;;  %v315_v22 = vadd.f32 %v759_v1, %v247_v13  ;;  %v249_v23 = vmul.f32 %v748_v0, %v181_v15  ;;  %v186_v46 = vld [vmem:[%s754_s20 + $0x60] sm:$0xff]  ;;  %v187_v53 = vld [vmem:[%s754_s20 + $0x68] sm:$0xff]  ;;  %v188_v57 = vld [vmem:[%s754_s20 + $0x70] sm:$0xff] }
  0x13   : > { %vm374_vm0 = vcmp.ge.f32.partialorder %v310_v16, 0.0  ;;  %v438_v25 = vmul.f32 0.2, %v310_v16  ;;  %vm375_vm1 = vcmp.ge.f32.partialorder %v311_v17, 0.0  ;;  %v439_v26 = vmul.f32 0.2, %v311_v17 }
  0x14   : > { %vm376_vm2 = vcmp.ge.f32.partialorder %v312_v18, 0.0  ;;  %v440_v27 = vmul.f32 0.2, %v312_v18  ;;  %vm377_vm3 = vcmp.ge.f32.partialorder %v313_v20, 0.0  ;;  %v441_v28 = vmul.f32 0.2, %v313_v20 }
  0x15   : > { %v502_v29 = vsel %vm374_vm0, %v310_v16, %v438_v25  ;;  %v503_v30 = vsel %vm375_vm1, %v311_v17, %v439_v26  ;;  %vm378_vm4 = vcmp.ge.f32.partialorder %v314_v21, 0.0  ;;  %v442_v31 = vmul.f32 0.2, %v314_v21  ;;  %v189_v58 = vld [vmem:[%s754_s20 + $0x78] sm:$0xff]  ;;  %v190_v61 = vld [vmem:[%s754_s20 + $0x80] sm:$0xff]  ;;  %v191_v7 = vld [vmem:[%s754_s20 + $0x88] sm:$0xff] }
  0x16   : > { %566 = vst [vmem:[%s787_s25] sm:$0xff] %v502_v29  ;;  %v504_v35 = vsel %vm376_vm2, %v312_v18, %v440_v27  ;;  %v505_v36 = vsel %vm377_vm3, %v313_v20, %v441_v28  ;;  %vm379_vm5 = vcmp.ge.f32.partialorder %v315_v22, 0.0  ;;  %v443_v37 = vmul.f32 0.2, %v315_v22  ;;  %v192_v8 = vld [vmem:[%s754_s20 + $0x90] sm:$0xff]  ;;  %v194_v29 = vld [vmem:[%s754_s20 + $0xa0] sm:$0xff] }
  0x17   : > { %567 = vst [vmem:[%s787_s25 + $0x8] sm:$0xff] %v503_v30  ;;  %v506_v38 = vsel %vm378_vm4, %v314_v21, %v442_v31  ;;  %v316_v39 = vadd.f32 %v759_v1, %v248_v19  ;;  %v317_v40 = vadd.f32 %v759_v1, %v249_v23  ;;  %v250_v41 = vmul.f32 %v748_v0, %v182_v24  ;;  %v195_v30 = vld [vmem:[%s754_s20 + $0xa8] sm:$0xff]  ;;  %v196_v31 = vld [vmem:[%s754_s20 + $0xb0] sm:$0xff] }
  0x18   : > { %568 = vst [vmem:[%s787_s25 + $0x10] sm:$0xff] %v504_v35  ;;  %v507_v42 = vsel %vm379_vm5, %v315_v22, %v443_v37  ;;  %v251_v43 = vmul.f32 %v748_v0, %v183_v32  ;;  %v252_v44 = vmul.f32 %v748_v0, %v184_v33  ;;  %v253_v45 = vmul.f32 %v748_v0, %v185_v34  ;;  %v193_v22 = vld [vmem:[%s754_s20 + $0x98] sm:$0xff] }
  0x19   : > { %569 = vst [vmem:[%s787_s25 + $0x18] sm:$0xff] %v505_v36  ;;  %vm380_vm6 = vcmp.ge.f32.partialorder %v316_v39, 0.0  ;;  %v444_v47 = vmul.f32 0.2, %v316_v39  ;;  %vm381_vm7 = vcmp.ge.f32.partialorder %v317_v40, 0.0  ;;  %v318_v48 = vadd.f32 %v759_v1, %v250_v41  ;;  %v197_v35 = vld [vmem:[%s754_s20 + $0xb8] sm:$0xff] }
  0x1a   : > { %570 = vst [vmem:[%s787_s25 + $0x20] sm:$0xff] %v506_v38  ;;  %v445_v49 = vmul.f32 0.2, %v317_v40  ;;  %v319_v50 = vadd.f32 %v759_v1, %v251_v43  ;;  %v320_v51 = vadd.f32 %v759_v1, %v252_v44  ;;  %v321_v52 = vadd.f32 %v759_v1, %v253_v45  ;;  %v198_v36 = vld [vmem:[%s754_s20 + $0xc0] sm:$0xff] }
  0x1b   : > { %571 = vst [vmem:[%s787_s25 + $0x28] sm:$0xff] %v507_v42  ;;  %v508_v54 = vsel %vm380_vm6, %v316_v39, %v444_v47  ;;  %vm382_vm8 = vcmp.ge.f32.partialorder %v318_v48, 0.0  ;;  %v446_v55 = vmul.f32 0.2, %v318_v48  ;;  %v254_v56 = vmul.f32 %v748_v0, %v186_v46 }
  0x1c   : > { %572 = vst [vmem:[%s787_s25 + $0x30] sm:$0xff] %v508_v54  ;;  %v509_v59 = vsel %vm381_vm7, %v317_v40, %v445_v49  ;;  %vm383_vm9 = vcmp.ge.f32.partialorder %v319_v50, 0.0  ;;  %v447_v60 = vmul.f32 0.2, %v319_v50  ;;  %vm384_vm10 = vcmp.ge.f32.partialorder %v320_v51, 0.0  ;;  %v199_v40 = vld [vmem:[%s754_s20 + $0xc8] sm:$0xff] }
  0x1d   : > { %573 = vst [vmem:[%s787_s25 + $0x38] sm:$0xff] %v509_v59  ;;  %v510_v62 = vsel %vm382_vm8, %v318_v48, %v446_v55  ;;  %v448_v63 = vmul.f32 0.2, %v320_v51  ;;  %vm385_vm11 = vcmp.ge.f32.partialorder %v321_v52, 0.0  ;;  %v449_v2 = vmul.f32 0.2, %v321_v52 }
  0x1e   : > { %574 = vst [vmem:[%s787_s25 + $0x40] sm:$0xff] %v510_v62  ;;  %v511_v3 = vsel %vm383_vm9, %v319_v50, %v447_v60  ;;  %v322_v4 = vadd.f32 %v759_v1, %v254_v56  ;;  %v255_v5 = vmul.f32 %v748_v0, %v187_v53  ;;  %v256_v6 = vmul.f32 %v748_v0, %v188_v57  ;;  %v200_v56 = vld [vmem:[%s754_s20 + $0xd0] sm:$0xff]  ;;  %v201_v57 = vld [vmem:[%s754_s20 + $0xd8] sm:$0xff]  ;;  %v202_v62 = vld [vmem:[%s754_s20 + $0xe0] sm:$0xff] }
  0x1f   : > { %575 = vst [vmem:[%s787_s25 + $0x48] sm:$0xff] %v511_v3  ;;  %v512_v9 = vsel %vm384_vm10, %v320_v51, %v448_v63  ;;  %v513_v10 = vsel %vm385_vm11, %v321_v52, %v449_v2  ;;  %v257_v11 = vmul.f32 %v748_v0, %v189_v58  ;;  %v258_v12 = vmul.f32 %v748_v0, %v190_v61  ;;  %v203_v63 = vld [vmem:[%s754_s20 + $0xe8] sm:$0xff] }
  0x20   : > { %576 = vst [vmem:[%s787_s25 + $0x50] sm:$0xff] %v512_v9  ;;  %vm386_vm12 = vcmp.ge.f32.partialorder %v322_v4, 0.0  ;;  %v450_v13 = vmul.f32 0.2, %v322_v4  ;;  %v323_v14 = vadd.f32 %v759_v1, %v255_v5  ;;  %v324_v15 = vadd.f32 %v759_v1, %v256_v6  ;;  %v204_v9 = vld [vmem:[%s754_s20 + $0xf0] sm:$0xff] }
  0x21   : > { %577 = vst [vmem:[%s787_s25 + $0x58] sm:$0xff] %v513_v10  ;;  %v325_v16 = vadd.f32 %v759_v1, %v257_v11  ;;  %v326_v17 = vadd.f32 %v759_v1, %v258_v12  ;;  %v259_v18 = vmul.f32 %v748_v0, %v191_v7  ;;  %v260_v19 = vmul.f32 %v748_v0, %v192_v8 }
  0x22   : > { %v514_v20 = vsel %vm386_vm12, %v322_v4, %v450_v13  ;;  %vm387_vm13 = vcmp.ge.f32.partialorder %v323_v14, 0.0  ;;  %v451_v21 = vmul.f32 0.2, %v323_v14  ;;  %vm388_vm14 = vcmp.ge.f32.partialorder %v324_v15, 0.0 }
  0x23   : > { %578 = vst [vmem:[%s787_s25 + $0x60] sm:$0xff] %v514_v20  ;;  %v452_v23 = vmul.f32 0.2, %v324_v15  ;;  %vm389_vm15 = vcmp.ge.f32.partialorder %v325_v16, 0.0  ;;  %v453_v24 = vmul.f32 0.2, %v325_v16  ;;  %v327_v25 = vadd.f32 %v759_v1, %v259_v18 }
  0x24   : > { %v515_v26 = vsel %vm387_vm13, %v323_v14, %v451_v21  ;;  %vm390_vm0 = vcmp.ge.f32.partialorder %v326_v17, 0.0  ;;  %v454_v27 = vmul.f32 0.2, %v326_v17  ;;  %v328_v28 = vadd.f32 %v759_v1, %v260_v19  ;;  %v205_v14 = vld [vmem:[%s754_s20 + $0xf8] sm:$0xff] }
  0x25   : > { %579 = vst [vmem:[%s787_s25 + $0x68] sm:$0xff] %v515_v26  ;;  %v516_v32 = vsel %vm388_vm14, %v324_v15, %v452_v23  ;;  %v517_v33 = vsel %vm389_vm15, %v325_v16, %v453_v24  ;;  %vm391_vm1 = vcmp.ge.f32.partialorder %v327_v25, 0.0  ;;  %v455_v34 = vmul.f32 0.2, %v327_v25  ;;  %v207_v26 = vld [vmem:[%s754_s20 + $0x108] sm:$0xff] }
  0x26   : > { %580 = vst [vmem:[%s787_s25 + $0x70] sm:$0xff] %v516_v32  ;;  %v518_v37 = vsel %vm390_vm0, %v326_v17, %v454_v27  ;;  %vm392_vm2 = vcmp.ge.f32.partialorder %v328_v28, 0.0  ;;  %v456_v38 = vmul.f32 0.2, %v328_v28  ;;  %v261_v39 = vmul.f32 %v748_v0, %v193_v22 }
  0x27   : > { %581 = vst [vmem:[%s787_s25 + $0x78] sm:$0xff] %v517_v33  ;;  %v519_v41 = vsel %vm391_vm1, %v327_v25, %v455_v34  ;;  %v262_v42 = vmul.f32 %v748_v0, %v194_v29  ;;  %v263_v43 = vmul.f32 %v748_v0, %v195_v30  ;;  %v264_v44 = vmul.f32 %v748_v0, %v196_v31  ;;  %v206_v25 = vld [vmem:[%s754_s20 + $0x100] sm:$0xff] }
  0x28   : > { %582 = vst [vmem:[%s787_s25 + $0x80] sm:$0xff] %v518_v37  ;;  %v520_v45 = vsel %vm392_vm2, %v328_v28, %v456_v38  ;;  %v329_v46 = vadd.f32 %v759_v1, %v261_v39  ;;  %v265_v47 = vmul.f32 %v748_v0, %v197_v35  ;;  %v266_v48 = vmul.f32 %v748_v0, %v198_v36  ;;  %v208_v36 = vld [vmem:[%s754_s20 + $0x110] sm:$0xff]  ;;  %v209_v37 = vld [vmem:[%s754_s20 + $0x118] sm:$0xff]  ;;  %v210_v38 = vld [vmem:[%s754_s20 + $0x120] sm:$0xff] }
  0x29   : > { %583 = vst [vmem:[%s787_s25 + $0x88] sm:$0xff] %v519_v41  ;;  %v330_v49 = vadd.f32 %v759_v1, %v262_v42  ;;  %v331_v50 = vadd.f32 %v759_v1, %v263_v43  ;;  %v332_v51 = vadd.f32 %v759_v1, %v264_v44  ;;  %v267_v52 = vmul.f32 %v748_v0, %v199_v40 }
  0x2a   : > { %584 = vst [vmem:[%s787_s25 + $0x90] sm:$0xff] %v520_v45  ;;  %vm393_vm3 = vcmp.ge.f32.partialorder %v329_v46, 0.0  ;;  %v457_v53 = vmul.f32 0.2, %v329_v46  ;;  %v333_v54 = vadd.f32 %v759_v1, %v265_v47  ;;  %v334_v55 = vadd.f32 %v759_v1, %v266_v48 }
  0x2b   : > { %vm394_vm4 = vcmp.ge.f32.partialorder %v330_v49, 0.0  ;;  %v458_v58 = vmul.f32 0.2, %v330_v49  ;;  %vm395_vm5 = vcmp.ge.f32.partialorder %v331_v50, 0.0  ;;  %v459_v59 = vmul.f32 0.2, %v331_v50 }
  0x2c   : > { %v521_v60 = vsel %vm393_vm3, %v329_v46, %v457_v53  ;;  %vm396_vm6 = vcmp.ge.f32.partialorder %v332_v51, 0.0  ;;  %v460_v61 = vmul.f32 0.2, %v332_v51  ;;  %vm397_vm7 = vcmp.ge.f32.partialorder %v333_v54, 0.0 }
  0x2d   : > { %585 = vst [vmem:[%s787_s25 + $0x98] sm:$0xff] %v521_v60  ;;  %v522_v2 = vsel %vm394_vm4, %v330_v49, %v458_v58  ;;  %v523_v3 = vsel %vm395_vm5, %v331_v50, %v459_v59  ;;  %v461_v4 = vmul.f32 0.2, %v333_v54  ;;  %vm398_vm8 = vcmp.ge.f32.partialorder %v334_v55, 0.0  ;;  %v211_v49 = vld [vmem:[%s754_s20 + $0x128] sm:$0xff]  ;;  %v212_v50 = vld [vmem:[%s754_s20 + $0x130] sm:$0xff] }
  0x2e   : > { %586 = vst [vmem:[%s787_s25 + $0xa0] sm:$0xff] %v522_v2  ;;  %v524_v5 = vsel %vm396_vm6, %v332_v51, %v460_v61  ;;  %v462_v6 = vmul.f32 0.2, %v334_v55  ;;  %v335_v7 = vadd.f32 %v759_v1, %v267_v52  ;;  %v268_v8 = vmul.f32 %v748_v0, %v200_v56  ;;  %v213_v51 = vld [vmem:[%s754_s20 + $0x138] sm:$0xff] }
  0x2f   : > { %587 = vst [vmem:[%s787_s25 + $0xa8] sm:$0xff] %v523_v3  ;;  %v525_v10 = vsel %vm397_vm7, %v333_v54, %v461_v4  ;;  %v269_v11 = vmul.f32 %v748_v0, %v201_v57  ;;  %v270_v12 = vmul.f32 %v748_v0, %v202_v62  ;;  %v271_v13 = vmul.f32 %v748_v0, %v203_v63  ;;  %v214_v62 = vld [vmem:[%s754_s20 + $0x140] sm:$0xff] }
  0x30   : > { %588 = vst [vmem:[%s787_s25 + $0xb0] sm:$0xff] %v524_v5  ;;  %v526_v15 = vsel %vm398_vm8, %v334_v55, %v462_v6  ;;  %vm399_vm9 = vcmp.ge.f32.partialorder %v335_v7, 0.0  ;;  %v463_v16 = vmul.f32 0.2, %v335_v7  ;;  %v336_v17 = vadd.f32 %v759_v1, %v268_v8 }
  0x31   : > { %589 = vst [vmem:[%s787_s25 + $0xb8] sm:$0xff] %v525_v10  ;;  %v337_v18 = vadd.f32 %v759_v1, %v269_v11  ;;  %v338_v19 = vadd.f32 %v759_v1, %v270_v12  ;;  %v339_v20 = vadd.f32 %v759_v1, %v271_v13  ;;  %v272_v21 = vmul.f32 %v748_v0, %v204_v9  ;;  %v215_v10 = vld [vmem:[%s754_s20 + $0x148] sm:$0xff]  ;;  %v216_v11 = vld [vmem:[%s754_s20 + $0x150] sm:$0xff] }
  0x32   : > { %590 = vst [vmem:[%s787_s25 + $0xc0] sm:$0xff] %v526_v15  ;;  %v527_v22 = vsel %vm399_vm9, %v335_v7, %v463_v16  ;;  %vm400_vm10 = vcmp.ge.f32.partialorder %v336_v17, 0.0  ;;  %v464_v23 = vmul.f32 0.2, %v336_v17  ;;  %v273_v24 = vmul.f32 %v748_v0, %v205_v14  ;;  %v217_v15 = vld [vmem:[%s754_s20 + $0x158] sm:$0xff] }
  0x33   : > { %591 = vst [vmem:[%s787_s25 + $0xc8] sm:$0xff] %v527_v22  ;;  %vm401_vm11 = vcmp.ge.f32.partialorder %v337_v18, 0.0  ;;  %v465_v27 = vmul.f32 0.2, %v337_v18  ;;  %vm402_vm12 = vcmp.ge.f32.partialorder %v338_v19, 0.0  ;;  %vm403_vm13 = vcmp.ge.f32.partialorder %v339_v20, 0.0 }
  0x34   : > { %v528_v28 = vsel %vm400_vm10, %v336_v17, %v464_v23  ;;  %v466_v29 = vmul.f32 0.2, %v338_v19  ;;  %v467_v30 = vmul.f32 0.2, %v339_v20  ;;  %v340_v31 = vadd.f32 %v759_v1, %v272_v21  ;;  %v219_v23 = vld [vmem:[%s754_s20 + $0x168] sm:$0xff] }
  0x35   : > { %592 = vst [vmem:[%s787_s25 + $0xd0] sm:$0xff] %v528_v28  ;;  %v529_v32 = vsel %vm401_vm11, %v337_v18, %v465_v27  ;;  %v341_v33 = vadd.f32 %v759_v1, %v273_v24  ;;  %v274_v34 = vmul.f32 %v748_v0, %v206_v25  ;;  %v275_v35 = vmul.f32 %v748_v0, %v207_v26  ;;  %v218_v18 = vld [vmem:[%s754_s20 + $0x160] sm:$0xff]  ;;  %v220_v24 = vld [vmem:[%s754_s20 + $0x170] sm:$0xff] }
  0x36   : > { %593 = vst [vmem:[%s787_s25 + $0xd8] sm:$0xff] %v529_v32  ;;  %v530_v39 = vsel %vm402_vm12, %v338_v19, %v466_v29  ;;  %v531_v40 = vsel %vm403_vm13, %v339_v20, %v467_v30  ;;  %vm404_vm14 = vcmp.ge.f32.partialorder %v340_v31, 0.0  ;;  %v468_v41 = vmul.f32 0.2, %v340_v31 }
  0x37   : > { %594 = vst [vmem:[%s787_s25 + $0xe0] sm:$0xff] %v530_v39  ;;  %vm405_vm15 = vcmp.ge.f32.partialorder %v341_v33, 0.0  ;;  %v469_v42 = vmul.f32 0.2, %v341_v33  ;;  %v342_v43 = vadd.f32 %v759_v1, %v274_v34  ;;  %v343_v44 = vadd.f32 %v759_v1, %v275_v35 }
  0x38   : > { %595 = vst [vmem:[%s787_s25 + $0xe8] sm:$0xff] %v531_v40  ;;  %v532_v45 = vsel %vm404_vm14, %v340_v31, %v468_v41  ;;  %v276_v46 = vmul.f32 %v748_v0, %v208_v36  ;;  %v277_v47 = vmul.f32 %v748_v0, %v209_v37  ;;  %v278_v48 = vmul.f32 %v748_v0, %v210_v38  ;;  %v221_v41 = vld [vmem:[%s754_s20 + $0x178] sm:$0xff] }
  0x39   : > { %596 = vst [vmem:[%s787_s25 + $0xf0] sm:$0xff] %v532_v45  ;;  %v533_v52 = vsel %vm405_vm15, %v341_v33, %v469_v42  ;;  %vm406_vm0 = vcmp.ge.f32.partialorder %v342_v43, 0.0  ;;  %v470_v53 = vmul.f32 0.2, %v342_v43  ;;  %vm407_vm1 = vcmp.ge.f32.partialorder %v343_v44, 0.0  ;;  %v222_v45 = vld [vmem:[%s754_s20 + $0x180] sm:$0xff] }
  0x3a   : > { %597 = vst [vmem:[%s787_s25 + $0xf8] sm:$0xff] %v533_v52  ;;  %v471_v54 = vmul.f32 0.2, %v343_v44  ;;  %v344_v55 = vadd.f32 %v759_v1, %v276_v46  ;;  %v345_v56 = vadd.f32 %v759_v1, %v277_v47  ;;  %v346_v57 = vadd.f32 %v759_v1, %v278_v48  ;;  %v223_v46 = vld [vmem:[%s754_s20 + $0x188] sm:$0xff]  ;;  %v224_v47 = vld [vmem:[%s754_s20 + $0x190] sm:$0xff]  ;;  %v226_v52 = vld [vmem:[%s754_s20 + $0x1a0] sm:$0xff] }
  0x3b   : > { %v534_v58 = vsel %vm406_vm0, %v342_v43, %v470_v53  ;;  %v279_v59 = vmul.f32 %v748_v0, %v211_v49  ;;  %v280_v60 = vmul.f32 %v748_v0, %v212_v50  ;;  %v281_v61 = vmul.f32 %v748_v0, %v213_v51  ;;  %v225_v51 = vld [vmem:[%s754_s20 + $0x198] sm:$0xff] }
  0x3c   : > { %598 = vst [vmem:[%s787_s25 + $0x100] sm:$0xff] %v534_v58  ;;  %v535_v63 = vsel %vm407_vm1, %v343_v44, %v471_v54  ;;  %vm408_vm2 = vcmp.ge.f32.partialorder %v344_v55, 0.0  ;;  %v472_v2 = vmul.f32 0.2, %v344_v55  ;;  %vm409_vm3 = vcmp.ge.f32.partialorder %v345_v56, 0.0 }
  0x3d   : > { %599 = vst [vmem:[%s787_s25 + $0x108] sm:$0xff] %v535_v63  ;;  %v473_v3 = vmul.f32 0.2, %v345_v56  ;;  %vm410_vm4 = vcmp.ge.f32.partialorder %v346_v57, 0.0  ;;  %v474_v4 = vmul.f32 0.2, %v346_v57  ;;  %v347_v5 = vadd.f32 %v759_v1, %v279_v59 }
  0x3e   : > { %v536_v6 = vsel %vm408_vm2, %v344_v55, %v472_v2  ;;  %v348_v7 = vadd.f32 %v759_v1, %v280_v60  ;;  %v349_v8 = vadd.f32 %v759_v1, %v281_v61  ;;  %v282_v9 = vmul.f32 %v748_v0, %v214_v62 }
  0x3f   : > { %600 = vst [vmem:[%s787_s25 + $0x110] sm:$0xff] %v536_v6  ;;  %v537_v12 = vsel %vm409_vm3, %v345_v56, %v473_v3  ;;  %v538_v13 = vsel %vm410_vm4, %v346_v57, %v474_v4  ;;  %vm411_vm5 = vcmp.ge.f32.partialorder %v347_v5, 0.0  ;;  %v475_v14 = vmul.f32 0.2, %v347_v5  ;;  %v227_v56 = vld [vmem:[%s754_s20 + $0x1a8] sm:$0xff] }
  0x40   : > { %601 = vst [vmem:[%s787_s25 + $0x118] sm:$0xff] %v537_v12  ;;  %vm412_vm6 = vcmp.ge.f32.partialorder %v348_v7, 0.0  ;;  %v476_v16 = vmul.f32 0.2, %v348_v7  ;;  %vm413_vm7 = vcmp.ge.f32.partialorder %v349_v8, 0.0  ;;  %v350_v17 = vadd.f32 %v759_v1, %v282_v9 }
  0x41   : > { %602 = vst [vmem:[%s787_s25 + $0x120] sm:$0xff] %v538_v13  ;;  %v539_v19 = vsel %vm411_vm5, %v347_v5, %v475_v14  ;;  %v477_v20 = vmul.f32 0.2, %v349_v8  ;;  %v283_v21 = vmul.f32 %v748_v0, %v215_v10  ;;  %v284_v22 = vmul.f32 %v748_v0, %v216_v11  ;;  %v228_v10 = vld [vmem:[%s754_s20 + $0x1b0] sm:$0xff]  ;;  %v229_v11 = vld [vmem:[%s754_s20 + $0x1b8] sm:$0xff] }
  0x42   : > { %603 = vst [vmem:[%s787_s25 + $0x128] sm:$0xff] %v539_v19  ;;  %v540_v25 = vsel %vm412_vm6, %v348_v7, %v476_v16  ;;  %vm414_vm8 = vcmp.ge.f32.partialorder %v350_v17, 0.0  ;;  %v478_v26 = vmul.f32 0.2, %v350_v17  ;;  %v285_v27 = vmul.f32 %v748_v0, %v217_v15  ;;  %v230_v16 = vld [vmem:[%s754_s20 + $0x1c0] sm:$0xff] }
  0x43   : > { %604 = vst [vmem:[%s787_s25 + $0x130] sm:$0xff] %v540_v25  ;;  %v541_v28 = vsel %vm413_vm7, %v349_v8, %v477_v20  ;;  %v351_v29 = vadd.f32 %v759_v1, %v283_v21  ;;  %v352_v30 = vadd.f32 %v759_v1, %v284_v22  ;;  %v286_v31 = vmul.f32 %v748_v0, %v218_v18  ;;  %v232_v25 = vld [vmem:[%s754_s20 + $0x1d0] sm:$0xff] }
  0x44   : > { %605 = vst [vmem:[%s787_s25 + $0x138] sm:$0xff] %v541_v28  ;;  %v542_v32 = vsel %vm414_vm8, %v350_v17, %v478_v26  ;;  %v353_v33 = vadd.f32 %v759_v1, %v285_v27  ;;  %v287_v34 = vmul.f32 %v748_v0, %v219_v23  ;;  %v288_v35 = vmul.f32 %v748_v0, %v220_v24  ;;  %v231_v17 = vld [vmem:[%s754_s20 + $0x1c8] sm:$0xff] }
  0x45   : > { %606 = vst [vmem:[%s787_s25 + $0x140] sm:$0xff] %v542_v32  ;;  %vm415_vm9 = vcmp.ge.f32.partialorder %v351_v29, 0.0  ;;  %v479_v36 = vmul.f32 0.2, %v351_v29  ;;  %vm416_vm10 = vcmp.ge.f32.partialorder %v352_v30, 0.0  ;;  %v354_v37 = vadd.f32 %v759_v1, %v286_v31 }
  0x46   : > { %v480_v38 = vmul.f32 0.2, %v352_v30  ;;  %vm417_vm11 = vcmp.ge.f32.partialorder %v353_v33, 0.0  ;;  %v481_v39 = vmul.f32 0.2, %v353_v33  ;;  %v355_v40 = vadd.f32 %v759_v1, %v287_v34 }
  0x47   : > { %v543_v42 = vsel %vm415_vm9, %v351_v29, %v479_v36  ;;  %vm418_vm12 = vcmp.ge.f32.partialorder %v354_v37, 0.0  ;;  %v482_v43 = vmul.f32 0.2, %v354_v37  ;;  %v356_v44 = vadd.f32 %v759_v1, %v288_v35 }
  0x48   : > { %607 = vst [vmem:[%s787_s25 + $0x148] sm:$0xff] %v543_v42  ;;  %v544_v48 = vsel %vm416_vm10, %v352_v30, %v480_v38  ;;  %v545_v49 = vsel %vm417_vm11, %v353_v33, %v481_v39  ;;  %vm419_vm13 = vcmp.ge.f32.partialorder %v355_v40, 0.0  ;;  %v483_v50 = vmul.f32 0.2, %v355_v40  ;;  %v233_v30 = vld [vmem:[%s754_s20 + $0x1d8] sm:$0xff]  ;;  %v235_v42 = vld [vmem:[%s754_s20 + $0x1e8] sm:$0xff] }
  0x49   : > { %608 = vst [vmem:[%s787_s25 + $0x150] sm:$0xff] %v544_v48  ;;  %v546_v53 = vsel %vm418_vm12, %v354_v37, %v482_v43  ;;  %vm420_vm14 = vcmp.ge.f32.partialorder %v356_v44, 0.0  ;;  %v484_v54 = vmul.f32 0.2, %v356_v44  ;;  %v289_v55 = vmul.f32 %v748_v0, %v221_v41  ;;  %v234_v41 = vld [vmem:[%s754_s20 + $0x1e0] sm:$0xff] }
  0x4a   : > { %609 = vst [vmem:[%s787_s25 + $0x158] sm:$0xff] %v545_v49  ;;  %v547_v57 = vsel %vm419_vm13, %v355_v40, %v483_v50  ;;  %v290_v58 = vmul.f32 %v748_v0, %v222_v45  ;;  %v291_v59 = vmul.f32 %v748_v0, %v223_v46  ;;  %v292_v60 = vmul.f32 %v748_v0, %v224_v47 }
  0x4b   : > { %610 = vst [vmem:[%s787_s25 + $0x160] sm:$0xff] %v546_v53  ;;  %v548_v61 = vsel %vm420_vm14, %v356_v44, %v484_v54  ;;  %v357_v62 = vadd.f32 %v759_v1, %v289_v55  ;;  %v293_v63 = vmul.f32 %v748_v0, %v225_v51  ;;  %v294_v2 = vmul.f32 %v748_v0, %v226_v52  ;;  %v236_v52 = vld [vmem:[%s754_s20 + $0x1f0] sm:$0xff]  ;;  %v237_v53 = vld [vmem:[%s754_s20 + $0x1f8] sm:$0xff] }
  0x4c   : > { %611 = vst [vmem:[%s787_s25 + $0x168] sm:$0xff] %v547_v57  ;;  %v358_v3 = vadd.f32 %v759_v1, %v290_v58  ;;  %v359_v4 = vadd.f32 %v759_v1, %v291_v59  ;;  %v360_v5 = vadd.f32 %v759_v1, %v292_v60  ;;  %v295_v6 = vmul.f32 %v748_v0, %v227_v56 }
  0x4d   : > { %612 = vst [vmem:[%s787_s25 + $0x170] sm:$0xff] %v548_v61  ;;  %vm421_vm15 = vcmp.ge.f32.partialorder %v357_v62, 0.0  ;;  %v485_v7 = vmul.f32 0.2, %v357_v62  ;;  %v361_v8 = vadd.f32 %v759_v1, %v293_v63  ;;  %v362_v9 = vadd.f32 %v759_v1, %v294_v2 }
  0x4e   : > { %vm422_vm0 = vcmp.ge.f32.partialorder %v358_v3, 0.0  ;;  %v486_v12 = vmul.f32 0.2, %v358_v3  ;;  %vm423_vm1 = vcmp.ge.f32.partialorder %v359_v4, 0.0  ;;  %v487_v13 = vmul.f32 0.2, %v359_v4 }
  0x4f   : > { %v549_v14 = vsel %vm421_vm15, %v357_v62, %v485_v7  ;;  %vm424_vm2 = vcmp.ge.f32.partialorder %v360_v5, 0.0  ;;  %v488_v15 = vmul.f32 0.2, %v360_v5  ;;  %vm425_vm3 = vcmp.ge.f32.partialorder %v361_v8, 0.0 }
  0x50   : > { %613 = vst [vmem:[%s787_s25 + $0x178] sm:$0xff] %v549_v14  ;;  %v550_v18 = vsel %vm422_vm0, %v358_v3, %v486_v12  ;;  %v551_v19 = vsel %vm423_vm1, %v359_v4, %v487_v13  ;;  %v489_v20 = vmul.f32 0.2, %v361_v8  ;;  %vm426_vm4 = vcmp.ge.f32.partialorder %v362_v9, 0.0 }
  0x51   : > { %614 = vst [vmem:[%s787_s25 + $0x180] sm:$0xff] %v550_v18  ;;  %v552_v21 = vsel %vm424_vm2, %v360_v5, %v488_v15  ;;  %v490_v22 = vmul.f32 0.2, %v362_v9  ;;  %v363_v23 = vadd.f32 %v759_v1, %v295_v6  ;;  %v296_v24 = vmul.f32 %v748_v0, %v228_v10 }
  0x52   : > { %615 = vst [vmem:[%s787_s25 + $0x188] sm:$0xff] %v551_v19  ;;  %v553_v26 = vsel %vm425_vm3, %v361_v8, %v489_v20  ;;  %v297_v27 = vmul.f32 %v748_v0, %v229_v11  ;;  %v298_v28 = vmul.f32 %v748_v0, %v230_v16  ;;  %v299_v29 = vmul.f32 %v748_v0, %v231_v17 }
  0x53   : > { %616 = vst [vmem:[%s787_s25 + $0x190] sm:$0xff] %v552_v21  ;;  %v554_v31 = vsel %vm426_vm4, %v362_v9, %v490_v22  ;;  %vm427_vm5 = vcmp.ge.f32.partialorder %v363_v23, 0.0  ;;  %v491_v32 = vmul.f32 0.2, %v363_v23  ;;  %v364_v33 = vadd.f32 %v759_v1, %v296_v24 }
  0x54   : > { %617 = vst [vmem:[%s787_s25 + $0x198] sm:$0xff] %v553_v26  ;;  %v365_v34 = vadd.f32 %v759_v1, %v297_v27  ;;  %v366_v35 = vadd.f32 %v759_v1, %v298_v28  ;;  %v367_v36 = vadd.f32 %v759_v1, %v299_v29  ;;  %v300_v37 = vmul.f32 %v748_v0, %v232_v25 }
  0x55   : > { %618 = vst [vmem:[%s787_s25 + $0x1a0] sm:$0xff] %v554_v31  ;;  %v555_v38 = vsel %vm427_vm5, %v363_v23, %v491_v32  ;;  %vm428_vm6 = vcmp.ge.f32.partialorder %v364_v33, 0.0  ;;  %v492_v39 = vmul.f32 0.2, %v364_v33  ;;  %v301_v40 = vmul.f32 %v748_v0, %v233_v30 }
  0x56   : > { %619 = vst [vmem:[%s787_s25 + $0x1a8] sm:$0xff] %v555_v38  ;;  %vm429_vm7 = vcmp.ge.f32.partialorder %v365_v34, 0.0  ;;  %v493_v43 = vmul.f32 0.2, %v365_v34  ;;  %vm430_vm8 = vcmp.ge.f32.partialorder %v366_v35, 0.0  ;;  %vm431_vm9 = vcmp.ge.f32.partialorder %v367_v36, 0.0 }
  0x57   : > { %v556_v44 = vsel %vm428_vm6, %v364_v33, %v492_v39  ;;  %v494_v45 = vmul.f32 0.2, %v366_v35  ;;  %v495_v46 = vmul.f32 0.2, %v367_v36  ;;  %v368_v47 = vadd.f32 %v759_v1, %v300_v37 }
  0x58   : > { %620 = vst [vmem:[%s787_s25 + $0x1b0] sm:$0xff] %v556_v44  ;;  %v557_v48 = vsel %vm429_vm7, %v365_v34, %v493_v43  ;;  %v369_v49 = vadd.f32 %v759_v1, %v301_v40  ;;  %v302_v50 = vmul.f32 %v748_v0, %v234_v41  ;;  %v303_v51 = vmul.f32 %v748_v0, %v235_v42 }
  0x59   : > { %621 = vst [vmem:[%s787_s25 + $0x1b8] sm:$0xff] %v557_v48  ;;  %v558_v54 = vsel %vm430_vm8, %v366_v35, %v494_v45  ;;  %v559_v55 = vsel %vm431_vm9, %v367_v36, %v495_v46  ;;  %vm432_vm10 = vcmp.ge.f32.partialorder %v368_v47, 0.0  ;;  %v496_v56 = vmul.f32 0.2, %v368_v47 }
  0x5a   : > { %622 = vst [vmem:[%s787_s25 + $0x1c0] sm:$0xff] %v558_v54  ;;  %vm433_vm11 = vcmp.ge.f32.partialorder %v369_v49, 0.0  ;;  %v497_v57 = vmul.f32 0.2, %v369_v49  ;;  %v370_v58 = vadd.f32 %v759_v1, %v302_v50  ;;  %v371_v59 = vadd.f32 %v759_v1, %v303_v51 }
  0x5b   : > { %623 = vst [vmem:[%s787_s25 + $0x1c8] sm:$0xff] %v559_v55  ;;  %v560_v60 = vsel %vm432_vm10, %v368_v47, %v496_v56  ;;  %v304_v61 = vmul.f32 %v748_v0, %v236_v52  ;;  %v305_v62 = vmul.f32 %v748_v0, %v237_v53 }
  0x5c   : > { %624 = vst [vmem:[%s787_s25 + $0x1d0] sm:$0xff] %v560_v60  ;;  %v561_v63 = vsel %vm433_vm11, %v369_v49, %v497_v57  ;;  %vm434_vm12 = vcmp.ge.f32.partialorder %v370_v58, 0.0  ;;  %v498_v2 = vmul.f32 0.2, %v370_v58  ;;  %vm435_vm13 = vcmp.ge.f32.partialorder %v371_v59, 0.0 }
  0x5d   : > { %625 = vst [vmem:[%s787_s25 + $0x1d8] sm:$0xff] %v561_v63  ;;  %v499_v3 = vmul.f32 0.2, %v371_v59  ;;  %v372_v4 = vadd.f32 %v759_v1, %v304_v61  ;;  %v373_v5 = vadd.f32 %v759_v1, %v305_v62 }
  0x5e   : > { %v562_v6 = vsel %vm434_vm12, %v370_v58, %v498_v2 }
  0x5f   : > { %626 = vst [vmem:[%s787_s25 + $0x1e0] sm:$0xff] %v562_v6  ;;  %v563_v7 = vsel %vm435_vm13, %v371_v59, %v499_v3  ;;  %vm436_vm14 = vcmp.ge.f32.partialorder %v372_v4, 0.0  ;;  %v500_v8 = vmul.f32 0.2, %v372_v4  ;;  %vm437_vm15 = vcmp.ge.f32.partialorder %v373_v5, 0.0 }
  0x60   : > { %627 = vst [vmem:[%s787_s25 + $0x1e8] sm:$0xff] %v563_v7  ;;  %v501_v0 = vmul.f32 0.2, %v373_v5 }
  0x61   : > { %v564_v9 = vsel %vm436_vm14, %v372_v4, %v500_v8 }
  0x62   : > { %628 = vst [vmem:[%s787_s25 + $0x1f0] sm:$0xff] %v564_v9  ;;  %v565_v10 = vsel %vm437_vm15, %v373_v5, %v501_v0 }
  0x63   : > { %629 = vst [vmem:[%s787_s25 + $0x1f8] sm:$0xff] %v565_v10 }
  0x64 PF: > { %s13_s12 = sadd.s32 1, %s713_s12  }
  0x65   : > { %p10_p4 = scmp.ge.s32.totalorder %s13_s12, 4  }
  0x67   :  { %12 = sbr.rel (!%p10_p4) target bundleno = 1 (0x1), region = 62 }

</bundles_post_ra>
